<compile_context>
chip_gen: v7x
topology: tpu7x:2x2x1
jax: 0.10.0
libtpu: 0.0.40
codegen_flags: <defaults>
</compile_context>

<pallas_src>
import functools

import jax
import jax.numpy as jnp
from jax.experimental import pallas as pl
from jax.experimental.pallas import tpu as pltpu

_VMEM = pl.BlockSpec(memory_space=pltpu.MemorySpace.VMEM)
_EPS = 1e-5          # PyTorch BatchNorm default eps
_K_STEM = 256        # 7*7*3 = 147 zero-padded to an MXU-aligned contraction dim


def _compiler_params(num_parallel):
    """Generation-aware scoped-VMEM limit + parallel grid semantics."""
    try:
        cap = pltpu.get_tpu_info().vmem_capacity_bytes
        vmem_limit = min(int(cap) * 7 // 8, 100 * 1024 * 1024)
    except Exception:          # conservative fallback if the query is unavailable
        vmem_limit = 64 * 1024 * 1024
    return pltpu.CompilerParams(
        dimension_semantics=("parallel",) * num_parallel,
        vmem_limit_bytes=vmem_limit)


# ----------------------------------------------------------------------------
# Pallas kernels
# ----------------------------------------------------------------------------
def _maxpool3x3s2(y, H, W, HO, WO):
    """3x3 stride-2 pad-1 maxpool on a (H*W, C) f32 row-major map, in VMEM.

    Padding is handled by clipping the window (inputs are post-ReLU, >= 0).
    Only static sublane slices, elementwise maxima and tiny reductions."""
    out_rows = []
    for i in range(HO):
        r0, r1 = max(2 * i - 1, 0), min(2 * i + 1, H - 1)
        vm = y[r0 * W:(r0 + 1) * W, :]
        for r in range(r0 + 1, r1 + 1):
            vm = jnp.maximum(vm, y[r * W:(r + 1) * W, :])
        cols = []
        for j in range(WO):
            c0, c1 = max(2 * j - 1, 0), min(2 * j + 1, W - 1)
            cols.append(jnp.max(vm[c0:c1 + 1, :], axis=0, keepdims=True))
        out_rows.append(jnp.concatenate(cols, axis=0))
    return jnp.concatenate(out_rows, axis=0)


def _stem_pool_conv1_kernel(p_ref, ws_ref, wc_ref, sh_ref, o_ref, *, H, W, HO, WO):
    """Fused: conv7x7/2 (im2col matmul) + ReLU -> maxpool3x3/2 -> 1x1 conv + ReLU.

    Emits a lane-dense 128-wide [x | t1] slab; the 64-wide stem map never
    leaves VMEM.  BatchNorm is pre-folded into ws/wc + sh."""
    y = jnp.dot(p_ref[...], ws_ref[...], preferred_element_type=jnp.float32)
    y = jnp.maximum(y + sh_ref[0:1, :], 0.0)                  # (H*W, 64) f32
    x = _maxpool3x3s2(y, H, W, HO, WO)                        # (HO*WO, 64) f32
    xb = x.astype(jnp.bfloat16)
    t = jnp.dot(xb, wc_ref[...], preferred_element_type=jnp.float32)
    t = jnp.maximum(t + sh_ref[1:2, :], 0.0)
    o_ref[...] = jnp.concatenate([xb, t.astype(jnp.bfloat16)], axis=1)


def _block_tail_kernel(s_ref, w2_ref, wm_ref, sh_ref, o_ref, *, HH, WW):
    """Fused bottleneck tail for one image:

      3x3 conv via 9-tap accumulation over a zero-padded VMEM slab (no HBM
      window tensor), ReLU, then ONE merged K=128 matmul [t2 | x] @ [W3 ; Wd]
      (1x1 conv + projection shortcut), residual ReLU, and the global average
      pool fused into the epilogue."""
    C = 64
    WP = WW + 2                      # padded width
    npad = (HH + 2) * WP             # padded grid, flattened
    guard = WP + 1                   # makes every tap a contiguous slice

    x = s_ref[:, 0:C]                # (HH*WW, 64) bf16 — bottleneck input
    t1 = s_ref[:, C:2 * C]           # (HH*WW, 64) bf16 — after 1x1 conv

    zg = jnp.zeros((guard + WP, C), jnp.bfloat16)     # guard + top/bottom pad row
    zc = jnp.zeros((1, C), jnp.bfloat16)
    body = [jnp.concatenate([zc, t1[i * WW:(i + 1) * WW, :], zc], axis=0)
            for i in range(HH)]
    slab = jnp.concatenate([zg] + body + [zg], axis=0)        # (2*guard+npad, 64)

    acc = jnp.zeros((npad, C), jnp.float32)
    for di in range(3):
        for dj in range(3):
            off = guard + (di - 1) * WP + (dj - 1)
            tap = slab[off:off + npad, :]
            w_tap = w2_ref[(di * 3 + dj) * C:(di * 3 + dj + 1) * C, :]
            acc = acc + jnp.dot(tap, w_tap, preferred_element_type=jnp.float32)
    acc = jnp.maximum(acc + sh_ref[0:1, 0:C], 0.0)            # (npad, 64) f32

    # extract the interior (valid) rows -> (HH*WW, 64)
    t2 = jnp.concatenate(
        [acc[(i + 1) * WP + 1:(i + 1) * WP + 1 + WW, :] for i in range(HH)], axis=0)

    m = jnp.concatenate([t2.astype(jnp.bfloat16), x], axis=1)  # (HH*WW, 128)
    y = jnp.dot(m, wm_ref[...], preferred_element_type=jnp.float32) + sh_ref[1:2, :]
    y = jnp.maximum(y, 0.0)                                    # (HH*WW, 256) f32

    # fused global average pool — only (1, 256) per image leaves the kernel
    o_ref[...] = jnp.mean(y, axis=0, keepdims=True).reshape(1, 1, -1).astype(o_ref.dtype)


def _head_kernel(pool_ref, at_ref, wfc_ref, w1a_ref, w1b_ref, w2_ref, sh_ref, o_ref):
    """Fused head: fc(256->512)+bias, cat(feat, at), Linear+BN(folded)+ReLU x2,
    Softmax(dim=1)."""
    feat = jnp.dot(pool_ref[...], wfc_ref[...],
                   preferred_element_type=jnp.float32) + sh_ref[0:1, :]
    # torch.cat((feat, at), 1) @ W1  ==  feat @ W1[:512] + at @ W1[512:]
    h = (jnp.dot(feat.astype(jnp.bfloat16), w1a_ref[...],
                 preferred_element_type=jnp.float32)
         + jnp.dot(at_ref[...], w1b_ref[...], preferred_element_type=jnp.float32)
         + sh_ref[1:2, :])
    h = jnp.maximum(h, 0.0)
    z = jnp.dot(h.astype(jnp.bfloat16), w2_ref[...],
                preferred_element_type=jnp.float32) + sh_ref[2:3, 0:2]
    z = jnp.maximum(z, 0.0)
    mx = jnp.max(z, axis=1, keepdims=True)
    e = jnp.exp(z - mx)
    o_ref[...] = e / jnp.sum(e, axis=1, keepdims=True)


# ----------------------------------------------------------------------------
# pallas_call wrappers (grid over the image/row axis, weights broadcast)
# ----------------------------------------------------------------------------
def stem_pool_conv1(p, params, n, ho, wo, hh, ww):
    kern = functools.partial(_stem_pool_conv1_kernel, H=ho, W=wo, HO=hh, WO=ww)
    return pl.pallas_call(
        kern,
        grid=(n,),
        in_specs=[pl.BlockSpec((ho * wo, _K_STEM), lambda i: (i, 0)),
                  pl.BlockSpec((_K_STEM, 64), lambda i: (0, 0)),
                  pl.BlockSpec((64, 64), lambda i: (0, 0)),
                  pl.BlockSpec((2, 64), lambda i: (0, 0))],
        out_specs=pl.BlockSpec((hh * ww, 128), lambda i: (i, 0)),
        out_shape=jax.ShapeDtypeStruct((n * hh * ww, 128), jnp.bfloat16),
        compiler_params=_compiler_params(1),
    )(p, params["stem_w"], params["c1_w"], params["sh_a"])


def block_tail_pool(s, params, n, hh, ww):
    kern = functools.partial(_block_tail_kernel, HH=hh, WW=ww)
    return pl.pallas_call(
        kern,
        grid=(n,),
        in_specs=[pl.BlockSpec((hh * ww, 128), lambda i: (i, 0)),
                  pl.BlockSpec((576, 64), lambda i: (0, 0)),
                  pl.BlockSpec((128, 256), lambda i: (0, 0)),
                  pl.BlockSpec((2, 256), lambda i: (0, 0))],
        out_specs=pl.BlockSpec((1, 1, 256), lambda i: (i, 0, 0)),
        out_shape=jax.ShapeDtypeStruct((n, 1, 256), jnp.bfloat16),
        compiler_params=_compiler_params(1),
    )(s, params["w2_taps"], params["wm"], params["sh_b"])


def head(pooled, at, params):
    n = pooled.shape[0]
    args = [pooled, at, params["fc_w"], params["w1a"], params["w1b"],
            params["lin2_w"], params["sh_c"]]
    return pl.pallas_call(
        _head_kernel,
        out_shape=jax.ShapeDtypeStruct((n, 2), jnp.float32),
        in_specs=[_VMEM] * len(args),
        out_specs=_VMEM,
    )(*args)


# ----------------------------------------------------------------------------
# Thin XLA glue (stem window extraction only; no compute duplication elsewhere)
# ----------------------------------------------------------------------------
def im2col_nhwc(x, kh, kw, stride, pad):
    """Extract conv patches, feature order (kh, kw, Cin)."""
    n, h, w, c = x.shape
    xp = jnp.pad(x, ((0, 0), (pad, pad), (pad, pad), (0, 0)))
    ho = (h + 2 * pad - kh) // stride + 1
    wo = (w + 2 * pad - kw) // stride + 1
    cols = []
    for i in range(kh):
        for j in range(kw):
            cols.append(xp[:, i:i + stride * ho:stride, j:j + stride * wo:stride, :])
    p = jnp.stack(cols, axis=3).reshape(n * ho * wo, kh * kw * c)
    return p, ho, wo


# ----------------------------------------------------------------------------
# Parameters: synthetic weights + eval-mode BatchNorm folded into scale/shift
# ----------------------------------------------------------------------------
def init_params(key):
    ks = jax.random.split(key, 8)

    def conv_w(k, cout, cin, kh, kw):
        # PyTorch (O, Cin, kh, kw) -> im2col layout (kh*kw*Cin, O)
        fan_in = cin * kh * kw
        std = (2.0 / fan_in) ** 0.5
        w = jax.random.normal(k, (cout, cin, kh, kw), jnp.float32) * std
        return jnp.transpose(w, (2, 3, 1, 0)).reshape(kh * kw * cin, cout)

    def xavier(k, fin, fout):
        a = (6.0 / (fin + fout)) ** 0.5
        return jax.random.uniform(k, (fin, fout), jnp.float32, -a, a)

    def bn(c):
        # default-initialized eval-mode BatchNorm (gamma=1, beta=0, running
        # mean=0, var=1); trained running statistics fold identically.
        return (jnp.ones((c,), jnp.float32), jnp.zeros((c,), jnp.float32),
                jnp.zeros((c,), jnp.float32), jnp.ones((c,), jnp.float32))

    def fold(w, c, bias=None):
        g, b, mu, var = bn(c)
        scale = g * jax.lax.rsqrt(var + _EPS)
        shift = b - mu * scale
        if bias is not None:
            shift = shift + bias * scale
        return (w * scale[None, :]).astype(jnp.bfloat16), shift

    # --- abbreviated ResNet backbone (see TODO at top of file) ---
    stem_w = jnp.pad(conv_w(ks[0], 64, 3, 7, 7), ((0, _K_STEM - 147), (0, 0)))
    stem_w, sh_stem = fold(stem_w, 64)
    c1_w, sh_c1 = fold(conv_w(ks[1], 64, 64, 1, 1), 64)
    w2_taps, sh_c2 = fold(conv_w(ks[2], 64, 64, 3, 3), 64)       # (576, 64) tap-major
    w3, sh_c3 = fold(conv_w(ks[3], 256, 64, 1, 1), 256)
    wd, sh_cd = fold(conv_w(ks[4], 256, 64, 1, 1), 256)
    fc_w = xavier(ks[5], 256, 512).astype(jnp.bfloat16)
    fc_b = jnp.zeros((512,), jnp.float32)
    # --- head: LinearBNR(517 -> 512), LinearBNR(512 -> 2), BN folded ---
    w1, sh_l1 = fold(xavier(ks[6], 512 + 5, 512), 512,
                     bias=jnp.zeros((512,), jnp.float32))
    w2h, sh_l2 = fold(xavier(ks[7], 512, 2), 2,
                      bias=jnp.zeros((2,), jnp.float32))

    return {
        "stem_w": stem_w,                                     # (256, 64)  bf16
        "c1_w": c1_w,                                         # (64, 64)   bf16
        "sh_a": jnp.stack([sh_stem, sh_c1]),                  # (2, 64)    f32
        "w2_taps": w2_taps,                                   # (576, 64)  bf16
        "wm": jnp.concatenate([w3, wd], axis=0),              # (128, 256) = [W3 ; Wd]
        "sh_b": jnp.stack([jnp.pad(sh_c2, (0, 192)), sh_c3 + sh_cd]),  # (2, 256)
        "fc_w": fc_w,                                         # (256, 512) bf16
        "w1a": w1[:512], "w1b": w1[512:],                     # (512,512), (5,512)
        "lin2_w": w2h,                                        # (512, 2)   bf16
        "sh_c": jnp.stack([fc_b, sh_l1, jnp.pad(sh_l2, (0, 510))]),    # (3, 512)
    }


# ----------------------------------------------------------------------------
# Full forward pass:  resnet_grasp(ot, at)
# ----------------------------------------------------------------------------
def resnet_grasp_forward(params, ot, at):
    n = ot.shape[0]
    x = jnp.transpose(ot, (0, 2, 3, 1)).astype(jnp.bfloat16)     # NCHW -> NHWC

    # host-side stem im2col (K padded 147 -> 256); see TODO(synk) above
    p, ho, wo = im2col_nhwc(x, 7, 7, 2, 3)
    p = jnp.pad(p, ((0, 0), (0, _K_STEM - p.shape[1])))
    hh, ww = (ho - 1) // 2 + 1, (wo - 1) // 2 + 1

    # kernel 1: stem conv + ReLU + maxpool + 1x1 conv + ReLU -> [x | t1] slab
    s = stem_pool_conv1(p, params, n, ho, wo, hh, ww)            # (n*hh*ww, 128)
    # kernel 2: 3x3 conv (tap accumulation) + merged 1x1/shortcut + residual
    #           ReLU + global average pool
    pooled = block_tail_pool(s, params, n, hh, ww)               # (n, 1, 256)
    # kernel 3: fc + cat(feat, at) + LinearBNR x2 + Softmax
    return head(pooled.reshape(n, 256), at.astype(jnp.bfloat16), params)


# ----------------------------------------------------------------------------
# Pure-JAX reference (same folded bf16 weights / cast points) for validation
# ----------------------------------------------------------------------------
def reference_forward(params, ot, at):
    n = ot.shape[0]
    x = jnp.transpose(ot, (0, 2, 3, 1)).astype(jnp.bfloat16)
    p, ho, wo = im2col_nhwc(x, 7, 7, 2, 3)
    p = jnp.pad(p, ((0, 0), (0, _K_STEM - p.shape[1])))
    y = jnp.dot(p, params["stem_w"], preferred_element_type=jnp.float32) + params["sh_a"][0]
    y = jnp.maximum(y, 0.0).reshape(n, ho, wo, 64)
    pooled = jax.lax.reduce_window(y, -jnp.inf, jax.lax.max,
                                   (1, 3, 3, 1), (1, 2, 2, 1),
                                   [(0, 0), (1, 1), (1, 1), (0, 0)])
    hh, ww = pooled.shape[1], pooled.shape[2]
    xb = pooled.astype(jnp.bfloat16).reshape(n * hh * ww, 64)
    t1 = jnp.maximum(jnp.dot(xb, params["c1_w"], preferred_element_type=jnp.float32)
                     + params["sh_a"][1], 0.0).astype(jnp.bfloat16)
    w2 = params["w2_taps"].reshape(3, 3, 64, 64)
    t2 = jax.lax.conv_general_dilated(
        t1.reshape(n, hh, ww, 64), w2, (1, 1), "SAME",
        dimension_numbers=("NHWC", "HWIO", "NHWC"),
        preferred_element_type=jnp.float32)
    t2 = jnp.maximum(t2 + params["sh_b"][0, :64], 0.0).reshape(n * hh * ww, 64)
    m = jnp.concatenate([t2.astype(jnp.bfloat16), xb], axis=1)
    y3 = jnp.maximum(jnp.dot(m, params["wm"], preferred_element_type=jnp.float32)
                     + params["sh_b"][1], 0.0)
    feat_in = jnp.mean(y3.reshape(n, hh * ww, 256), axis=1).astype(jnp.bfloat16)
    feat = jnp.dot(feat_in, params["fc_w"], preferred_element_type=jnp.float32) + params["sh_c"][0]
    h = (jnp.dot(feat.astype(jnp.bfloat16), params["w1a"], preferred_element_type=jnp.float32)
         + jnp.dot(at.astype(jnp.bfloat16), params["w1b"], preferred_element_type=jnp.float32)
         + params["sh_c"][1])
    h = jnp.maximum(h, 0.0)
    z = (jnp.dot(h.astype(jnp.bfloat16), params["lin2_w"], preferred_element_type=jnp.float32)
         + params["sh_c"][2, :2])
    z = jnp.maximum(z, 0.0)
    return jax.nn.softmax(z, axis=1)


if __name__ == "__main__":
    key = jax.random.PRNGKey(0)
    kp, ko, ka = jax.random.split(key, 3)
    params = init_params(kp)

    N = 2
    ot = jax.random.normal(ko, (N, 3, 16, 16), jnp.float32)   # image, NCHW (PyTorch)
    at = jax.random.normal(ka, (N, 5), jnp.float32)           # grasp vector, grasp_size=5

    fwd = jax.jit(functools.partial(resnet_grasp_forward, params))
    out = fwd(ot, at)
    jax.block_until_ready(out)

    ref = jax.jit(functools.partial(reference_forward, params))(ot, at)
    jax.block_until_ready(ref)

    assert out.shape == (N, 2)
    assert bool(jnp.all(jnp.isfinite(out)))
    # softmax rows sum to 1
    assert bool(jnp.allclose(jnp.sum(out, axis=1), 1.0, atol=1e-5))
    # matches the pure-JAX reference built from the same folded weights
    assert bool(jnp.allclose(out, ref, atol=1e-2, rtol=1e-2))
    print("KERNEL_OK")
</pallas_src>

<mosaic_0001>
module attributes {stable_mosaic.version = 11 : i64} {
  func.func @_stem_pool_conv1_kernel(%arg0: i32, %arg1: memref<64x256xbf16, #tpu.memory_space<vmem>>, %arg2: memref<256x64xbf16, #tpu.memory_space<vmem>>, %arg3: memref<64x64xbf16, #tpu.memory_space<vmem>>, %arg4: memref<2x64xf32, #tpu.memory_space<vmem>>, %arg5: memref<16x128xbf16, #tpu.memory_space<vmem>>) attributes {dimension_semantics = [#tpu.dimension_semantics<parallel>], iteration_bounds = array<i64: 2>, scalar_prefetch = 0 : i64, scratch_operands = 0 : i64, tpu.core_type = #tpu.core_type<tc>, window_params = [{transform_indices = @transform_0, window_bounds = array<i64: 64, 256>}, {pipeline_mode = #tpu.pipeline_mode<synchronous>, transform_indices = @transform_1, window_bounds = array<i64: 256, 64>}, {pipeline_mode = #tpu.pipeline_mode<synchronous>, transform_indices = @transform_2, window_bounds = array<i64: 64, 64>}, {pipeline_mode = #tpu.pipeline_mode<synchronous>, transform_indices = @transform_3, window_bounds = array<i64: 2, 64>}, {transform_indices = @transform_4, window_bounds = array<i64: 16, 128>}]} {
    %c0 = arith.constant 0 : index
    %c0_0 = arith.constant 0 : index
    %0 = vector.load %arg1[%c0, %c0_0] : memref<64x256xbf16, #tpu.memory_space<vmem>>, vector<64x256xbf16>
    %c0_1 = arith.constant 0 : index
    %c0_2 = arith.constant 0 : index
    %1 = vector.load %arg2[%c0_1, %c0_2] : memref<256x64xbf16, #tpu.memory_space<vmem>>, vector<256x64xbf16>
    %cst = arith.constant dense<0.000000e+00> : vector<64x64xf32>
    %2 = tpu.matmul %0, %1, %cst {dimension_numbers = #tpu.dot_dimension_numbers<[1], [0], [0], [1], [0, 0, 1, 1], [], []>} : vector<64x256xbf16>, vector<256x64xbf16>, vector<64x64xf32> -> vector<64x64xf32>
    %c0_3 = arith.constant 0 : index
    %c0_4 = arith.constant 0 : index
    %3 = vector.load %arg4[%c0_3, %c0_4] : memref<2x64xf32, #tpu.memory_space<vmem>>, vector<1x64xf32>
    %4 = vector.broadcast %3 : vector<1x64xf32> to vector<64x64xf32>
    %5 = arith.addf %2, %4 : vector<64x64xf32>
    %cst_5 = arith.constant 0.000000e+00 : f32
    %6 = vector.broadcast %cst_5 : f32 to vector<64x64xf32>
    %7 = arith.maximumf %5, %6 : vector<64x64xf32>
    %8 = vector.extract_strided_slice %7 {offsets = [0, 0], sizes = [8, 64], strides = [1, 1]} : vector<64x64xf32> to vector<8x64xf32>
    %9 = vector.extract_strided_slice %7 {offsets = [8, 0], sizes = [8, 64], strides = [1, 1]} : vector<64x64xf32> to vector<8x64xf32>
    %10 = arith.maximumf %8, %9 : vector<8x64xf32>
    %11 = vector.extract_strided_slice %10 {offsets = [0, 0], sizes = [2, 64], strides = [1, 1]} : vector<8x64xf32> to vector<2x64xf32>
    %cst_6 = arith.constant dense<0xFF800000> : vector<64xf32>
    %12 = vector.multi_reduction <maximumf>, %11, %cst_6 [0] : vector<2x64xf32> to vector<64xf32>
    %13 = vector.shape_cast %12 : vector<64xf32> to vector<1x64xf32>
    %14 = vector.extract_strided_slice %10 {offsets = [1, 0], sizes = [3, 64], strides = [1, 1]} : vector<8x64xf32> to vector<3x64xf32>
    %cst_7 = arith.constant dense<0xFF800000> : vector<64xf32>
    %15 = vector.multi_reduction <maximumf>, %14, %cst_7 [0] : vector<3x64xf32> to vector<64xf32>
    %16 = vector.shape_cast %15 : vector<64xf32> to vector<1x64xf32>
    %17 = vector.extract_strided_slice %10 {offsets = [3, 0], sizes = [3, 64], strides = [1, 1]} : vector<8x64xf32> to vector<3x64xf32>
    %cst_8 = arith.constant dense<0xFF800000> : vector<64xf32>
    %18 = vector.multi_reduction <maximumf>, %17, %cst_8 [0] : vector<3x64xf32> to vector<64xf32>
    %19 = vector.shape_cast %18 : vector<64xf32> to vector<1x64xf32>
    %20 = vector.extract_strided_slice %10 {offsets = [5, 0], sizes = [3, 64], strides = [1, 1]} : vector<8x64xf32> to vector<3x64xf32>
    %cst_9 = arith.constant dense<0xFF800000> : vector<64xf32>
    %21 = vector.multi_reduction <maximumf>, %20, %cst_9 [0] : vector<3x64xf32> to vector<64xf32>
    %22 = vector.shape_cast %21 : vector<64xf32> to vector<1x64xf32>
    %23 = tpu.concatenate %13, %16, %19, %22 in 0 : vector<1x64xf32>, vector<1x64xf32>, vector<1x64xf32>, vector<1x64xf32> -> vector<4x64xf32>
    %24 = vector.extract_strided_slice %7 {offsets = [8, 0], sizes = [8, 64], strides = [1, 1]} : vector<64x64xf32> to vector<8x64xf32>
    %25 = vector.extract_strided_slice %7 {offsets = [16, 0], sizes = [8, 64], strides = [1, 1]} : vector<64x64xf32> to vector<8x64xf32>
    %26 = arith.maximumf %24, %25 : vector<8x64xf32>
    %27 = vector.extract_strided_slice %7 {offsets = [24, 0], sizes = [8, 64], strides = [1, 1]} : vector<64x64xf32> to vector<8x64xf32>
    %28 = arith.maximumf %26, %27 : vector<8x64xf32>
    %29 = vector.extract_strided_slice %28 {offsets = [0, 0], sizes = [2, 64], strides = [1, 1]} : vector<8x64xf32> to vector<2x64xf32>
    %cst_10 = arith.constant dense<0xFF800000> : vector<64xf32>
    %30 = vector.multi_reduction <maximumf>, %29, %cst_10 [0] : vector<2x64xf32> to vector<64xf32>
    %31 = vector.shape_cast %30 : vector<64xf32> to vector<1x64xf32>
    %32 = vector.extract_strided_slice %28 {offsets = [1, 0], sizes = [3, 64], strides = [1, 1]} : vector<8x64xf32> to vector<3x64xf32>
    %cst_11 = arith.constant dense<0xFF800000> : vector<64xf32>
    %33 = vector.multi_reduction <maximumf>, %32, %cst_11 [0] : vector<3x64xf32> to vector<64xf32>
    %34 = vector.shape_cast %33 : vector<64xf32> to vector<1x64xf32>
    %35 = vector.extract_strided_slice %28 {offsets = [3, 0], sizes = [3, 64], strides = [1, 1]} : vector<8x64xf32> to vector<3x64xf32>
    %cst_12 = arith.constant dense<0xFF800000> : vector<64xf32>
    %36 = vector.multi_reduction <maximumf>, %35, %cst_12 [0] : vector<3x64xf32> to vector<64xf32>
    %37 = vector.shape_cast %36 : vector<64xf32> to vector<1x64xf32>
    %38 = vector.extract_strided_slice %28 {offsets = [5, 0], sizes = [3, 64], strides = [1, 1]} : vector<8x64xf32> to vector<3x64xf32>
    %cst_13 = arith.constant dense<0xFF800000> : vector<64xf32>
    %39 = vector.multi_reduction <maximumf>, %38, %cst_13 [0] : vector<3x64xf32> to vector<64xf32>
    %40 = vector.shape_cast %39 : vector<64xf32> to vector<1x64xf32>
    %41 = tpu.concatenate %31, %34, %37, %40 in 0 : vector<1x64xf32>, vector<1x64xf32>, vector<1x64xf32>, vector<1x64xf32> -> vector<4x64xf32>
    %42 = vector.extract_strided_slice %7 {offsets = [24, 0], sizes = [8, 64], strides = [1, 1]} : vector<64x64xf32> to vector<8x64xf32>
    %43 = vector.extract_strided_slice %7 {offsets = [32, 0], sizes = [8, 64], strides = [1, 1]} : vector<64x64xf32> to vector<8x64xf32>
    %44 = arith.maximumf %42, %43 : vector<8x64xf32>
    %45 = vector.extract_strided_slice %7 {offsets = [40, 0], sizes = [8, 64], strides = [1, 1]} : vector<64x64xf32> to vector<8x64xf32>
    %46 = arith.maximumf %44, %45 : vector<8x64xf32>
    %47 = vector.extract_strided_slice %46 {offsets = [0, 0], sizes = [2, 64], strides = [1, 1]} : vector<8x64xf32> to vector<2x64xf32>
    %cst_14 = arith.constant dense<0xFF800000> : vector<64xf32>
    %48 = vector.multi_reduction <maximumf>, %47, %cst_14 [0] : vector<2x64xf32> to vector<64xf32>
    %49 = vector.shape_cast %48 : vector<64xf32> to vector<1x64xf32>
    %50 = vector.extract_strided_slice %46 {offsets = [1, 0], sizes = [3, 64], strides = [1, 1]} : vector<8x64xf32> to vector<3x64xf32>
    %cst_15 = arith.constant dense<0xFF800000> : vector<64xf32>
    %51 = vector.multi_reduction <maximumf>, %50, %cst_15 [0] : vector<3x64xf32> to vector<64xf32>
    %52 = vector.shape_cast %51 : vector<64xf32> to vector<1x64xf32>
    %53 = vector.extract_strided_slice %46 {offsets = [3, 0], sizes = [3, 64], strides = [1, 1]} : vector<8x64xf32> to vector<3x64xf32>
    %cst_16 = arith.constant dense<0xFF800000> : vector<64xf32>
    %54 = vector.multi_reduction <maximumf>, %53, %cst_16 [0] : vector<3x64xf32> to vector<64xf32>
    %55 = vector.shape_cast %54 : vector<64xf32> to vector<1x64xf32>
    %56 = vector.extract_strided_slice %46 {offsets = [5, 0], sizes = [3, 64], strides = [1, 1]} : vector<8x64xf32> to vector<3x64xf32>
    %cst_17 = arith.constant dense<0xFF800000> : vector<64xf32>
    %57 = vector.multi_reduction <maximumf>, %56, %cst_17 [0] : vector<3x64xf32> to vector<64xf32>
    %58 = vector.shape_cast %57 : vector<64xf32> to vector<1x64xf32>
    %59 = tpu.concatenate %49, %52, %55, %58 in 0 : vector<1x64xf32>, vector<1x64xf32>, vector<1x64xf32>, vector<1x64xf32> -> vector<4x64xf32>
    %60 = vector.extract_strided_slice %7 {offsets = [40, 0], sizes = [8, 64], strides = [1, 1]} : vector<64x64xf32> to vector<8x64xf32>
    %61 = vector.extract_strided_slice %7 {offsets = [48, 0], sizes = [8, 64], strides = [1, 1]} : vector<64x64xf32> to vector<8x64xf32>
    %62 = arith.maximumf %60, %61 : vector<8x64xf32>
    %63 = vector.extract_strided_slice %7 {offsets = [56, 0], sizes = [8, 64], strides = [1, 1]} : vector<64x64xf32> to vector<8x64xf32>
    %64 = arith.maximumf %62, %63 : vector<8x64xf32>
    %65 = vector.extract_strided_slice %64 {offsets = [0, 0], sizes = [2, 64], strides = [1, 1]} : vector<8x64xf32> to vector<2x64xf32>
    %cst_18 = arith.constant dense<0xFF800000> : vector<64xf32>
    %66 = vector.multi_reduction <maximumf>, %65, %cst_18 [0] : vector<2x64xf32> to vector<64xf32>
    %67 = vector.shape_cast %66 : vector<64xf32> to vector<1x64xf32>
    %68 = vector.extract_strided_slice %64 {offsets = [1, 0], sizes = [3, 64], strides = [1, 1]} : vector<8x64xf32> to vector<3x64xf32>
    %cst_19 = arith.constant dense<0xFF800000> : vector<64xf32>
    %69 = vector.multi_reduction <maximumf>, %68, %cst_19 [0] : vector<3x64xf32> to vector<64xf32>
    %70 = vector.shape_cast %69 : vector<64xf32> to vector<1x64xf32>
    %71 = vector.extract_strided_slice %64 {offsets = [3, 0], sizes = [3, 64], strides = [1, 1]} : vector<8x64xf32> to vector<3x64xf32>
    %cst_20 = arith.constant dense<0xFF800000> : vector<64xf32>
    %72 = vector.multi_reduction <maximumf>, %71, %cst_20 [0] : vector<3x64xf32> to vector<64xf32>
    %73 = vector.shape_cast %72 : vector<64xf32> to vector<1x64xf32>
    %74 = vector.extract_strided_slice %64 {offsets = [5, 0], sizes = [3, 64], strides = [1, 1]} : vector<8x64xf32> to vector<3x64xf32>
    %cst_21 = arith.constant dense<0xFF800000> : vector<64xf32>
    %75 = vector.multi_reduction <maximumf>, %74, %cst_21 [0] : vector<3x64xf32> to vector<64xf32>
    %76 = vector.shape_cast %75 : vector<64xf32> to vector<1x64xf32>
    %77 = tpu.concatenate %67, %70, %73, %76 in 0 : vector<1x64xf32>, vector<1x64xf32>, vector<1x64xf32>, vector<1x64xf32> -> vector<4x64xf32>
    %78 = tpu.concatenate %23, %41, %59, %77 in 0 : vector<4x64xf32>, vector<4x64xf32>, vector<4x64xf32>, vector<4x64xf32> -> vector<16x64xf32>
    %79 = arith.truncf %78 : vector<16x64xf32> to vector<16x64xbf16>
    %c0_22 = arith.constant 0 : index
    %c0_23 = arith.constant 0 : index
    %80 = vector.load %arg3[%c0_22, %c0_23] : memref<64x64xbf16, #tpu.memory_space<vmem>>, vector<64x64xbf16>
    %cst_24 = arith.constant dense<0.000000e+00> : vector<16x64xf32>
    %81 = tpu.matmul %79, %80, %cst_24 {dimension_numbers = #tpu.dot_dimension_numbers<[1], [0], [0], [1], [0, 0, 1, 1], [], []>} : vector<16x64xbf16>, vector<64x64xbf16>, vector<16x64xf32> -> vector<16x64xf32>
    %c1 = arith.constant 1 : index
    %c0_25 = arith.constant 0 : index
    %82 = vector.load %arg4[%c1, %c0_25] : memref<2x64xf32, #tpu.memory_space<vmem>>, vector<1x64xf32>
    %83 = vector.broadcast %82 : vector<1x64xf32> to vector<16x64xf32>
    %84 = arith.addf %81, %83 : vector<16x64xf32>
    %cst_26 = arith.constant 0.000000e+00 : f32
    %85 = vector.broadcast %cst_26 : f32 to vector<16x64xf32>
    %86 = arith.maximumf %84, %85 : vector<16x64xf32>
    %87 = arith.truncf %86 : vector<16x64xf32> to vector<16x64xbf16>
    %88 = tpu.concatenate %79, %87 in 1 : vector<16x64xbf16>, vector<16x64xbf16> -> vector<16x128xbf16>
    %c0_27 = arith.constant 0 : index
    %c0_28 = arith.constant 0 : index
    %89 = vector.load %arg5[%c0_27, %c0_28] : memref<16x128xbf16, #tpu.memory_space<vmem>>, vector<16x128xbf16>
    tpu.vector_store %arg5[%c0_27, %c0_28], %88 {strides = array<i32>} : memref<16x128xbf16, #tpu.memory_space<vmem>>, vector<16x128xbf16>,
    return
  }
  func.func @transform_0(%arg0: i32) -> (i32, i32) {
    %c0_i32 = arith.constant 0 : i32
    %c0_i32_0 = arith.constant 0 : i32
    return %arg0, %c0_i32 : i32, i32
  }
  func.func @transform_1(%arg0: i32) -> (i32, i32) {
    %c0_i32 = arith.constant 0 : i32
    %c0_i32_0 = arith.constant 0 : i32
    %c0_i32_1 = arith.constant 0 : i32
    return %c0_i32, %c0_i32_0 : i32, i32
  }
  func.func @transform_2(%arg0: i32) -> (i32, i32) {
    %c0_i32 = arith.constant 0 : i32
    %c0_i32_0 = arith.constant 0 : i32
    %c0_i32_1 = arith.constant 0 : i32
    return %c0_i32, %c0_i32_0 : i32, i32
  }
  func.func @transform_3(%arg0: i32) -> (i32, i32) {
    %c0_i32 = arith.constant 0 : i32
    %c0_i32_0 = arith.constant 0 : i32
    %c0_i32_1 = arith.constant 0 : i32
    return %c0_i32, %c0_i32_0 : i32, i32
  }
  func.func @transform_4(%arg0: i32) -> (i32, i32) {
    %c0_i32 = arith.constant 0 : i32
    %c0_i32_0 = arith.constant 0 : i32
    return %arg0, %c0_i32 : i32, i32
  }
}

module attributes {stable_mosaic.version = 11 : i64} {
  func.func @_block_tail_kernel(%arg0: i32, %arg1: memref<16x128xbf16, #tpu.memory_space<vmem>>, %arg2: memref<576x64xbf16, #tpu.memory_space<vmem>>, %arg3: memref<128x256xbf16, #tpu.memory_space<vmem>>, %arg4: memref<2x256xf32, #tpu.memory_space<vmem>>, %arg5: memref<1x1x256xbf16, #tpu.memory_space<vmem>>) attributes {dimension_semantics = [#tpu.dimension_semantics<parallel>], iteration_bounds = array<i64: 2>, scalar_prefetch = 0 : i64, scratch_operands = 0 : i64, tpu.core_type = #tpu.core_type<tc>, window_params = [{transform_indices = @transform_0, window_bounds = array<i64: 16, 128>}, {pipeline_mode = #tpu.pipeline_mode<synchronous>, transform_indices = @transform_1, window_bounds = array<i64: 576, 64>}, {pipeline_mode = #tpu.pipeline_mode<synchronous>, transform_indices = @transform_2, window_bounds = array<i64: 128, 256>}, {pipeline_mode = #tpu.pipeline_mode<synchronous>, transform_indices = @transform_3, window_bounds = array<i64: 2, 256>}, {transform_indices = @transform_4, window_bounds = array<i64: 1, 1, 256>}]} {
    %c0 = arith.constant 0 : index
    %c0_0 = arith.constant 0 : index
    %0 = vector.load %arg1[%c0, %c0_0] : memref<16x128xbf16, #tpu.memory_space<vmem>>, vector<16x64xbf16>
    %c0_1 = arith.constant 0 : index
    %c64 = arith.constant 64 : index
    %1 = vector.load %arg1[%c0_1, %c64] : memref<16x128xbf16, #tpu.memory_space<vmem>>, vector<16x64xbf16>
    %cst = arith.constant 0.000000e+00 : bf16
    %2 = vector.broadcast %cst : bf16 to vector<13x64xbf16>
    %cst_2 = arith.constant 0.000000e+00 : bf16
    %3 = vector.broadcast %cst_2 : bf16 to vector<1x64xbf16>
    %4 = vector.extract_strided_slice %1 {offsets = [0, 0], sizes = [4, 64], strides = [1, 1]} : vector<16x64xbf16> to vector<4x64xbf16>
    %5 = tpu.concatenate %3, %4, %3 in 0 : vector<1x64xbf16>, vector<4x64xbf16>, vector<1x64xbf16> -> vector<6x64xbf16>
    %6 = vector.extract_strided_slice %1 {offsets = [4, 0], sizes = [4, 64], strides = [1, 1]} : vector<16x64xbf16> to vector<4x64xbf16>
    %7 = tpu.concatenate %3, %6, %3 in 0 : vector<1x64xbf16>, vector<4x64xbf16>, vector<1x64xbf16> -> vector<6x64xbf16>
    %8 = vector.extract_strided_slice %1 {offsets = [8, 0], sizes = [4, 64], strides = [1, 1]} : vector<16x64xbf16> to vector<4x64xbf16>
    %9 = tpu.concatenate %3, %8, %3 in 0 : vector<1x64xbf16>, vector<4x64xbf16>, vector<1x64xbf16> -> vector<6x64xbf16>
    %10 = vector.extract_strided_slice %1 {offsets = [12, 0], sizes = [4, 64], strides = [1, 1]} : vector<16x64xbf16> to vector<4x64xbf16>
    %11 = tpu.concatenate %3, %10, %3 in 0 : vector<1x64xbf16>, vector<4x64xbf16>, vector<1x64xbf16> -> vector<6x64xbf16>
    %12 = tpu.concatenate %2, %5, %7, %9, %11, %2 in 0 : vector<13x64xbf16>, vector<6x64xbf16>, vector<6x64xbf16>, vector<6x64xbf16>, vector<6x64xbf16>, vector<13x64xbf16> -> vector<50x64xbf16>
    %cst_3 = arith.constant 0.000000e+00 : f32
    %13 = vector.broadcast %cst_3 : f32 to vector<36x64xf32>
    %14 = vector.extract_strided_slice %12 {offsets = [0, 0], sizes = [36, 64], strides = [1, 1]} : vector<50x64xbf16> to vector<36x64xbf16>
    %c0_4 = arith.constant 0 : index
    %c0_5 = arith.constant 0 : index
    %15 = vector.load %arg2[%c0_4, %c0_5] : memref<576x64xbf16, #tpu.memory_space<vmem>>, vector<64x64xbf16>
    %cst_6 = arith.constant dense<0.000000e+00> : vector<36x64xf32>
    %16 = tpu.matmul %14, %15, %cst_6 {dimension_numbers = #tpu.dot_dimension_numbers<[1], [0], [0], [1], [0, 0, 1, 1], [], []>} : vector<36x64xbf16>, vector<64x64xbf16>, vector<36x64xf32> -> vector<36x64xf32>
    %17 = arith.addf %13, %16 : vector<36x64xf32>
    %18 = vector.extract_strided_slice %12 {offsets = [1, 0], sizes = [36, 64], strides = [1, 1]} : vector<50x64xbf16> to vector<36x64xbf16>
    %c64_7 = arith.constant 64 : index
    %c0_8 = arith.constant 0 : index
    %19 = vector.load %arg2[%c64_7, %c0_8] : memref<576x64xbf16, #tpu.memory_space<vmem>>, vector<64x64xbf16>
    %cst_9 = arith.constant dense<0.000000e+00> : vector<36x64xf32>
    %20 = tpu.matmul %18, %19, %cst_9 {dimension_numbers = #tpu.dot_dimension_numbers<[1], [0], [0], [1], [0, 0, 1, 1], [], []>} : vector<36x64xbf16>, vector<64x64xbf16>, vector<36x64xf32> -> vector<36x64xf32>
    %21 = arith.addf %17, %20 : vector<36x64xf32>
    %22 = vector.extract_strided_slice %12 {offsets = [2, 0], sizes = [36, 64], strides = [1, 1]} : vector<50x64xbf16> to vector<36x64xbf16>
    %c128 = arith.constant 128 : index
    %c0_10 = arith.constant 0 : index
    %23 = vector.load %arg2[%c128, %c0_10] : memref<576x64xbf16, #tpu.memory_space<vmem>>, vector<64x64xbf16>
    %cst_11 = arith.constant dense<0.000000e+00> : vector<36x64xf32>
    %24 = tpu.matmul %22, %23, %cst_11 {dimension_numbers = #tpu.dot_dimension_numbers<[1], [0], [0], [1], [0, 0, 1, 1], [], []>} : vector<36x64xbf16>, vector<64x64xbf16>, vector<36x64xf32> -> vector<36x64xf32>
    %25 = arith.addf %21, %24 : vector<36x64xf32>
    %26 = vector.extract_strided_slice %12 {offsets = [6, 0], sizes = [36, 64], strides = [1, 1]} : vector<50x64xbf16> to vector<36x64xbf16>
    %c192 = arith.constant 192 : index
    %c0_12 = arith.constant 0 : index
    %27 = vector.load %arg2[%c192, %c0_12] : memref<576x64xbf16, #tpu.memory_space<vmem>>, vector<64x64xbf16>
    %cst_13 = arith.constant dense<0.000000e+00> : vector<36x64xf32>
    %28 = tpu.matmul %26, %27, %cst_13 {dimension_numbers = #tpu.dot_dimension_numbers<[1], [0], [0], [1], [0, 0, 1, 1], [], []>} : vector<36x64xbf16>, vector<64x64xbf16>, vector<36x64xf32> -> vector<36x64xf32>
    %29 = arith.addf %25, %28 : vector<36x64xf32>
    %30 = vector.extract_strided_slice %12 {offsets = [7, 0], sizes = [36, 64], strides = [1, 1]} : vector<50x64xbf16> to vector<36x64xbf16>
    %c256 = arith.constant 256 : index
    %c0_14 = arith.constant 0 : index
    %31 = vector.load %arg2[%c256, %c0_14] : memref<576x64xbf16, #tpu.memory_space<vmem>>, vector<64x64xbf16>
    %cst_15 = arith.constant dense<0.000000e+00> : vector<36x64xf32>
    %32 = tpu.matmul %30, %31, %cst_15 {dimension_numbers = #tpu.dot_dimension_numbers<[1], [0], [0], [1], [0, 0, 1, 1], [], []>} : vector<36x64xbf16>, vector<64x64xbf16>, vector<36x64xf32> -> vector<36x64xf32>
    %33 = arith.addf %29, %32 : vector<36x64xf32>
    %34 = vector.extract_strided_slice %12 {offsets = [8, 0], sizes = [36, 64], strides = [1, 1]} : vector<50x64xbf16> to vector<36x64xbf16>
    %c320 = arith.constant 320 : index
    %c0_16 = arith.constant 0 : index
    %35 = vector.load %arg2[%c320, %c0_16] : memref<576x64xbf16, #tpu.memory_space<vmem>>, vector<64x64xbf16>
    %cst_17 = arith.constant dense<0.000000e+00> : vector<36x64xf32>
    %36 = tpu.matmul %34, %35, %cst_17 {dimension_numbers = #tpu.dot_dimension_numbers<[1], [0], [0], [1], [0, 0, 1, 1], [], []>} : vector<36x64xbf16>, vector<64x64xbf16>, vector<36x64xf32> -> vector<36x64xf32>
    %37 = arith.addf %33, %36 : vector<36x64xf32>
    %38 = vector.extract_strided_slice %12 {offsets = [12, 0], sizes = [36, 64], strides = [1, 1]} : vector<50x64xbf16> to vector<36x64xbf16>
    %c384 = arith.constant 384 : index
    %c0_18 = arith.constant 0 : index
    %39 = vector.load %arg2[%c384, %c0_18] : memref<576x64xbf16, #tpu.memory_space<vmem>>, vector<64x64xbf16>
    %cst_19 = arith.constant dense<0.000000e+00> : vector<36x64xf32>
    %40 = tpu.matmul %38, %39, %cst_19 {dimension_numbers = #tpu.dot_dimension_numbers<[1], [0], [0], [1], [0, 0, 1, 1], [], []>} : vector<36x64xbf16>, vector<64x64xbf16>, vector<36x64xf32> -> vector<36x64xf32>
    %41 = arith.addf %37, %40 : vector<36x64xf32>
    %42 = vector.extract_strided_slice %12 {offsets = [13, 0], sizes = [36, 64], strides = [1, 1]} : vector<50x64xbf16> to vector<36x64xbf16>
    %c448 = arith.constant 448 : index
    %c0_20 = arith.constant 0 : index
    %43 = vector.load %arg2[%c448, %c0_20] : memref<576x64xbf16, #tpu.memory_space<vmem>>, vector<64x64xbf16>
    %cst_21 = arith.constant dense<0.000000e+00> : vector<36x64xf32>
    %44 = tpu.matmul %42, %43, %cst_21 {dimension_numbers = #tpu.dot_dimension_numbers<[1], [0], [0], [1], [0, 0, 1, 1], [], []>} : vector<36x64xbf16>, vector<64x64xbf16>, vector<36x64xf32> -> vector<36x64xf32>
    %45 = arith.addf %41, %44 : vector<36x64xf32>
    %46 = vector.extract_strided_slice %12 {offsets = [14, 0], sizes = [36, 64], strides = [1, 1]} : vector<50x64xbf16> to vector<36x64xbf16>
    %c512 = arith.constant 512 : index
    %c0_22 = arith.constant 0 : index
    %47 = vector.load %arg2[%c512, %c0_22] : memref<576x64xbf16, #tpu.memory_space<vmem>>, vector<64x64xbf16>
    %cst_23 = arith.constant dense<0.000000e+00> : vector<36x64xf32>
    %48 = tpu.matmul %46, %47, %cst_23 {dimension_numbers = #tpu.dot_dimension_numbers<[1], [0], [0], [1], [0, 0, 1, 1], [], []>} : vector<36x64xbf16>, vector<64x64xbf16>, vector<36x64xf32> -> vector<36x64xf32>
    %49 = arith.addf %45, %48 : vector<36x64xf32>
    %c0_24 = arith.constant 0 : index
    %c0_25 = arith.constant 0 : index
    %50 = vector.load %arg4[%c0_24, %c0_25] : memref<2x256xf32, #tpu.memory_space<vmem>>, vector<1x64xf32>
    %51 = vector.broadcast %50 : vector<1x64xf32> to vector<36x64xf32>
    %52 = arith.addf %49, %51 : vector<36x64xf32>
    %cst_26 = arith.constant 0.000000e+00 : f32
    %53 = vector.broadcast %cst_26 : f32 to vector<36x64xf32>
    %54 = arith.maximumf %52, %53 : vector<36x64xf32>
    %55 = vector.extract_strided_slice %54 {offsets = [7, 0], sizes = [4, 64], strides = [1, 1]} : vector<36x64xf32> to vector<4x64xf32>
    %56 = vector.extract_strided_slice %54 {offsets = [13, 0], sizes = [4, 64], strides = [1, 1]} : vector<36x64xf32> to vector<4x64xf32>
    %57 = vector.extract_strided_slice %54 {offsets = [19, 0], sizes = [4, 64], strides = [1, 1]} : vector<36x64xf32> to vector<4x64xf32>
    %58 = vector.extract_strided_slice %54 {offsets = [25, 0], sizes = [4, 64], strides = [1, 1]} : vector<36x64xf32> to vector<4x64xf32>
    %59 = tpu.concatenate %55, %56, %57, %58 in 0 : vector<4x64xf32>, vector<4x64xf32>, vector<4x64xf32>, vector<4x64xf32> -> vector<16x64xf32>
    %60 = arith.truncf %59 : vector<16x64xf32> to vector<16x64xbf16>
    %61 = tpu.concatenate %60, %0 in 1 : vector<16x64xbf16>, vector<16x64xbf16> -> vector<16x128xbf16>
    %c0_27 = arith.constant 0 : index
    %c0_28 = arith.constant 0 : index
    %62 = vector.load %arg3[%c0_27, %c0_28] : memref<128x256xbf16, #tpu.memory_space<vmem>>, vector<128x256xbf16>
    %cst_29 = arith.constant dense<0.000000e+00> : vector<16x256xf32>
    %63 = tpu.matmul %61, %62, %cst_29 {dimension_numbers = #tpu.dot_dimension_numbers<[1], [0], [0], [1], [0, 0, 1, 1], [], []>} : vector<16x128xbf16>, vector<128x256xbf16>, vector<16x256xf32> -> vector<16x256xf32>
    %c1 = arith.constant 1 : index
    %c0_30 = arith.constant 0 : index
    %64 = vector.load %arg4[%c1, %c0_30] : memref<2x256xf32, #tpu.memory_space<vmem>>, vector<1x256xf32>
    %65 = vector.broadcast %64 : vector<1x256xf32> to vector<16x256xf32>
    %66 = arith.addf %63, %65 : vector<16x256xf32>
    %cst_31 = arith.constant 0.000000e+00 : f32
    %67 = vector.broadcast %cst_31 : f32 to vector<16x256xf32>
    %68 = arith.maximumf %66, %67 : vector<16x256xf32>
    %cst_32 = arith.constant dense<0.000000e+00> : vector<256xf32>
    %69 = vector.multi_reduction <add>, %68, %cst_32 [0] : vector<16x256xf32> to vector<256xf32>
    %70 = vector.shape_cast %69 : vector<256xf32> to vector<1x256xf32>
    %cst_33 = arith.constant 1.600000e+01 : f32
    %71 = vector.broadcast %cst_33 : f32 to vector<1x256xf32>
    %72 = arith.divf %70, %71 : vector<1x256xf32>
    %73 = vector.shape_cast %72 : vector<1x256xf32> to vector<1x1x256xf32>
    %74 = arith.truncf %73 : vector<1x1x256xf32> to vector<1x1x256xbf16>
    %c0_34 = arith.constant 0 : index
    %c0_35 = arith.constant 0 : index
    %c0_36 = arith.constant 0 : index
    %75 = vector.load %arg5[%c0_34, %c0_35, %c0_36] : memref<1x1x256xbf16, #tpu.memory_space<vmem>>, vector<1x1x256xbf16>
    tpu.vector_store %arg5[%c0_34, %c0_35, %c0_36], %74 {strides = array<i32>} : memref<1x1x256xbf16, #tpu.memory_space<vmem>>, vector<1x1x256xbf16>,
    return
  }
  func.func @transform_0(%arg0: i32) -> (i32, i32) {
    %c0_i32 = arith.constant 0 : i32
    %c0_i32_0 = arith.constant 0 : i32
    return %arg0, %c0_i32 : i32, i32
  }
  func.func @transform_1(%arg0: i32) -> (i32, i32) {
    %c0_i32 = arith.constant 0 : i32
    %c0_i32_0 = arith.constant 0 : i32
    %c0_i32_1 = arith.constant 0 : i32
    return %c0_i32, %c0_i32_0 : i32, i32
  }
  func.func @transform_2(%arg0: i32) -> (i32, i32) {
    %c0_i32 = arith.constant 0 : i32
    %c0_i32_0 = arith.constant 0 : i32
    %c0_i32_1 = arith.constant 0 : i32
    return %c0_i32, %c0_i32_0 : i32, i32
  }
  func.func @transform_3(%arg0: i32) -> (i32, i32) {
    %c0_i32 = arith.constant 0 : i32
    %c0_i32_0 = arith.constant 0 : i32
    %c0_i32_1 = arith.constant 0 : i32
    return %c0_i32, %c0_i32_0 : i32, i32
  }
  func.func @transform_4(%arg0: i32) -> (i32, i32, i32) {
    %c0_i32 = arith.constant 0 : i32
    %c0_i32_0 = arith.constant 0 : i32
    %c0_i32_1 = arith.constant 0 : i32
    return %arg0, %c0_i32, %c0_i32_0 : i32, i32, i32
  }
}

module attributes {stable_mosaic.version = 11 : i64} {
  func.func @_head_kernel(%arg0: memref<2x256xbf16, #tpu.memory_space<vmem>>, %arg1: memref<2x5xbf16, #tpu.memory_space<vmem>>, %arg2: memref<256x512xbf16, #tpu.memory_space<vmem>>, %arg3: memref<512x512xbf16, #tpu.memory_space<vmem>>, %arg4: memref<5x512xbf16, #tpu.memory_space<vmem>>, %arg5: memref<512x2xbf16, #tpu.memory_space<vmem>>, %arg6: memref<3x512xf32, #tpu.memory_space<vmem>>, %arg7: memref<2x2xf32, #tpu.memory_space<vmem>>) attributes {dimension_semantics = [], scalar_prefetch = 0 : i64, scratch_operands = 0 : i64, tpu.core_type = #tpu.core_type<tc>} {
    %c0 = arith.constant 0 : index
    %c0_0 = arith.constant 0 : index
    %0 = vector.load %arg0[%c0, %c0_0] : memref<2x256xbf16, #tpu.memory_space<vmem>>, vector<2x256xbf16>
    %c0_1 = arith.constant 0 : index
    %c0_2 = arith.constant 0 : index
    %1 = vector.load %arg2[%c0_1, %c0_2] : memref<256x512xbf16, #tpu.memory_space<vmem>>, vector<256x512xbf16>
    %cst = arith.constant dense<0.000000e+00> : vector<2x512xf32>
    %2 = tpu.matmul %0, %1, %cst {dimension_numbers = #tpu.dot_dimension_numbers<[1], [0], [0], [1], [0, 0, 1, 1], [], []>} : vector<2x256xbf16>, vector<256x512xbf16>, vector<2x512xf32> -> vector<2x512xf32>
    %c0_3 = arith.constant 0 : index
    %c0_4 = arith.constant 0 : index
    %3 = vector.load %arg6[%c0_3, %c0_4] : memref<3x512xf32, #tpu.memory_space<vmem>>, vector<1x512xf32>
    %4 = vector.broadcast %3 : vector<1x512xf32> to vector<2x512xf32>
    %5 = arith.addf %2, %4 : vector<2x512xf32>
    %6 = arith.truncf %5 : vector<2x512xf32> to vector<2x512xbf16>
    %c0_5 = arith.constant 0 : index
    %c0_6 = arith.constant 0 : index
    %7 = vector.load %arg3[%c0_5, %c0_6] : memref<512x512xbf16, #tpu.memory_space<vmem>>, vector<512x512xbf16>
    %cst_7 = arith.constant dense<0.000000e+00> : vector<2x512xf32>
    %8 = tpu.matmul %6, %7, %cst_7 {dimension_numbers = #tpu.dot_dimension_numbers<[1], [0], [0], [1], [0, 0, 1, 1], [], []>} : vector<2x512xbf16>, vector<512x512xbf16>, vector<2x512xf32> -> vector<2x512xf32>
    %c0_8 = arith.constant 0 : index
    %c0_9 = arith.constant 0 : index
    %9 = vector.load %arg1[%c0_8, %c0_9] : memref<2x5xbf16, #tpu.memory_space<vmem>>, vector<2x5xbf16>
    %c0_10 = arith.constant 0 : index
    %c0_11 = arith.constant 0 : index
    %10 = vector.load %arg4[%c0_10, %c0_11] : memref<5x512xbf16, #tpu.memory_space<vmem>>, vector<5x512xbf16>
    %cst_12 = arith.constant dense<0.000000e+00> : vector<2x512xf32>
    %11 = tpu.matmul %9, %10, %cst_12 {dimension_numbers = #tpu.dot_dimension_numbers<[1], [0], [0], [1], [0, 0, 1, 1], [], []>} : vector<2x5xbf16>, vector<5x512xbf16>, vector<2x512xf32> -> vector<2x512xf32>
    %12 = arith.addf %8, %11 : vector<2x512xf32>
    %c1 = arith.constant 1 : index
    %c0_13 = arith.constant 0 : index
    %13 = vector.load %arg6[%c1, %c0_13] : memref<3x512xf32, #tpu.memory_space<vmem>>, vector<1x512xf32>
    %14 = vector.broadcast %13 : vector<1x512xf32> to vector<2x512xf32>
    %15 = arith.addf %12, %14 : vector<2x512xf32>
    %cst_14 = arith.constant 0.000000e+00 : f32
    %16 = vector.broadcast %cst_14 : f32 to vector<2x512xf32>
    %17 = arith.maximumf %15, %16 : vector<2x512xf32>
    %18 = arith.truncf %17 : vector<2x512xf32> to vector<2x512xbf16>
    %c0_15 = arith.constant 0 : index
    %c0_16 = arith.constant 0 : index
    %19 = vector.load %arg5[%c0_15, %c0_16] : memref<512x2xbf16, #tpu.memory_space<vmem>>, vector<512x2xbf16>
    %cst_17 = arith.constant dense<0.000000e+00> : vector<2x2xf32>
    %20 = tpu.matmul %18, %19, %cst_17 {dimension_numbers = #tpu.dot_dimension_numbers<[1], [0], [0], [1], [0, 0, 1, 1], [], []>} : vector<2x512xbf16>, vector<512x2xbf16>, vector<2x2xf32> -> vector<2x2xf32>
    %c2 = arith.constant 2 : index
    %c0_18 = arith.constant 0 : index
    %21 = vector.load %arg6[%c2, %c0_18] : memref<3x512xf32, #tpu.memory_space<vmem>>, vector<1x2xf32>
    %22 = vector.broadcast %21 : vector<1x2xf32> to vector<2x2xf32>
    %23 = arith.addf %20, %22 : vector<2x2xf32>
    %cst_19 = arith.constant 0.000000e+00 : f32
    %24 = vector.broadcast %cst_19 : f32 to vector<2x2xf32>
    %25 = arith.maximumf %23, %24 : vector<2x2xf32>
    %cst_20 = arith.constant dense<0xFF800000> : vector<2xf32>
    %26 = vector.multi_reduction <maximumf>, %25, %cst_20 [1] : vector<2x2xf32> to vector<2xf32>
    %27 = vector.shape_cast %26 : vector<2xf32> to vector<2x1xf32>
    %28 = vector.broadcast %27 : vector<2x1xf32> to vector<2x2xf32>
    %29 = arith.subf %25, %28 : vector<2x2xf32>
    %30 = math.exp %29 : vector<2x2xf32>
    %cst_21 = arith.constant dense<0.000000e+00> : vector<2xf32>
    %31 = vector.multi_reduction <add>, %30, %cst_21 [1] : vector<2x2xf32> to vector<2xf32>
    %32 = vector.shape_cast %31 : vector<2xf32> to vector<2x1xf32>
    %33 = vector.broadcast %32 : vector<2x1xf32> to vector<2x2xf32>
    %34 = arith.divf %30, %33 : vector<2x2xf32>
    %c0_22 = arith.constant 0 : index
    %c0_23 = arith.constant 0 : index
    %35 = vector.load %arg7[%c0_22, %c0_23] : memref<2x2xf32, #tpu.memory_space<vmem>>, vector<2x2xf32>
    tpu.vector_store %arg7[%c0_22, %c0_23], %34 {strides = array<i32>} : memref<2x2xf32, #tpu.memory_space<vmem>>, vector<2x2xf32>,
    return
  }
}

</mosaic_0001>

<bundles_post_ra>
// kernel: resnet_grasp_forward.3
= control target key start
LH: loop header
LB: loop body
LE: loop exit
PB: predicated region body
PF: predicated region fallthrough
CT: control target
= control target key end

     0   :  { %9 = vsyncpa [#allocation3], 0  ;;  %s1657_s0 = inlined_call_operand.hbm [shape: bf16[128,256], index: 0, kind: input, shape index: {}]   ;;  %s1658_s1 = inlined_call_operand.hbm [shape: bf16[256,64], index: 1, kind: input, shape index: {}]   ;;  %s1659_s2 = inlined_call_operand.hbm [shape: bf16[64,64], index: 2, kind: input, shape index: {}]   ;;  %s1660_s3 = inlined_call_operand.hbm [shape: f32[2,64], index: 3, kind: input, shape index: {}]   ;;  %s1661_s4 = inlined_call_operand.hbm [shape: bf16[32,128], index: 4, kind: output, shape index: {}]  }
   0x1   :  { %11 = vsyncpa [#allocation3 + $0x1], 0 }
   0x2   :  { %12 = vsyncpa [#allocation6], 0 }
   0x3   :  { %13 = vsyncpa [#allocation9], 0 }
   0x4   :  { %14 = vsyncpa [#allocation4], 0 }
   0x5   :  { %16 = vsyncpa [#allocation4 + $0x1], 0  ;;  %s1338_s15 = smov 0   ;;  %s1340_s16 = smov 0  }
   0x6   :  { %s1342_s17 = smov 0   ;;  %s1344_s18 = smov 0  }
   0x7 LB: > { %s1359_s19 = sadd.s32 4294967295, %s1298_s18   ;;  %s879_s20 = sadd.s32 4294967294, %s1298_s18   ;;  %s1298_s18 = sphi %s1344_s18, %s1684_s18   ;;  %s1294_s17 = sphi %s1342_s17, %s1683_s17   ;;  %s1290_s16 = sphi %s1340_s16, %s1682_s16   ;;  %s1286_s15 = sphi %s1338_s15, %s1681_s15  }
   0x8   : > { %p42_p0 = scmp.ne.s32.totalorder %s1290_s16, %s1286_s15  ;;  %p1662_p1 = scmp.eq.s32.totalorder %s1359_s19, 0 }
   0x9   : > { %p135_p3 = scmp.eq.s32.totalorder %s879_s20, 1  ;;  %p880_p5 = scmp.ge.s32.totalorder %s1298_s18, 1 }
   0xa   : > { %p1368_p4 = por %p1662_p1, %p42_p0  ;;  %p142_p7 = scmp.lt.s32.totalorder %s1298_s18, 3 }
   0xb   : > { %p1373_p6 = por %p135_p3, %p42_p0  ;;  %s1300_s24 = smov [#allocation5]  }
   0xc   : > { %s1665_s21 = scalar_select %p1368_p4, 1, 0 }
   0xd   : > { %s1666_s22 = scalar_select %p1373_p6, 1, 0 }
   0xe   : > { %p1378_p8 = pnand %p880_p5, %p142_p7  ;;  %s154_s25 = sshll.u32 %s1300_s24, 4  ;;  %s1382_s25 = int_to_ptr.vmem [resolvable:$true] %s154_s25 }
   0xf   : > { %s1301_s27 = smov [#allocation7]   ;;  %s1302_s29 = smov [#allocation8]  }
  0x10   : > { %s1667_s23 = scalar_select %p1378_p8, 1, 0 }
  0x11   : > { %p1009_p9 = pneg %p1378_p8  ;;  %s167_s28 = sshll.u32 %s1301_s27, 4  ;;  %s1393_s28 = int_to_ptr.vmem [resolvable:$true] %s167_s28 }
  0x12   : > { %s1395_s30 = sshll.u32 %s1302_s29, 4  ;;  %s1110_s7 = scalar_lea.hbm %s1658_s1, 2048  ;;  %s182_s30 = int_to_ptr.vmem [resolvable:$true] %s1395_s30 }
  0x13   : > { %p1389_p11 = pnand %p1009_p9, %p1662_p1  ;;  %p1111_p12 = scmp.ne.s32.totalorder %s1658_s1, %s1110_s7 }
  0x14   : > { %p1117_p5 = scmp.lt.u32.totalorder %s1110_s7, %s1658_s1 }
  0x15   : > { %p1405_p13 = pneg %p1389_p11 }
  0x17   : > { %p1113_p0 = pnand %p1405_p13, %p1111_p12 }
  0x19   : > { %p1114_p3 = pneg %p1113_p0 }
  0x1b   : > { %p1119_p7 = pnand %p1117_p5, %p1114_p3 }
  0x1d   : > { %1122 = shalt.err (!%p1119_p7)
}
  0x1e   : > { %s1123_s13 = scalar_lea.vmem %s1382_s25, 2048  ;;  %p1131_p2 = scmp.lt.s32.totalorder %s1382_s25, %s1382_s25 }
  0x1f   : > { %p1124_p9 = scmp.ne.s32.totalorder %s1382_s25, %s1123_s13  ;;  %p1132_p6 = scmp.lt.s32.totalorder %s1123_s13, %s1123_s13 }
  0x21   : > { %p1126_p10 = pnand %p1124_p9, %p1405_p13  ;;  %p1133_p12 = por %p1132_p6, %p1131_p2 }
  0x23   : > { %p1127_p1 = pneg %p1126_p10 }
  0x25   : > { %p1134_p0 = pnand %p1133_p12, %p1127_p1 }
  0x27   : > { %1137 = shalt.err (!%p1134_p0)
}
  0x28   : > { %s1303_s14 = smov 64   ;;  %s1304_s20 = smov 4  }
  0x29   : > { %1012 = dma.hbm_to_vmem [thread:$0]  (!%p1389_p11), %s1658_s1, 2048, %s1382_s25, [#allocation6], %s1303_s14, %s1303_s14, %s1304_s20  }
  0x2a   : > { %s1138_s6 = scalar_lea.hbm %s1659_s2, 512 }
  0x2b   : > { %p1139_p2 = scmp.ne.s32.totalorder %s1659_s2, %s1138_s6  ;;  %p1145_p10 = scmp.lt.u32.totalorder %s1138_s6, %s1659_s2 }
  0x2d   : > { %p1141_p1 = pnand %p1139_p2, %p1405_p13 }
  0x2f   : > { %p1142_p6 = pneg %p1141_p1 }
  0x31   : > { %p1147_p3 = pnand %p1145_p10, %p1142_p6 }
  0x33   : > { %1150 = shalt.err (!%p1147_p3)
}
  0x34   : > { %s1151_s25 = scalar_lea.vmem %s1393_s28, 512  ;;  %p1159_p12 = scmp.lt.s32.totalorder %s1393_s28, %s1393_s28 }
  0x35   : > { %p1152_p5 = scmp.ne.s32.totalorder %s1393_s28, %s1151_s25  ;;  %p1160_p0 = scmp.lt.s32.totalorder %s1151_s25, %s1151_s25 }
  0x37   : > { %p1154_p7 = pnand %p1152_p5, %p1405_p13  ;;  %p1161_p2 = por %p1160_p0, %p1159_p12 }
  0x39   : > { %p1155_p9 = pneg %p1154_p7 }
  0x3b   : > { %p1162_p1 = pnand %p1161_p2, %p1155_p9 }
  0x3d   : > { %1165 = shalt.err (!%p1162_p1)
}
  0x3e   : > { %1015 = dma.hbm_to_vmem [thread:$0]  (!%p1389_p11), %s1659_s2, 512, %s1393_s28, [#allocation6], %s1303_s14, %s1303_s14, %s1304_s20  }
  0x3f   : > { %s1166_s29 = scalar_lea.hbm %s1660_s3, 32 }
  0x40   : > { %p1167_p6 = scmp.ne.s32.totalorder %s1660_s3, %s1166_s29  ;;  %p1173_p5 = scmp.lt.u32.totalorder %s1166_s29, %s1660_s3 }
  0x42   : > { %p1169_p10 = pnand %p1167_p6, %p1405_p13 }
  0x44   : > { %p1170_p3 = pneg %p1169_p10 }
  0x46   : > { %p1175_p7 = pnand %p1173_p5, %p1170_p3 }
  0x48   : > { %1178 = shalt.err (!%p1175_p7)
}
  0x49   : > { %s1179_s9 = scalar_lea.vmem %s182_s30, 32  ;;  %p1187_p2 = scmp.lt.s32.totalorder %s182_s30, %s182_s30 }
  0x4a   : > { %p1180_p9 = scmp.ne.s32.totalorder %s182_s30, %s1179_s9  ;;  %p1188_p1 = scmp.lt.s32.totalorder %s1179_s9, %s1179_s9 }
  0x4c   : > { %p1182_p12 = pnand %p1180_p9, %p1405_p13  ;;  %p1189_p4 = por %p1188_p1, %p1187_p2 }
  0x4e   : > { %p1183_p0 = pneg %p1182_p12 }
  0x50   : > { %p1190_p8 = pnand %p1189_p4, %p1183_p0 }
  0x52   : > { %1193 = shalt.err (!%p1190_p8)
}
  0x53   : > { %1018 = dma.hbm_to_vmem [thread:$0]  (!%p1389_p11), %s1660_s3, 32, %s182_s30, [#allocation9]  }
  0x54   : > { %s1469_s10 = sadd.s32 1, %s1298_s18   ;;  %s29_s26 = sadd.s32 1, %s1294_s17 }
  0x55   : > { %s26_s20 = ssub.s32 %s1298_s18, %s1469_s10  ;;  %p36_p8 = scmp.ne.s32.totalorder %s1294_s17, %s1290_s16 }
  0x56   : > { %p27_p4 = scmp.eq.s32.totalorder %s26_s20, 0  ;;  %p37_p13 = scmp.eq.s32.totalorder %s1298_s18, 0 }
  0x57   : > { %p1030_p6 = scmp.lt.s32.totalorder %s1298_s18, 2  ;;  %p1670_p3 = scmp.eq.s32.totalorder %s1359_s19, 1 }
  0x58   : > { %s1479_s11 = scalar_select %p27_p4, %s1294_s17, %s29_s26  }
  0x59   : > { %p38_p10 = por %p37_p13, %p36_p8  ;;  %p1483_p5 = por %p1670_p3, %p36_p8 }
  0x5a   : > { %s192_s12 = sand.u32 1, %s1294_s17   ;;  %s934_s13 = sshll.u32 %s1298_s18, 10 }
  0x5b   : > { %s885_s30 = sshll.u32 %s192_s12, 6  ;;  %s1492_s29 = scalar_lea.hbm %s1657_s0, %s934_s13 }
  0x5c   : > { %s196_s5 = scalar_lea.vmem [#allocation2], %s885_s30  ;;  %p1494_p11 = pnand %p1030_p6, %p38_p10 }
  0x5d   : > { %s204_s6 = sshll.u32 %s196_s5, 4  ;;  %s1500_s8 = scalar_lea.sflag [#allocation3], %s192_s12  ;;  %s1498_s6 = int_to_ptr.vmem [resolvable:$true] %s204_s6 }
  0x5e   : > { %s1194_s9 = scalar_lea.hbm %s1492_s29, 1024  ;;  %p1196_p9 = pneg %p1494_p11 }
  0x5f   : > { %p1195_p7 = scmp.ne.s32.totalorder %s1492_s29, %s1194_s9  ;;  %s1199_s20 = scalar_lea.hbm %s1657_s0, 2048 }
  0x60   : > { %p1200_p2 = scmp.lt.u32.totalorder %s1492_s29, %s1657_s0  ;;  %p1201_p1 = scmp.lt.u32.totalorder %s1199_s20, %s1194_s9 }
  0x61   : > { %p1197_p12 = pnand %p1196_p9, %p1195_p7  ;;  %p1203_p8 = scmp.lt.u32.totalorder %s1194_s9, %s1492_s29 }
  0x62   : > { %p1202_p4 = por %p1201_p1, %p1200_p2 }
  0x63   : > { %p1198_p0 = pneg %p1197_p12 }
  0x64   : > { %p1204_p13 = por %p1203_p8, %p1202_p4 }
  0x66   : > { %p1205_p6 = pnand %p1204_p13, %p1198_p0 }
  0x68   : > { %1208 = shalt.err (!%p1205_p6)
}
  0x69   : > { %s1209_s12 = scalar_lea.vmem %s1498_s6, 1024  ;;  %s1305_s30 = smov [#allocation2]  }
  0x6a   : > { %p1210_p10 = scmp.ne.s32.totalorder %s1498_s6, %s1209_s12  ;;  %s1214_s24 = sshll.u32 %s1305_s30, 4  ;;  %s1215_s24 = int_to_ptr.vmem [resolvable:$false] %s1214_s24 }
  0x6b   : > { %s1216_s27 = scalar_lea.vmem %s1215_s24, 2048  ;;  %p1217_p12 = scmp.lt.s32.totalorder %s1498_s6, %s1215_s24 }
  0x6c   : > { %p1212_p3 = pnand %p1210_p10, %p1196_p9  ;;  %p1218_p2 = scmp.lt.s32.totalorder %s1216_s27, %s1209_s12 }
  0x6e   : > { %p1213_p7 = pneg %p1212_p3  ;;  %p1219_p1 = por %p1218_p2, %p1217_p12 }
  0x70   : > { %p1220_p4 = pnand %p1219_p1, %p1213_p7 }
  0x72   : > { %1223 = shalt.err (!%p1220_p4)
}
  0x73   : > { %s1306_s5 = smov 128   ;;  %s1307_s9 = smov 8  }
  0x74   : > { %1022 = dma.hbm_to_vmem [thread:$0]  (!%p1494_p11), %s1492_s29, 1024, %s1498_s6, %s1500_s8, %s1306_s5, %s1306_s5, %s1307_s9  }
  0x75   : > { %p1673_p9 = scmp.ne.s32.totalorder %s1667_s23, 0 }
  0x76   : > { %s1531_s28 = sand.u32 (!%p1673_p9), 1, %s1290_s16   ;;  %p1674_p0 = scmp.ne.s32.totalorder (!%p1673_p9), %s1665_s21, 0 }
  0x77   : > { %216 = sbr.rel (%p1673_p9) target bundleno = 792 (0x318), region = 36  ;;  %s890_s14 = sshll.u32 (!%p1673_p9), %s1531_s28, 6 }
  0x78   : > { %s219_s20 = scalar_lea.sflag (!%p1673_p9), [#allocation3], %s1531_s28  ;;  %s1535_s26 = scalar_lea.vmem (!%p1673_p9), [#allocation2], %s890_s14 }
  0x7e   : > { %1269 = dma.done.wait (%p1674_p0), %s219_s20, 1024  }
  0x7f   : > { %1271 = vsyncadd (%p1674_p0), %s219_s20, 4294966272  ;;  %p1675_p11 = scmp.eq.s32.totalorder %s1359_s19, 0 }
  0x81   : > { %1273 = dma.done.wait (%p1675_p11), [#allocation6], 2560   ;;  %p1676_p8 = pmov %p1675_p11 }
  0x83   : > { %1275 = vsyncadd (%p1676_p8), [#allocation6], 4294964736  ;;  %p1677_p13 = pmov %p1676_p8 }
  0x84   : > { %p1678_p6 = pmov %p1676_p8 }
  0x85   : > { %1277 = dma.done.wait (%p1677_p13), [#allocation9], 32  }
  0x86   : > { %1279 = vsyncadd (%p1678_p6), [#allocation9], 4294967264  ;;  %v1078_v0 = vld [vmem:[#allocation5 + $0x40] sm:$0xff]   ;;  %v1080_v2 = vld [vmem:[#allocation5 + $0x48] sm:$0xff]   ;;  %v1308_v25 = vmov 0.0   ;;  %vm1309_vm0 = vmmov 0  }
  0x87   : > { %v1079_v1 = vld [vmem:[#allocation5] sm:$0xff]   ;;  %936 = vmatprep.subr.bf16.mxu0 %v1078_v0  ;;  %v1081_v3 = vld [vmem:[#allocation5 + $0x8] sm:$0xff]   ;;  %v1082_v4 = vld [vmem:[#allocation5 + $0x50] sm:$0xff]   ;;  %981 = vmatprep.subr.bf16.mxu1 %v1308_v25  ;;  %vm517_vm1 = vcmask 517120   ;;  %vm525_vm2 = vcmask 519169   ;;  %vm533_vm3 = vcmask 521219  }
  0x88   : > { %937 = vmatpush3.bf16.msra.mxu0 %v1079_v1  ;;  %v1083_v5 = vld [vmem:[#allocation5 + $0x10] sm:$0xff]   ;;  %v1084_v6 = vld [vmem:[#allocation5 + $0x58] sm:$0xff]   ;;  %v1086_v8 = vld [vmem:[#allocation5 + $0x60] sm:$0xff]   ;;  %989 = vmatprep.mubr.msk.bf16.mxu1 %vm1309_vm0, %v1308_v25  ;;  %vm541_vm4 = vcmask 523269   ;;  %vm549_vm5 = vcmask 1040384   ;;  %vm551_vm6 = vcmask 1041408  }
  0x89   : > { %938 = vmatprep.subr.bf16.mxu0 %v1080_v2  ;;  %v1085_v7 = vld [vmem:[#allocation5 + $0x18] sm:$0xff]   ;;  %v1087_v9 = vld [vmem:[#allocation5 + $0x20] sm:$0xff]   ;;  %v1088_v10 = vld [vmem:[#allocation5 + $0x68] sm:$0xff]   ;;  %vm553_vm7 = vcmask 1042432   ;;  %vm660_vm8 = vcmask 1043456   ;;  %vm701_vm9 = vcmask 523264  }
  0x8a   : > { %v1096_v11 = vld [vmem:[%s1535_s26 + $0x4] ss:$8 sps:$4 sm:$0xff]   ;;  %v1090_v13 = vld [vmem:[#allocation5 + $0x70] sm:$0xff]   ;;  %v1092_v15 = vld [vmem:[#allocation5 + $0x78] sm:$0xff]   ;;  %s1310_s21 = smov 64   ;;  %s894_s23 = sshll.u32 %s1531_s28, 3 }
  0x8b   : > { %v1089_v12 = vld [vmem:[#allocation5 + $0x28] sm:$0xff]   ;;  %475 = vmatprep.mubr.bf16.mxu0 %v1096_v11  ;;  %v1091_v14 = vld [vmem:[#allocation5 + $0x30] sm:$0xff]   ;;  %v1093_v16 = vld [vmem:[#allocation5 + $0x38] sm:$0xff]   ;;  %s258_s29 = scalar_lea.vmem [#allocation10], %s894_s23  ;;  %s935_s7 = sshll.u32 %s1359_s19, 7 }
  0x8c   : > { %939 = vmatpush3.bf16.msra.mxu0 %v1081_v3  ;;  %v1094_v17 = vld [vmem:[%s1535_s26] ss:$8 sps:$4 sm:$0xff]   ;;  %v1097_v18 = vld [vmem:[%s1535_s26 + $0x14] ss:$8 sps:$4 sm:$0xff]   ;;  %v1099_v19 = vld [vmem:[%s1535_s26 + $0x10] ss:$8 sps:$4 sm:$0xff]   ;;  %s1611_s12 = scalar_lea.hbm %s1661_s4, %s935_s7 }
  0x8d   : > { %940 = vmatprep.subr.bf16.mxu0 %v1082_v4  ;;  %v1100_v20 = vld [vmem:[%s1535_s26 + $0x24] ss:$8 sps:$4 sm:$0xff]   ;;  %v1102_v21 = vld [vmem:[%s1535_s26 + $0x20] ss:$8 sps:$4 sm:$0xff]   ;;  %v1103_v22 = vld [vmem:[%s1535_s26 + $0x34] ss:$8 sps:$4 sm:$0xff]  }
  0x8e   : > { %v1105_v23 = vld [vmem:[%s1535_s26 + $0x30] ss:$8 sps:$4 sm:$0xff]   ;;  %v1106_v24 = vld [vmem:[#allocation7] sm:$0xff]   ;;  %v1107_v26 = vld [vmem:[#allocation7 + $0x8] sm:$0xff]   ;;  %s777_s6 = sshll.u32 %s258_s29, 4  ;;  %s764_s30 = scalar_lea.sflag [#allocation4], %s1531_s28  ;;  %s1606_s6 = int_to_ptr.vmem [resolvable:$true] %s777_s6 }
  0x8f   : > { %982 = vmatpush3.bf16.msra.mxu1 %v1106_v24  ;;  %v1108_v27 = vld [vmem:[#allocation7 + $0x10] sm:$0xff]   ;;  %v1109_v28 = vld [vmem:[#allocation7 + $0x18] sm:$0xff]   ;;  %v1557_v30 = vld [vmem:[#allocation8] ss:$0 sm:$0xff]  ;;  %s1224_s24 = scalar_lea.vmem %s1606_s6, 128  ;;  %s1311_s19 = smov [#allocation10]  }
  0x90   : > { %941 = vmatpush3.bf16.msra.mxu0 %v1083_v5  ;;  %983 = vmatprep.subr.bf16.mxu1 %v1308_v25  ;;  %p1225_p10 = scmp.ne.s32.totalorder %s1606_s6, %s1224_s24  ;;  %s1228_s27 = sshll.u32 %s1311_s19, 4  ;;  %s1229_s27 = int_to_ptr.vmem [resolvable:$false] %s1228_s27 }
  0x91   : > { %942 = vmatprep.subr.bf16.mxu0 %v1084_v6  ;;  %s1230_s5 = scalar_lea.vmem %s1229_s27, 256  ;;  %p1231_p12 = scmp.lt.s32.totalorder %s1606_s6, %s1229_s27 }
  0x92   : > { %p1226_p3 = pnand %p1225_p10, %p1483_p5  ;;  %p1232_p2 = scmp.lt.s32.totalorder %s1230_s5, %s1224_s24 }
  0x93   : > { %984 = vmatpush3.bf16.msra.mxu1 %v1107_v26 }
  0x94   : > { %943 = vmatpush3.bf16.msra.mxu0 %v1085_v7  ;;  %985 = vmatprep.subr.bf16.mxu1 %v1308_v25  ;;  %p1227_p7 = pneg %p1226_p3  ;;  %p1233_p1 = por %p1232_p2, %p1231_p12 }
  0x95   : > { %944 = vmatprep.subr.bf16.mxu0 %v1086_v8 }
  0x96   : > { %p1234_p4 = pnand %p1233_p1, %p1227_p7 }
  0x97   : > { %986 = vmatpush3.bf16.msra.mxu1 %v1108_v27 }
  0x98   : > { %945 = vmatpush3.bf16.msra.mxu0 %v1087_v9  ;;  %987 = vmatprep.subr.bf16.mxu1 %v1308_v25 }
  0x99   : > { %946 = vmatprep.subr.bf16.mxu0 %v1088_v10 }
  0x9b   : > { %988 = vmatpush3.bf16.msra.mxu1 %v1109_v28 }
  0x9c   : > { %947 = vmatpush3.bf16.msra.mxu0 %v1089_v12 }
  0x9d   : > { %948 = vmatprep.subr.bf16.mxu0 %v1090_v13 }
  0xa0   : > { %949 = vmatpush3.bf16.msra.mxu0 %v1091_v14 }
  0xa1   : > { %950 = vmatprep.subr.bf16.mxu0 %v1092_v15 }
  0xa4   : > { %951 = vmatpush3.bf16.msra.mxu0 %v1093_v16 }
  0xa7   : > { %476 = vmatmul.mubr.bf16.vlgmr.msra.gmra.mrb[0].mxu0 %v1094_v17 }
  0xa8   : > { %483 = vmatprep.mubr.bf16.mxu0 %v1097_v18 }
  0xaf   : > { %484 = vmatmul.mubr.bf16.gmra.mrb[4].mxu0 %v1099_v19 }
  0xb0   : > { %491 = vmatprep.mubr.bf16.mxu0 %v1100_v20 }
  0xb7   : > { %492 = vmatmul.mubr.bf16.gmra.mrb[8].mxu0 %v1102_v21 }
  0xb8   : > { %499 = vmatprep.mubr.bf16.mxu0 %v1103_v22 }
  0xbf   : > { %500 = vmatmul.mubr.bf16.gmra.mrb[12].mxu0 %v1105_v23 }
 0x17a   : > { %v952_v29 = vpop.f32.mrb[0].mxu0 }
 0x17b   : > { %v953_v31 = vpop.f32.mrb[1].mxu0 }
 0x17c   : > { %v954_v32 = vadd.f32 %v953_v31, %v952_v29  ;;  %v955_v33 = vpop.f32.mrb[2].mxu0 }
 0x17d   : > { %v956_v34 = vpop.f32.mrb[3].mxu0 }
 0x17e   : > { %v478_v35 = vadd.f32 %v954_v32, %v1557_v30  ;;  %v957_v36 = vadd.f32 %v956_v34, %v955_v33 }
 0x180   : > { %v481_v37 = vadd.f32 %v957_v36, %v1557_v30  ;;  %v508_v38 = vmax.f32 %v478_v35, 0.0 }
 0x182   : > { %v509_v39 = vmax.f32 %v481_v37, 0.0  ;;  %v958_v40 = vpop.f32.mrb[4].mxu0 }
 0x183   : > { %v959_v41 = vpop.f32.mrb[5].mxu0 }
 0x184   : > { %v516_v42 = vmax.f32 %v508_v38, %v509_v39  ;;  %v960_v43 = vadd.f32 %v959_v41, %v958_v40  ;;  %v961_v44 = vpop.f32.mrb[6].mxu0 }
 0x185   : > { %v962_v45 = vpop.f32.mrb[7].mxu0 }
 0x186   : > { %v518_v46 = vsel %vm517_vm1, %v516_v42, -inf  ;;  %v526_v47 = vsel %vm525_vm2, %v516_v42, -inf  ;;  %v534_v48 = vsel %vm533_vm3, %v516_v42, -inf  ;;  %v542_v49 = vsel %vm541_vm4, %v516_v42, -inf }
 0x187   : > { %v519_v50 = vrot.slane %v518_v46, 4  ;;  %v527_v51 = vrot.slane %v526_v47, 4  ;;  %v535_v52 = vrot.slane %v534_v48, 4  ;;  %v543_v53 = vrot.slane %v542_v49, 4 }
 0x188   : > { %v486_v54 = vadd.f32 %v960_v43, %v1557_v30  ;;  %v963_v55 = vadd.f32 %v962_v45, %v961_v44 }
 0x189   : > { %v520_v56 = vmax.f32 %v518_v46, %v519_v50  ;;  %v528_v57 = vmax.f32 %v526_v47, %v527_v51  ;;  %v536_v58 = vmax.f32 %v534_v48, %v535_v52  ;;  %v544_v59 = vmax.f32 %v542_v49, %v543_v53 }
 0x18a   : > { %v510_v60 = vmax.f32 %v486_v54, 0.0  ;;  %v489_v61 = vadd.f32 %v963_v55, %v1557_v30  ;;  %v964_v62 = vpop.f32.mrb[8].mxu0 }
 0x18b   : > { %v521_v63 = vrot.slane %v520_v56, 2  ;;  %v529_v0 = vrot.slane %v528_v57, 2  ;;  %v537_v1 = vrot.slane %v536_v58, 2  ;;  %v545_v2 = vrot.slane %v544_v59, 2  ;;  %v965_v3 = vpop.f32.mrb[9].mxu0 }
 0x18c   : > { %v555_v4 = vmax.f32 %v509_v39, %v510_v60  ;;  %v511_v5 = vmax.f32 %v489_v61, 0.0  ;;  %v966_v6 = vadd.f32 %v965_v3, %v964_v62  ;;  %v967_v7 = vpop.f32.mrb[10].mxu0 }
 0x18d   : > { %v522_v8 = vmax.f32 %v520_v56, %v521_v63  ;;  %v530_v9 = vmax.f32 %v528_v57, %v529_v0  ;;  %v538_v10 = vmax.f32 %v536_v58, %v537_v1  ;;  %v968_v11 = vpop.f32.mrb[11].mxu0  ;;  %v1568_v16 = vmax.f32 %v544_v59, %v545_v2 }
 0x18e   : > { %v556_v12 = vmax.f32 %v555_v4, %v511_v5  ;;  %v494_v13 = vadd.f32 %v966_v6, %v1557_v30  ;;  %v969_v14 = vadd.f32 %v968_v11, %v967_v7 }
 0x18f   : > { %v523_v15 = vrot.slane %v522_v8, 1  ;;  %v531_v21 = vrot.slane %v530_v9, 1  ;;  %v539_v22 = vrot.slane %v538_v10, 1  ;;  %v547_v35 = vrot.slane %v1568_v16, 1 }
 0x190   : > { %v557_v17 = vsel %vm517_vm1, %v556_v12, -inf  ;;  %v564_v18 = vsel %vm525_vm2, %v556_v12, -inf  ;;  %v571_v19 = vsel %vm533_vm3, %v556_v12, -inf  ;;  %v578_v20 = vsel %vm541_vm4, %v556_v12, -inf }
 0x191   : > { %v558_v23 = vrot.slane %v557_v17, 4  ;;  %v565_v24 = vrot.slane %v564_v18, 4  ;;  %v572_v25 = vrot.slane %v571_v19, 4  ;;  %v579_v26 = vrot.slane %v578_v20, 4 }
 0x192   : > { %v512_v27 = vmax.f32 %v494_v13, 0.0  ;;  %v497_v28 = vadd.f32 %v969_v14, %v1557_v30  ;;  %v970_v29 = vpop.f32.mrb[12].mxu0  ;;  %v524_v31 = vmax.f32 %v522_v8, %v523_v15  ;;  %v532_v41 = vmax.f32 %v530_v9, %v531_v21 }
 0x193   : > { %v559_v32 = vmax.f32 %v557_v17, %v558_v23  ;;  %v566_v33 = vmax.f32 %v564_v18, %v565_v24  ;;  %v971_v34 = vpop.f32.mrb[13].mxu0  ;;  %v573_v36 = vmax.f32 %v571_v19, %v572_v25  ;;  %v580_v37 = vmax.f32 %v578_v20, %v579_v26 }
 0x194   : > { %v588_v38 = vmax.f32 %v511_v5, %v512_v27  ;;  %v513_v39 = vmax.f32 %v497_v28, 0.0  ;;  %v973_v40 = vpop.f32.mrb[14].mxu0  ;;  %v972_v44 = vadd.f32 %v971_v34, %v970_v29  ;;  %v540_v53 = vmax.f32 %v538_v10, %v539_v22 }
 0x195   : > { %v560_v42 = vrot.slane %v559_v32, 2  ;;  %v567_v43 = vrot.slane %v566_v33, 2  ;;  %v974_v45 = vpop.f32.mrb[15].mxu0  ;;  %v574_v46 = vrot.slane %v573_v36, 2  ;;  %v581_v47 = vrot.slane %v580_v37, 2 }
 0x196   : > { %v589_v48 = vmax.f32 %v588_v38, %v513_v39  ;;  %v975_v49 = vadd.f32 %v974_v45, %v973_v40  ;;  %v502_v52 = vadd.f32 %v972_v44, %v1557_v30  ;;  %v550_v12 = vsel %vm549_vm5, %v524_v31, %v532_v41 }
 0x197   : > { %v561_v50 = vmax.f32 %v559_v32, %v560_v42  ;;  %v568_v51 = vmax.f32 %v566_v33, %v567_v43  ;;  %v575_v54 = vmax.f32 %v573_v36, %v574_v46  ;;  %v582_v55 = vmax.f32 %v580_v37, %v581_v47 }
 0x198   : > { %v590_v56 = vsel %vm517_vm1, %v589_v48, -inf  ;;  %v597_v57 = vsel %vm525_vm2, %v589_v48, -inf  ;;  %v604_v0 = vsel %vm533_vm3, %v589_v48, -inf  ;;  %v611_v1 = vsel %vm541_vm4, %v589_v48, -inf }
 0x199   : > { %v562_v58 = vrot.slane %v561_v50, 1  ;;  %v569_v59 = vrot.slane %v568_v51, 1  ;;  %v591_v60 = vrot.slane %v590_v56, 4  ;;  %v598_v61 = vrot.slane %v597_v57, 4 }
 0x19a   : > { %v576_v62 = vrot.slane %v575_v54, 1  ;;  %v583_v63 = vrot.slane %v582_v55, 1  ;;  %v605_v7 = vrot.slane %v604_v0, 4  ;;  %v612_v8 = vrot.slane %v611_v1, 4 }
 0x19b   : > { %v563_v2 = vmax.f32 %v561_v50, %v562_v58  ;;  %v570_v3 = vmax.f32 %v568_v51, %v569_v59  ;;  %v592_v4 = vmax.f32 %v590_v56, %v591_v60  ;;  %v599_v5 = vmax.f32 %v597_v57, %v598_v61 }
 0x19c   : > { %v577_v6 = vmax.f32 %v575_v54, %v576_v62  ;;  %v514_v9 = vmax.f32 %v502_v52, 0.0  ;;  %v505_v11 = vadd.f32 %v975_v49, %v1557_v30  ;;  %v606_v14 = vmax.f32 %v604_v0, %v605_v7 }
 0x19d   : > { %v593_v10 = vrot.slane %v592_v4, 2  ;;  %v600_v13 = vrot.slane %v599_v5, 2  ;;  %v584_v18 = vmax.f32 %v582_v55, %v583_v63  ;;  %v585_v19 = vsel %vm549_vm5, %v563_v2, %v570_v3 }
 0x19e   : > { %v621_v15 = vmax.f32 %v513_v39, %v514_v9  ;;  %v515_v17 = vmax.f32 %v505_v11, 0.0  ;;  %v613_v20 = vmax.f32 %v611_v1, %v612_v8  ;;  %v548_v21 = vmax.f32 %v1568_v16, %v547_v35 }
 0x19f   : > { %v552_v22 = vsel %vm551_vm6, %v550_v12, %v540_v53  ;;  %v586_v23 = vsel %vm551_vm6, %v585_v19, %v577_v6  ;;  %v594_v24 = vmax.f32 %v592_v4, %v593_v10  ;;  %v607_v30 = vrot.slane %v606_v14, 2 }
 0x1a0   : > { %v622_v25 = vmax.f32 %v621_v15, %v515_v17  ;;  %v587_v26 = vsel %vm553_vm7, %v586_v23, %v584_v18  ;;  %v601_v27 = vmax.f32 %v599_v5, %v600_v13  ;;  %v554_v31 = vsel %vm553_vm7, %v552_v22, %v548_v21  ;;  %v920_v15 = vld [vmem:[#allocation8 + $0x1] ss:$0 sm:$0xff] }
 0x1a1   : > { %v655_v32 = vrot.slane %v587_v26, 4  ;;  %v614_v33 = vrot.slane %v613_v20, 2  ;;  %v595_v36 = vrot.slane %v594_v24, 1  ;;  %v608_v37 = vmax.f32 %v606_v14, %v607_v30 }
 0x1a2   : > { %v623_v28 = vsel %vm517_vm1, %v622_v25, -inf  ;;  %v630_v29 = vsel %vm525_vm2, %v622_v25, -inf  ;;  %v637_v35 = vsel %vm533_vm3, %v622_v25, -inf  ;;  %v644_v39 = vsel %vm541_vm4, %v622_v25, -inf }
 0x1a3   : > { %v624_v16 = vrot.slane %v623_v28, 4  ;;  %v631_v34 = vrot.slane %v630_v29, 4  ;;  %v638_v38 = vrot.slane %v637_v35, 4  ;;  %v602_v40 = vrot.slane %v601_v27, 1 }
 0x1a4   : > { %v645_v43 = vrot.slane %v644_v39, 4  ;;  %v661_v45 = vsel %vm660_vm8, %v554_v31, %v655_v32  ;;  %v596_v49 = vmax.f32 %v594_v24, %v595_v36  ;;  %v609_v50 = vrot.slane %v608_v37, 1 }
 0x1a5   : > { %v625_v41 = vmax.f32 %v623_v28, %v624_v16  ;;  %v632_v42 = vmax.f32 %v630_v29, %v631_v34  ;;  %v639_v44 = vmax.f32 %v637_v35, %v638_v38  ;;  %v615_v51 = vmax.f32 %v613_v20, %v614_v33 }
 0x1a6   : > { %v646_v48 = vmax.f32 %v644_v39, %v645_v43  ;;  %v603_v53 = vmax.f32 %v601_v27, %v602_v40  ;;  %v610_v62 = vmax.f32 %v608_v37, %v609_v50 }
 0x1a7   : > { %v626_v46 = vrot.slane %v625_v41, 2  ;;  %v633_v47 = vrot.slane %v632_v42, 2  ;;  %v640_v52 = vrot.slane %v639_v44, 2  ;;  %v616_v63 = vrot.slane %v615_v51, 1 }
 0x1a8   : > { %v647_v56 = vrot.slane %v646_v48, 2  ;;  %v618_v3 = vsel %vm549_vm5, %v596_v49, %v603_v53 }
 0x1a9   : > { %v627_v54 = vmax.f32 %v625_v41, %v626_v46  ;;  %v634_v55 = vmax.f32 %v632_v42, %v633_v47  ;;  %v641_v57 = vmax.f32 %v639_v44, %v640_v52  ;;  %v619_v7 = vsel %vm551_vm6, %v618_v3, %v610_v62 }
 0x1aa   : > { %v648_v60 = vmax.f32 %v646_v48, %v647_v56  ;;  %v617_v9 = vmax.f32 %v615_v51, %v616_v63 }
 0x1ab   : > { %v628_v58 = vrot.slane %v627_v54, 1  ;;  %v635_v59 = vrot.slane %v634_v55, 1  ;;  %v642_v61 = vrot.slane %v641_v57, 1 }
 0x1ac   : > { %v649_v2 = vrot.slane %v648_v60, 1  ;;  %v620_v12 = vsel %vm553_vm7, %v619_v7, %v617_v9 }
 0x1ad   : > { %v629_v0 = vmax.f32 %v627_v54, %v628_v58  ;;  %v636_v1 = vmax.f32 %v634_v55, %v635_v59  ;;  %v643_v4 = vmax.f32 %v641_v57, %v642_v61 }
 0x1ae   : > { %v650_v5 = vmax.f32 %v648_v60, %v649_v2 }
 0x1af   : > { %v651_v6 = vsel %vm549_vm5, %v629_v0, %v636_v1 }
 0x1b0   : > { %v652_v8 = vsel %vm551_vm6, %v651_v6, %v643_v4 }
 0x1b1   : > { %v653_v10 = vsel %vm553_vm7, %v652_v8, %v650_v5 }
 0x1b2   : > { %v658_v11 = vrot.slane %v653_v10, 4 }
 0x1b4   : > { %v662_v13 = vsel %vm660_vm8, %v620_v12, %v658_v11 }
 0x1b5   : > { %v663_v14 = vpack.c.bf16 %v662_v13, %v661_v45 }
 0x1b7   : > { %990 = vmatmul.mubr.msk.bf16.vlgmr.msra.gmra.mrb[0].mxu1 %vm701_vm9, %v663_v14 }
 0x28a   : > { %v739_v17 = vpop.f32.mrb[0].mxu1 }
 0x28b   : > { %v740_v18 = vadd.f32 %v920_v15, %v739_v17  ;;  %v991_v19 = vpop.f32.mrb[1].mxu1 }
 0x28c   : > { %v742_v20 = vpop.f32.mrb[2].mxu1 }
 0x28d   : > { %v743_v21 = vadd.f32 %v920_v15, %v742_v20  ;;  %v992_v22 = vpop.f32.mrb[3].mxu1  ;;  %v746_v23 = vmax.f32 %v740_v18, 0.0 }
 0x28f   : > { %v747_v24 = vmax.f32 %v743_v21, 0.0 }
 0x291   : > { %v748_v30 = vpack.c.bf16 %v747_v24, %v746_v23 }
 0x293   : > { %750 = vrot.lane.b32.xlu0 %v748_v30, %s1310_s21 }
 0x305   : > { %v751_v25 = vpop.permute.xlu0 %750 }
 0x306   : > { %v753_v26 = vsel %vm701_vm9, %v663_v14, %v751_v25 }
 0x307   : > { %v926_v27 = vcombine.low %v753_v26, %v753_v26  ;;  %v927_v28 = vcombine.high %v753_v26, %v753_v26 }
 0x309   : > { %761 = vst [vmem:[%s258_s29] sm:$0xf] %v926_v27  ;;  %762 = vst [vmem:[%s258_s29 + $0x4] sm:$0xf] %v927_v28 }
 0x30a   : > { %1237 = shalt.err (!%p1234_p4)
}
 0x30b   : > { %s1238_s9 = scalar_lea.hbm %s1611_s12, 128  ;;  %s1242_s26 = scalar_lea.hbm %s1661_s4, 256 }
 0x30c   : > { %p1239_p9 = scmp.ne.s32.totalorder %s1611_s12, %s1238_s9  ;;  %p1243_p8 = scmp.lt.u32.totalorder %s1611_s12, %s1661_s4 }
 0x30d   : > { %p1244_p13 = scmp.lt.u32.totalorder %s1242_s26, %s1238_s9  ;;  %p1246_p10 = scmp.lt.u32.totalorder %s1238_s9, %s1611_s12 }
 0x30e   : > { %p1240_p0 = pnand %p1239_p9, %p1483_p5 }
 0x30f   : > { %p1245_p6 = por %p1244_p13, %p1243_p8 }
 0x310   : > { %p1241_p11 = pneg %p1240_p0 }
 0x311   : > { %p1247_p3 = por %p1246_p10, %p1245_p6 }
 0x313   : > { %p1248_p7 = pnand %p1247_p3, %p1241_p11 }
 0x315   : > { %1251 = shalt.err (!%p1248_p7)
}
 0x316   : > { %s1312_s7 = smov 4  }
 0x317   : > { %1007 = dma.vmem_to_hbm [thread:$0]  (%p1483_p5), %s1606_s6, 128, %s1611_s12, %s764_s30, %s1310_s21, %s1310_s21, %s1312_s7  }
 0x318 PF: > { %s792_s8 = sand.u32 1, %s1286_s15   ;;  %p1679_p12 = scmp.ne.s32.totalorder %s1666_s22, 0 }
 0x319   : > { %p1680_p2 = scmp.ge.s32.totalorder %s1298_s18, 2  ;;  %s793_s13 = scalar_lea.sflag [#allocation4], %s792_s8 }
 0x31b   : > { %p1024_p1 = pnand %p1680_p2, %p1679_p12 }
 0x31d   : > { %1281 = dma.done.wait (!%p1024_p1), %s793_s13, 128  }
 0x31e   : > { %1283 = vsyncadd (!%p1024_p1), %s793_s13, 4294967168  ;;  %p19_p4 = scmp.ge.s32.totalorder %s1469_s10, 4   ;;  %s1681_s15 = smov %s1290_s16 }
 0x31f   : > { %s1682_s16 = smov %s1294_s17  ;;  %s1683_s17 = smov %s1479_s11 }
 0x320   : > { %s1684_s18 = smov %s1469_s10  ;;  %21 = sbr.rel (!%p19_p4) target bundleno = 7 (0x7), region = 93 }
 0x327   :  { %798 = vsyncpa [#allocation3], 1 }
 0x328   :  { %800 = vsyncpa [#allocation3 + $0x1], 1 }
 0x329   :  { %801 = vsyncpa [#allocation6], 1 }
 0x32a   :  { %802 = vsyncpa [#allocation9], 1 }
 0x32b   :  { %803 = vsyncpa [#allocation4], 1 }
 0x32c   :  { %805 = vsyncpa [#allocation4 + $0x1], 1 }

// kernel: resnet_grasp_forward.4
= control target key start
LH: loop header
LB: loop body
LE: loop exit
PB: predicated region body
PF: predicated region fallthrough
CT: control target
= control target key end

     0   :  { %9 = vsyncpa [#allocation3], 0  ;;  %s2954_s0 = inlined_call_operand.hbm [shape: bf16[32,128], index: 0, kind: input, shape index: {}]   ;;  %s2955_s1 = inlined_call_operand.hbm [shape: bf16[576,64], index: 1, kind: input, shape index: {}]   ;;  %s2956_s2 = inlined_call_operand.hbm [shape: bf16[128,256], index: 2, kind: input, shape index: {}]   ;;  %s2957_s3 = inlined_call_operand.hbm [shape: f32[2,256], index: 3, kind: input, shape index: {}]   ;;  %s2958_s4 = inlined_call_operand.hbm [shape: bf16[2,1,256], index: 4, kind: output, shape index: {}]  }
   0x1   :  { %11 = vsyncpa [#allocation3 + $0x1], 0 }
   0x2   :  { %12 = vsyncpa [#allocation6], 0 }
   0x3   :  { %13 = vsyncpa [#allocation9], 0 }
   0x4   :  { %14 = vsyncpa [#allocation4], 0 }
   0x5   :  { %16 = vsyncpa [#allocation4 + $0x1], 0  ;;  %s2421_s15 = smov 0   ;;  %s2423_s16 = smov 0  }
   0x6   :  { %s2425_s17 = smov 0   ;;  %s2427_s18 = smov 0  }
   0x7 LB: > { %s2442_s19 = sadd.s32 4294967295, %s2380_s18   ;;  %s1694_s20 = sadd.s32 4294967294, %s2380_s18   ;;  %s2380_s18 = sphi %s2427_s18, %s2987_s18   ;;  %s2376_s17 = sphi %s2425_s17, %s2986_s17   ;;  %s2372_s16 = sphi %s2423_s16, %s2985_s16   ;;  %s2368_s15 = sphi %s2421_s15, %s2984_s15  }
   0x8   : > { %p42_p0 = scmp.ne.s32.totalorder %s2372_s16, %s2368_s15  ;;  %p2959_p1 = scmp.eq.s32.totalorder %s2442_s19, 0 }
   0x9   : > { %p135_p3 = scmp.eq.s32.totalorder %s1694_s20, 1  ;;  %p1695_p5 = scmp.ge.s32.totalorder %s2380_s18, 1 }
   0xa   : > { %p2451_p4 = por %p2959_p1, %p42_p0  ;;  %p142_p7 = scmp.lt.s32.totalorder %s2380_s18, 3 }
   0xb   : > { %p2456_p6 = por %p135_p3, %p42_p0  ;;  %s2382_s24 = smov [#allocation5]  }
   0xc   : > { %s2963_s21 = scalar_select %p2451_p4, 1, 0 }
   0xd   : > { %s2964_s22 = scalar_select %p2456_p6, 1, 0 }
   0xe   : > { %p2461_p8 = pnand %p1695_p5, %p142_p7  ;;  %s154_s25 = sshll.u32 %s2382_s24, 4  ;;  %s2465_s25 = int_to_ptr.vmem [resolvable:$true] %s154_s25 }
   0xf   : > { %s2383_s27 = smov [#allocation7]   ;;  %s2192_s5 = scalar_lea.hbm %s2955_s1, 4608 }
  0x10   : > { %s2965_s23 = scalar_select %p2461_p8, 1, 0 }
  0x11   : > { %p2059_p9 = pneg %p2461_p8  ;;  %s167_s28 = sshll.u32 %s2383_s27, 4  ;;  %s2476_s28 = int_to_ptr.vmem [resolvable:$true] %s167_s28 }
  0x12   : > { %p2193_p12 = scmp.ne.s32.totalorder %s2955_s1, %s2192_s5  ;;  %p2199_p5 = scmp.lt.u32.totalorder %s2192_s5, %s2955_s1 }
  0x13   : > { %p2472_p11 = pnand %p2059_p9, %p2959_p1 }
  0x15   : > { %p2486_p13 = pneg %p2472_p11 }
  0x17   : > { %p2195_p0 = pnand %p2486_p13, %p2193_p12 }
  0x19   : > { %p2196_p3 = pneg %p2195_p0 }
  0x1b   : > { %p2201_p7 = pnand %p2199_p5, %p2196_p3 }
  0x1d   : > { %2204 = shalt.err (!%p2201_p7)
}
  0x1e   : > { %s2205_s11 = scalar_lea.vmem %s2465_s25, 4608  ;;  %p2213_p2 = scmp.lt.s32.totalorder %s2465_s25, %s2465_s25 }
  0x1f   : > { %p2206_p9 = scmp.ne.s32.totalorder %s2465_s25, %s2205_s11  ;;  %p2214_p6 = scmp.lt.s32.totalorder %s2205_s11, %s2205_s11 }
  0x21   : > { %p2208_p10 = pnand %p2206_p9, %p2486_p13  ;;  %p2215_p12 = por %p2214_p6, %p2213_p2 }
  0x23   : > { %p2209_p1 = pneg %p2208_p10 }
  0x25   : > { %p2216_p0 = pnand %p2215_p12, %p2209_p1 }
  0x27   : > { %2219 = shalt.err (!%p2216_p0)
}
  0x28   : > { %s2960_s12 = smov 64   ;;  %s2385_s13 = smov 4  }
  0x29   : > { %2062 = dma.hbm_to_vmem [thread:$0]  (!%p2472_p11), %s2955_s1, 4608, %s2465_s25, [#allocation6], %s2960_s12, %s2960_s12, %s2385_s13  }
  0x2a   : > { %s2220_s29 = scalar_lea.hbm %s2956_s2, 2048 }
  0x2b   : > { %p2221_p1 = scmp.ne.s32.totalorder %s2956_s2, %s2220_s29  ;;  %p2227_p10 = scmp.lt.u32.totalorder %s2220_s29, %s2956_s2 }
  0x2d   : > { %p2223_p2 = pnand %p2221_p1, %p2486_p13 }
  0x2f   : > { %p2224_p6 = pneg %p2223_p2 }
  0x31   : > { %p2229_p3 = pnand %p2227_p10, %p2224_p6 }
  0x33   : > { %2232 = shalt.err (!%p2229_p3)
}
  0x34   : > { %s2233_s25 = scalar_lea.vmem %s2476_s28, 2048  ;;  %p2241_p12 = scmp.lt.s32.totalorder %s2476_s28, %s2476_s28 }
  0x35   : > { %p2234_p5 = scmp.ne.s32.totalorder %s2476_s28, %s2233_s25  ;;  %p2242_p0 = scmp.lt.s32.totalorder %s2233_s25, %s2233_s25 }
  0x37   : > { %p2236_p7 = pnand %p2234_p5, %p2486_p13  ;;  %p2243_p1 = por %p2242_p0, %p2241_p12 }
  0x39   : > { %p2237_p9 = pneg %p2236_p7 }
  0x3b   : > { %p2244_p2 = pnand %p2243_p1, %p2237_p9 }
  0x3d   : > { %2247 = shalt.err (!%p2244_p2)
}
  0x3e   : > { %s2386_s9 = smov 128   ;;  %s2387_s10 = smov 8  }
  0x3f   : > { %2065 = dma.hbm_to_vmem [thread:$0]  (!%p2472_p11), %s2956_s2, 2048, %s2476_s28, [#allocation6], %s2386_s9, %s2386_s9, %s2387_s10  }
  0x40   : > { %s2388_s20 = smov [#allocation8]   ;;  %s2534_s27 = sadd.s32 1, %s2380_s18  }
  0x41   : > { %s181_s24 = sshll.u32 %s2388_s20, 4  ;;  %s2248_s5 = scalar_lea.hbm %s2957_s3, 64  ;;  %s182_s24 = int_to_ptr.vmem [resolvable:$true] %s181_s24 }
  0x42   : > { %p2249_p6 = scmp.ne.s32.totalorder %s2957_s3, %s2248_s5  ;;  %p2255_p5 = scmp.lt.u32.totalorder %s2248_s5, %s2957_s3 }
  0x44   : > { %p2251_p10 = pnand %p2249_p6, %p2486_p13 }
  0x46   : > { %p2252_p3 = pneg %p2251_p10 }
  0x48   : > { %p2257_p7 = pnand %p2255_p5, %p2252_p3 }
  0x4a   : > { %2260 = shalt.err (!%p2257_p7)
}
  0x4b   : > { %s2261_s28 = scalar_lea.vmem %s182_s24, 64  ;;  %p2269_p1 = scmp.lt.s32.totalorder %s182_s24, %s182_s24 }
  0x4c   : > { %p2262_p9 = scmp.ne.s32.totalorder %s182_s24, %s2261_s28  ;;  %p2270_p2 = scmp.lt.s32.totalorder %s2261_s28, %s2261_s28 }
  0x4e   : > { %p2264_p12 = pnand %p2262_p9, %p2486_p13  ;;  %p2271_p4 = por %p2270_p2, %p2269_p1 }
  0x50   : > { %p2265_p0 = pneg %p2264_p12 }
  0x52   : > { %p2272_p8 = pnand %p2271_p4, %p2265_p0 }
  0x54   : > { %2275 = shalt.err (!%p2272_p8)
}
  0x55   : > { %2068 = dma.hbm_to_vmem [thread:$0]  (!%p2472_p11), %s2957_s3, 64, %s182_s24, [#allocation9]  }
  0x56   : > { %s26_s8 = ssub.s32 %s2380_s18, %s2534_s27  ;;  %s29_s12 = sadd.s32 1, %s2376_s17 }
  0x57   : > { %p27_p4 = scmp.eq.s32.totalorder %s26_s8, 0  ;;  %p36_p8 = scmp.ne.s32.totalorder %s2376_s17, %s2372_s16 }
  0x58   : > { %p37_p13 = scmp.eq.s32.totalorder %s2380_s18, 0  ;;  %p2080_p6 = scmp.lt.s32.totalorder %s2380_s18, 2 }
  0x59   : > { %s2562_s26 = scalar_select %p27_p4, %s2376_s17, %s29_s12  }
  0x5a   : > { %p38_p10 = por %p37_p13, %p36_p8  ;;  %p2968_p3 = scmp.eq.s32.totalorder %s2442_s19, 1 }
  0x5b   : > { %s192_s14 = sand.u32 1, %s2376_s17   ;;  %s1798_s20 = sshll.u32 %s2380_s18, 7 }
  0x5c   : > { %p2566_p5 = por %p2968_p3, %p36_p8  ;;  %s1700_s29 = sshll.u32 %s192_s14, 3 }
  0x5d   : > { %s2575_s24 = scalar_lea.hbm %s2954_s0, %s1798_s20  ;;  %s196_s6 = scalar_lea.vmem [#allocation2], %s1700_s29 }
  0x5e   : > { %s203_s7 = sshll.u32 %s196_s6, 4  ;;  %p2577_p11 = pnand %p2080_p6, %p38_p10  ;;  %s2581_s7 = int_to_ptr.vmem [resolvable:$true] %s203_s7 }
  0x5f   : > { %s2583_s28 = scalar_lea.sflag [#allocation3], %s192_s14  ;;  %s2276_s9 = scalar_lea.hbm %s2575_s24, 128 }
  0x60   : > { %p2277_p7 = scmp.ne.s32.totalorder %s2575_s24, %s2276_s9  ;;  %p2278_p9 = pneg %p2577_p11 }
  0x61   : > { %s2281_s12 = scalar_lea.hbm %s2954_s0, 256  ;;  %p2282_p1 = scmp.lt.u32.totalorder %s2575_s24, %s2954_s0 }
  0x62   : > { %p2279_p12 = pnand %p2278_p9, %p2277_p7  ;;  %p2283_p2 = scmp.lt.u32.totalorder %s2281_s12, %s2276_s9 }
  0x63   : > { %p2285_p8 = scmp.lt.u32.totalorder %s2276_s9, %s2575_s24 }
  0x64   : > { %p2280_p0 = pneg %p2279_p12  ;;  %p2284_p4 = por %p2283_p2, %p2282_p1 }
  0x66   : > { %p2286_p13 = por %p2285_p8, %p2284_p4 }
  0x68   : > { %p2287_p6 = pnand %p2286_p13, %p2280_p0 }
  0x6a   : > { %2290 = shalt.err (!%p2287_p6)
}
  0x6b   : > { %s2291_s14 = scalar_lea.vmem %s2581_s7, 128  ;;  %s2389_s30 = smov [#allocation2]  }
  0x6c   : > { %p2292_p10 = scmp.ne.s32.totalorder %s2581_s7, %s2291_s14  ;;  %s2296_s5 = sshll.u32 %s2389_s30, 4  ;;  %s2297_s5 = int_to_ptr.vmem [resolvable:$false] %s2296_s5 }
  0x6d   : > { %s2298_s6 = scalar_lea.vmem %s2297_s5, 256  ;;  %p2299_p12 = scmp.lt.s32.totalorder %s2581_s7, %s2297_s5 }
  0x6e   : > { %p2294_p3 = pnand %p2292_p10, %p2278_p9  ;;  %p2300_p1 = scmp.lt.s32.totalorder %s2298_s6, %s2291_s14 }
  0x70   : > { %p2295_p7 = pneg %p2294_p3  ;;  %p2301_p2 = por %p2300_p1, %p2299_p12 }
  0x72   : > { %p2302_p4 = pnand %p2301_p2, %p2295_p7 }
  0x74   : > { %2305 = shalt.err (!%p2302_p4)
}
  0x75   : > { %s2971_s9 = smov 64   ;;  %p2972_p9 = scmp.ne.s32.totalorder %s2965_s23, 0 }
  0x76   : > { %2072 = dma.hbm_to_vmem [thread:$0]  (!%p2577_p11), %s2575_s24, 128, %s2581_s7, %s2583_s28, %s2971_s9, %s2971_s9, %s2385_s13  }
  0x77   : > { %215 = sbr.rel (%p2972_p9) target bundleno = 864 (0x360), region = 36  ;;  %s2617_s10 = sand.u32 (!%p2972_p9), 1, %s2372_s16  }
  0x78   : > { %s1704_s8 = sshll.u32 (!%p2972_p9), %s2617_s10, 3  ;;  %s218_s12 = scalar_lea.sflag (!%p2972_p9), [#allocation3], %s2617_s10 }
  0x79   : > { %s221_s20 = scalar_lea.vmem (!%p2972_p9), [#allocation2], %s1704_s8  ;;  %p2973_p0 = scmp.ne.s32.totalorder (!%p2972_p9), %s2963_s21, 0 }
  0x7e   : > { %2351 = dma.done.wait (%p2973_p0), %s218_s12, 128  }
  0x7f   : > { %2353 = vsyncadd (%p2973_p0), %s218_s12, 4294967168  ;;  %p2974_p8 = scmp.eq.s32.totalorder %s2442_s19, 0 }
  0x81   : > { %2355 = dma.done.wait (%p2974_p8), [#allocation6], 6656   ;;  %p2975_p11 = pmov %p2974_p8 }
  0x82   : > { %p2976_p13 = pmov %p2974_p8 }
  0x83   : > { %2357 = vsyncadd (%p2975_p11), [#allocation6], 4294960640 }
  0x84   : > { %2359 = dma.done.wait (%p2976_p13), [#allocation9], 64   ;;  %p2977_p6 = pmov %p2974_p8 }
  0x85   : > { %v2390_v0 = vmov 0.0   ;;  %v2635_v1 = vld [vmem:[%s221_s20 + $0x4] sm:$0xf]  ;;  %v2637_v2 = vld [vmem:[%s221_s20] sm:$0xf]  ;;  %v2131_v5 = vld [vmem:[#allocation5] sm:$0xff]  }
  0x86   : > { %2361 = vsyncadd (%p2977_p6), [#allocation9], 4294967232  ;;  %1883 = vmatprep.subr.bf16.mxu1 %v2390_v0  ;;  %1863 = vmatprep.subr.bf16.mxu0 %v2390_v0  ;;  %v1710_v3 = vcombine.low %v2635_v1, %v2635_v1  ;;  %v1709_v4 = vcombine.low %v2637_v2, %v2637_v2  ;;  %v2132_v6 = vld [vmem:[#allocation5 + $0x8] sm:$0xff]   ;;  %vm2391_vm0 = vmmov 0   ;;  %v2134_v17 = vld [vmem:[#allocation5 + $0x20] sm:$0xff]   ;;  %s2392_s21 = smov 64  }
  0x87   : > { %1884 = vmatpush3.bf16.msra.mxu1 %v2131_v5  ;;  %1891 = vmatprep.mubr.msk.bf16.mxu1 %vm2391_vm0, %v2390_v0  ;;  %v2133_v20 = vld [vmem:[#allocation5 + $0x10] sm:$0xff]   ;;  %v2136_v21 = vld [vmem:[#allocation5 + $0x28] sm:$0xff]   ;;  %v2135_v24 = vld [vmem:[#allocation5 + $0x18] sm:$0xff]   ;;  %vm275_vm1 = vcmask 1040384   ;;  %vm276_vm2 = vsmask.f32 256 }
  0x88   : > { %v295_v7 = vshrl.u32 %v1710_v3, 16  ;;  %v298_v8 = vshll.u32 %v1710_v3, 16  ;;  %v266_v9 = vshrl.u32 %v1709_v4, 16  ;;  %v269_v10 = vshll.u32 %v1709_v4, 16  ;;  %1885 = vmatprep.subr.bf16.mxu1 %v2390_v0  ;;  %1871 = vmatprep.mubr.msk.bf16.mxu0 %vm2391_vm0, %v2390_v0  ;;  %v2137_v25 = vld [vmem:[#allocation5 + $0x30] sm:$0xff]   ;;  %v2138_v26 = vld [vmem:[#allocation5 + $0x38] sm:$0xff]   ;;  %vm2660_vm5 = vmand %vm275_vm1, %vm276_vm2 }
  0x89   : > { %1864 = vmatpush3.bf16.msra.mxu0 %v2134_v17  ;;  %vm279_vm3 = vcmask 1042432   ;;  %vm280_vm4 = vsmask.f32 2304  ;;  %vm350_vm7 = vcmask 1046528   ;;  %vm351_vm8 = vsmask.f32 6400 }
  0x8a   : > { %v297_v11 = vrot.slane %v295_v7, 7  ;;  %v307_v12 = vrot.slane %v298_v8, 2  ;;  %v268_v13 = vrot.slane %v266_v9, 7  ;;  %v284_v14 = vrot.slane %v269_v10, 2  ;;  %1865 = vmatprep.subr.bf16.mxu0 %v2390_v0  ;;  %vm2664_vm6 = vmand %vm279_vm3, %vm280_vm4  ;;  %v2139_v50 = vld [vmem:[#allocation5 + $0x60] sm:$0xff]   ;;  %v2141_v59 = vld [vmem:[#allocation5 + $0x68] sm:$0xff]  }
  0x8b   : > { %v306_v15 = vrot.slane %v295_v7, 1  ;;  %v283_v16 = vrot.slane %v266_v9, 1  ;;  %1886 = vmatpush3.bf16.msra.mxu1 %v2132_v6  ;;  %vm354_vm9 = vcmask 1041408   ;;  %vm352_vm10 = vmand %vm350_vm7, %vm351_vm8  ;;  %vm430_vm11 = vcmask 523264   ;;  %v2143_v5 = vld [vmem:[#allocation5 + $0x70] sm:$0xff]   ;;  %s1708_s23 = sshll.u32 %s2617_s10, 1 }
  0x8c   : > { %v300_v18 = vor.u32 %v298_v8, %v297_v11  ;;  %v271_v19 = vor.u32 %v269_v10, %v268_v13  ;;  %1887 = vmatprep.subr.bf16.mxu1 %v2390_v0  ;;  %vm355_vm12 = vsmask.f32 1280  ;;  %vm358_vm13 = vcmask 1044480   ;;  %s1799_s13 = sshll.u32 %s2442_s19, 5  ;;  %s257_s24 = scalar_lea.vmem [#allocation10], %s1708_s23 }
  0x8d   : > { %v308_v22 = vor.u32 %v307_v12, %v306_v15  ;;  %v285_v23 = vor.u32 %v284_v14, %v283_v16  ;;  %1866 = vmatpush3.bf16.msra.mxu0 %v2136_v21  ;;  %vm359_vm14 = vsmask.f32 4352  ;;  %vm362_vm15 = vcmask 1047552   ;;  %vm356_vm3 = vmand %vm354_vm9, %vm355_vm12  ;;  %v2140_v12 = vld [vmem:[#allocation5 + $0x40] sm:$0xff]   ;;  %v2144_v14 = vld [vmem:[#allocation5 + $0x78] sm:$0xff]   ;;  %s1595_s7 = sshll.u32 %s257_s24, 4  ;;  %s2910_s29 = scalar_lea.hbm %s2958_s4, %s1799_s13  ;;  %s2912_s7 = int_to_ptr.vmem [resolvable:$true] %s1595_s7 }
  0x8e   : > { %301 = vrot.lane.b32.xlu1 %v300_v18, %s2392_s21  ;;  %272 = vrot.lane.b32.xlu0 %v271_v19, %s2392_s21  ;;  %vm363_vm2 = vsmask.f32 7424  ;;  %vm360_vm4 = vmand %vm358_vm13, %vm359_vm14  ;;  %v2142_v16 = vld [vmem:[#allocation5 + $0x48] sm:$0xff]   ;;  %s1581_s19 = scalar_lea.sflag [#allocation4], %s2617_s10  ;;  %s2306_s14 = scalar_lea.vmem %s2912_s7, 32 }
  0x8f   : > { %1888 = vmatpush3.bf16.msra.mxu1 %v2133_v20  ;;  %1867 = vmatprep.subr.bf16.mxu0 %v2390_v0  ;;  %vm364_vm8 = vmand %vm362_vm15, %vm363_vm2  ;;  %p2307_p10 = scmp.ne.s32.totalorder %s2912_s7, %s2306_s14  ;;  %s2395_s30 = smov [#allocation10]  }
  0x90   : > { %1889 = vmatprep.subr.bf16.mxu1 %v2390_v0  ;;  %s2310_s5 = sshll.u32 %s2395_s30, 4  ;;  %s2311_s5 = int_to_ptr.vmem [resolvable:$false] %s2310_s5 }
  0x91   : > { %1868 = vmatpush3.bf16.msra.mxu0 %v2137_v25  ;;  %p2308_p3 = pnand %p2307_p10, %p2566_p5  ;;  %s2312_s6 = scalar_lea.vmem %s2311_s5, 64 }
  0x92   : > { %309 = vrot.lane.b32.xlu1 %v308_v22, %s2392_s21  ;;  %286 = vrot.lane.b32.xlu0 %v285_v23, %s2392_s21  ;;  %p2313_p12 = scmp.lt.s32.totalorder %s2912_s7, %s2311_s5  ;;  %p2314_p1 = scmp.lt.s32.totalorder %s2312_s6, %s2306_s14 }
  0x93   : > { %1890 = vmatpush3.bf16.msra.mxu1 %v2135_v24  ;;  %1869 = vmatprep.subr.bf16.mxu0 %v2390_v0  ;;  %p2309_p7 = pneg %p2308_p3 }
  0x94   : > { %1923 = vmatprep.subr.bf16.mxu1 %v2390_v0  ;;  %p2315_p2 = por %p2314_p1, %p2313_p12 }
  0x95   : > { %1870 = vmatpush3.bf16.msra.mxu0 %v2138_v26 }
  0x96   : > { %1903 = vmatprep.subr.bf16.mxu0 %v2390_v0  ;;  %p2316_p4 = pnand %p2315_p2, %p2309_p7 }
 0x100   : > { %v302_v29 = vpop.permute.xlu1 %301  ;;  %v273_v30 = vpop.permute.xlu0 %272 }
 0x101   : > { %v304_v31 = vsel %vm2660_vm5, 0, %v302_v29  ;;  %v278_v32 = vsel %vm2660_vm5, 0, %v273_v30  ;;  %v2145_v30 = vld [vmem:[#allocation5 + $0x50] sm:$0xff]  }
 0x102   : > { %v305_v33 = vsel %vm2664_vm6, %v304_v31, 0  ;;  %v282_v34 = vsel %vm2664_vm6, %v278_v32, 0 }
 0x103   : > { %v333_v35 = vshrl.u32 %v305_v33, 16  ;;  %v336_v36 = vshll.u32 %v305_v33, 16  ;;  %v315_v37 = vshrl.u32 %v282_v34, 16  ;;  %v318_v38 = vshll.u32 %v282_v34, 16 }
 0x104   : > { %v310_v39 = vpop.permute.xlu1 %309  ;;  %v287_v40 = vpop.permute.xlu0 %286 }
 0x105   : > { %v317_v41 = vrot.slane %v315_v37, 1  ;;  %v320_v42 = vrot.slane %v318_v38, 2  ;;  %v335_v43 = vrot.slane %v333_v35, 3  ;;  %v312_v44 = vsel %vm2660_vm5, 0, %v310_v39  ;;  %v2147_v38 = vld [vmem:[#allocation5 + $0xa0] sm:$0xff]  }
 0x106   : > { %v289_v45 = vsel %vm2660_vm5, 0, %v287_v40  ;;  %v338_v46 = vrot.slane %v336_v36, 4  ;;  %v313_v48 = vsel %vm2664_vm6, %v312_v44, 0  ;;  %v2146_v36 = vld [vmem:[#allocation5 + $0x58] sm:$0xff]  }
 0x107   : > { %v321_v47 = vor.u32 %v320_v42, %v317_v41  ;;  %v290_v49 = vsel %vm2664_vm6, %v289_v45, 0  ;;  %v342_v51 = vshll.u32 %v313_v48, 16  ;;  %v345_v61 = vshrl.u32 %v313_v48, 16  ;;  %v2149_v41 = vld [vmem:[#allocation5 + $0xa8] sm:$0xff]   ;;  %v2152_v48 = vld [vmem:[#allocation5 + $0xb8] sm:$0xff]  }
 0x108   : > { %v324_v52 = vshrl.u32 %v290_v49, 16  ;;  %v327_v53 = vshll.u32 %v290_v49, 16  ;;  %v339_v57 = vor.u32 %v338_v46, %v335_v43  ;;  %v2151_v43 = vld [vmem:[#allocation5 + $0xb0] sm:$0xff]  }
 0x109   : > { %v2685_v54 = vsel %vm352_vm10, 0, %v321_v47  ;;  %v344_v60 = vrot.slane %v342_v51, 1 }
 0x10a   : > { %v326_v55 = vrot.slane %v324_v52, 6  ;;  %v329_v56 = vrot.slane %v327_v53, 7  ;;  %1892 = vmatmul.mubr.msk.bf16.vlgmr.msra.gmra.mrb[0].mxu1 %vm430_vm11, %v2685_v54  ;;  %v2694_v58 = vshll.u32 %v2685_v54, 16  ;;  %v2706_v8 = vshrl.u32 %v2685_v54, 16  ;;  %v2153_v52 = vld [vmem:[#allocation5 + $0x90] sm:$0xff]  }
 0x10b   : > { %1895 = vmatprep.mubr.msk.bf16.mxu1 %vm2391_vm0, %v2390_v0  ;;  %1924 = vmatpush3.bf16.msra.mxu1 %v2139_v50  ;;  %v347_v6 = vor.u32 %v345_v61, %v344_v60  ;;  %v1018_v19 = vrot.slane %v2685_v54, 6  ;;  %v1240_v23 = vrot.slane %v2685_v54, 7  ;;  %v696_v35 = vrot.slane %v2685_v54, 3  ;;  %v2150_v50 = vld [vmem:[#allocation5 + $0x88] sm:$0xff]  }
 0x10c   : > { %v330_v62 = vor.u32 %v329_v56, %v326_v55  ;;  %1925 = vmatprep.subr.bf16.mxu1 %v2390_v0  ;;  %v388_v4 = vrot.slane %v2694_v58, 1  ;;  %v591_v46 = vrot.slane %v2685_v54, 1  ;;  %v913_v56 = vrot.slane %v2685_v54, 4  ;;  %v2157_v61 = vld [vmem:[#allocation5 + $0xe8] sm:$0xff]  }
 0x10d   : > { %v2719_v13 = vsel %vm2664_vm6, %v347_v6, 0  ;;  %vm912_vm6 = vcmask 1043456  }
 0x10e   : > { %v357_v63 = vsel %vm356_vm3, %v321_v47, %v330_v62  ;;  %v389_v10 = vor.u32 %v388_v4, %v2706_v8  ;;  %v2730_v18 = vshll.u32 %v2719_v13, 16  ;;  %v1021_v21 = vrot.slane %v2719_v13, 6  ;;  %v2148_v47 = vld [vmem:[#allocation5 + $0x80] sm:$0xff]  }
 0x10f   : > { %v361_v3 = vsel %vm360_vm4, %v357_v63, %v339_v57  ;;  %1926 = vmatpush3.bf16.msra.mxu1 %v2141_v59  ;;  %v1243_v25 = vrot.slane %v2719_v13, 7  ;;  %v2770_v37 = vshrl.u32 %v2719_v13, 16  ;;  %v699_v42 = vrot.slane %v2719_v13, 3  ;;  %v2154_v57 = vld [vmem:[#allocation5 + $0x98] sm:$0xff]   ;;  %v2155_v59 = vld [vmem:[#allocation5 + $0xe0] sm:$0xff]  }
 0x110   : > { %v2702_v7 = vsel %vm364_vm8, %v361_v3, %v344_v60  ;;  %1927 = vmatprep.subr.bf16.mxu1 %v2390_v0  ;;  %v401_v29 = vrot.slane %v2730_v18, 1  ;;  %v594_v51 = vrot.slane %v2719_v13, 1  ;;  %v916_v54 = vrot.slane %v2719_v13, 4 }
 0x111   : > { %v2709_v9 = vshll.u32 %v2702_v7, 16  ;;  %v2727_v17 = vshrl.u32 %v2702_v7, 16  ;;  %v1019_v20 = vrot.slane %v2702_v7, 6  ;;  %v1241_v24 = vrot.slane %v2702_v7, 7 }
 0x112   : > { %1896 = vmatmul.mubr.msk.bf16.gmra.mrb[4].mxu1 %vm430_vm11, %v2702_v7  ;;  %v697_v34 = vrot.slane %v2702_v7, 3  ;;  %v405_v40 = vor.u32 %v2770_v37, %v401_v29  ;;  %v592_v45 = vrot.slane %v2702_v7, 1  ;;  %v914_v55 = vrot.slane %v2702_v7, 4 }
 0x113   : > { %v393_v11 = vrot.slane %v2709_v9, 1  ;;  %1899 = vmatprep.mubr.msk.bf16.mxu1 %vm2391_vm0, %v2390_v0  ;;  %1928 = vmatpush3.bf16.msra.mxu1 %v2143_v5  ;;  %v2744_v26 = vsel %vm354_vm9, %v1018_v19, %v1019_v20  ;;  %v2749_v28 = vsel %vm354_vm9, %v1019_v20, %v1021_v21  ;;  %v2755_v31 = vsel %vm275_vm1, %v1240_v23, %v1241_v24  ;;  %v2159_v5 = vld [vmem:[#allocation5 + $0xf0] sm:$0xff]   ;;  %v2158_v19 = vld [vmem:[#allocation5 + $0xc8] sm:$0xff]  }
 0x114   : > { %1929 = vmatprep.subr.bf16.mxu1 %v2390_v0  ;;  %v2761_v32 = vsel %vm275_vm1, %v1241_v24, %v1243_v25  ;;  %v698_v39 = vsel %vm358_vm13, %v696_v35, %v697_v34  ;;  %v700_v44 = vsel %vm358_vm13, %v697_v34, %v699_v42  ;;  %v593_v49 = vsel %vm350_vm7, %v591_v46, %v592_v45  ;;  %v2161_v24 = vld [vmem:[#allocation5 + $0xd0] sm:$0xff]   ;;  %v2182_v46 = vld [vmem:[#allocation7 + $0x44] ss:$8 sps:$4 sm:$0xff]  }
 0x115   : > { %v394_v15 = vsel %vm363_vm2, %v389_v10, %v393_v11  ;;  %v397_v22 = vor.u32 %v2727_v17, %v393_v11  ;;  %v595_v53 = vsel %vm350_vm7, %v592_v45, %v594_v51  ;;  %v915_v60 = vsel %vm912_vm6, %v913_v56, %v914_v55  ;;  %v2156_v11 = vld [vmem:[#allocation5 + $0xc0] sm:$0xff]   ;;  %v2189_v56 = vld [vmem:[#allocation7 + $0x70] ss:$8 sps:$4 sm:$0xff]  }
 0x116   : > { %1872 = vmatmul.mubr.msk.bf16.vlgmr.msra.gmra.mrb[0].mxu0 %vm430_vm11, %v394_v15  ;;  %v804_v62 = vrot.slane %v2727_v17, 3  ;;  %v805_v63 = vrot.slane %v2709_v9, 4  ;;  %v801_v3 = vrot.slane %v2706_v8, 3  ;;  %v802_v4 = vrot.slane %v2694_v58, 4  ;;  %v2174_v45 = vld [vmem:[#allocation7 + $0x20] ss:$8 sps:$4 sm:$0xff]  }
 0x117   : > { %1904 = vmatpush3.bf16.msra.mxu0 %v2140_v12  ;;  %1875 = vmatprep.mubr.msk.bf16.mxu0 %vm2391_vm0, %v2390_v0  ;;  %v402_v33 = vsel %vm363_vm2, %v397_v22, %v401_v29  ;;  %v917_v6 = vsel %vm912_vm6, %v914_v55, %v916_v54  ;;  %v2160_v12 = vld [vmem:[#allocation5 + $0xf8] sm:$0xff]   ;;  %v808_v15 = vrot.slane %v2770_v37, 3  ;;  %v1126_v22 = vrot.slane %v2727_v17, 6 }
 0x118   : > { %1905 = vmatprep.subr.bf16.mxu0 %v2390_v0  ;;  %1930 = vmatpush3.bf16.msra.mxu1 %v2144_v14  ;;  %v806_v7 = vor.u32 %v805_v63, %v804_v62  ;;  %v803_v10 = vor.u32 %v802_v4, %v801_v3  ;;  %v1127_v23 = vrot.slane %v2709_v9, 7  ;;  %v1123_v29 = vrot.slane %v2706_v8, 6  ;;  %v2162_v17 = vld [vmem:[#allocation5 + $0xd8] sm:$0xff]  }
 0x119   : > { %1963 = vmatprep.subr.bf16.mxu1 %v2390_v0  ;;  %v1130_v8 = vrot.slane %v2770_v37, 6  ;;  %v2163_v37 = vld [vmem:[#allocation5 + $0x100] sm:$0xff]  }
 0x11a   : > { %1900 = vmatmul.mubr.msk.bf16.gmra.mrb[8].mxu1 %vm430_vm11, %v2719_v13  ;;  %v807_v14 = vsel %vm359_vm14, %v803_v10, %v806_v7  ;;  %v1128_v34 = vor.u32 %v1127_v23, %v1126_v22  ;;  %v2180_v13 = vld [vmem:[#allocation7 + $0x40] ss:$8 sps:$4 sm:$0xff]  }
 0x11b   : > { %1906 = vmatpush3.bf16.msra.mxu0 %v2142_v16  ;;  %1931 = vmatprep.mubr.msk.bf16.mxu1 %vm2391_vm0, %v2390_v0  ;;  %v809_v16 = vrot.slane %v2730_v18, 4 }
 0x11c   : > { %1907 = vmatprep.subr.bf16.mxu0 %v2390_v0 }
 0x11d   : > { %v810_v20 = vor.u32 %v809_v16, %v808_v15 }
 0x11e   : > { %1876 = vmatmul.mubr.msk.bf16.gmra.mrb[4].mxu0 %vm430_vm11, %v402_v33 }
 0x11f   : > { %1908 = vmatpush3.bf16.msra.mxu0 %v2145_v30  ;;  %1879 = vmatprep.mubr.msk.bf16.mxu0 %vm2391_vm0, %v2390_v0  ;;  %v1124_v30 = vrot.slane %v2694_v58, 7  ;;  %v811_v33 = vsel %vm359_vm14, %v806_v7, %v810_v20  ;;  %v1131_v58 = vrot.slane %v2730_v18, 7  ;;  %v2393_v18 = vmov 0  }
 0x120   : > { %1909 = vmatprep.subr.bf16.mxu0 %v2390_v0 }
 0x121   : > { %v1125_v9 = vor.u32 %v1124_v30, %v1123_v29 }
 0x122   : > { %1932 = vmatmul.mubr.msk.bf16.vlgmr.msra.gmra.mrb[12].mxu1 %vm430_vm11, %v698_v39  ;;  %v1137_v39 = vrot.slane %v2393_v18, 7 }
 0x123   : > { %1910 = vmatpush3.bf16.msra.mxu0 %v2146_v36  ;;  %1935 = vmatprep.mubr.msk.bf16.mxu1 %vm2391_vm0, %v2390_v0  ;;  %v1129_v35 = vsel %vm355_vm12, %v1125_v9, %v1128_v34  ;;  %v1132_v36 = vor.u32 %v1131_v58, %v1130_v8 }
 0x124   : > { %1964 = vmatpush3.bf16.msra.mxu1 %v2147_v38  ;;  %1943 = vmatprep.subr.bf16.mxu0 %v2390_v0 }
 0x125   : > { %1965 = vmatprep.subr.bf16.mxu1 %v2390_v0  ;;  %v1133_v38 = vsel %vm355_vm12, %v1128_v34, %v1132_v36 }
 0x126   : > { %1880 = vmatmul.mubr.msk.bf16.gmra.mrb[8].mxu0 %vm430_vm11, %v405_v40  ;;  %v2164_v40 = vld [vmem:[#allocation5 + $0x108] sm:$0xff]  }
 0x127   : > { %1911 = vmatprep.mubr.msk.bf16.mxu0 %vm2391_vm0, %v2390_v0 }
 0x128   : > { %1966 = vmatpush3.bf16.msra.mxu1 %v2149_v41  ;;  %v1138_v41 = vsel %vm355_vm12, %v1132_v36, %v1137_v39 }
 0x129   : > { %1967 = vmatprep.subr.bf16.mxu1 %v2390_v0 }
 0x12a   : > { %1936 = vmatmul.mubr.msk.bf16.gmra.mrb[16].mxu1 %vm430_vm11, %v700_v44  ;;  %v2176_v44 = vld [vmem:[#allocation7 + $0x24] ss:$8 sps:$4 sm:$0xff]  }
 0x12b   : > { %1939 = vmatprep.mubr.msk.bf16.mxu1 %vm2391_vm0, %v2390_v0 }
 0x12c   : > { %1968 = vmatpush3.bf16.msra.mxu1 %v2151_v43  ;;  %v1775_v43 = vcombine.low %v2637_v2, %v2635_v1  ;;  %v1246_v1 = vsel %vm275_vm1, %v1243_v25, %v1137_v39  ;;  %v2168_v2 = vld [vmem:[#allocation7] ss:$8 sps:$4 sm:$0xff]   ;;  %v2183_v25 = vld [vmem:[#allocation7 + $0x50] ss:$8 sps:$4 sm:$0xff]  }
 0x12d   : > { %1969 = vmatprep.subr.bf16.mxu1 %v2390_v0 }
 0x12e   : > { %1912 = vmatmul.mubr.msk.bf16.vlgmr.msra.gmra.mrb[12].mxu0 %vm430_vm11, %v593_v49  ;;  %1375 = vrot.lane.b32.xlu0 %v1775_v43, %s2392_s21 }
 0x12f   : > { %1944 = vmatpush3.bf16.msra.mxu0 %v2148_v47  ;;  %1915 = vmatprep.mubr.msk.bf16.mxu0 %vm2391_vm0, %v2390_v0  ;;  %v2185_v47 = vld [vmem:[#allocation7 + $0x54] ss:$8 sps:$4 sm:$0xff]  }
 0x130   : > { %1945 = vmatprep.subr.bf16.mxu0 %v2390_v0  ;;  %1970 = vmatpush3.bf16.msra.mxu1 %v2152_v48  ;;  %v2188_v48 = vld [vmem:[#allocation7 + $0x64] ss:$8 sps:$4 sm:$0xff]  }
 0x131   : > { %2003 = vmatprep.subr.bf16.mxu1 %v2390_v0 }
 0x132   : > { %1940 = vmatmul.mubr.msk.bf16.gmra.mrb[20].mxu1 %vm430_vm11, %v699_v42  ;;  %v2165_v42 = vld [vmem:[#allocation5 + $0x110] sm:$0xff]  }
 0x133   : > { %1946 = vmatpush3.bf16.msra.mxu0 %v2150_v50  ;;  %1971 = vmatprep.mubr.msk.bf16.mxu1 %vm2391_vm0, %v2390_v0  ;;  %v2186_v50 = vld [vmem:[#allocation7 + $0x60] ss:$8 sps:$4 sm:$0xff]  }
 0x134   : > { %1947 = vmatprep.subr.bf16.mxu0 %v2390_v0 }
 0x136   : > { %1916 = vmatmul.mubr.msk.bf16.gmra.mrb[16].mxu0 %vm430_vm11, %v595_v53 }
 0x137   : > { %1948 = vmatpush3.bf16.msra.mxu0 %v2153_v52  ;;  %1919 = vmatprep.mubr.msk.bf16.mxu0 %vm2391_vm0, %v2390_v0  ;;  %v2191_v52 = vld [vmem:[#allocation7 + $0x74] ss:$8 sps:$4 sm:$0xff]  }
 0x138   : > { %1949 = vmatprep.subr.bf16.mxu0 %v2390_v0 }
 0x13a   : > { %1972 = vmatmul.mubr.msk.bf16.vlgmr.msra.gmra.mrb[24].mxu1 %vm430_vm11, %v915_v60 }
 0x13b   : > { %1950 = vmatpush3.bf16.msra.mxu0 %v2154_v57  ;;  %1975 = vmatprep.mubr.msk.bf16.mxu1 %vm2391_vm0, %v2390_v0 }
 0x13c   : > { %2004 = vmatpush3.bf16.msra.mxu1 %v2155_v59  ;;  %1983 = vmatprep.subr.bf16.mxu0 %v2390_v0 }
 0x13d   : > { %2005 = vmatprep.subr.bf16.mxu1 %v2390_v0 }
 0x13e   : > { %1920 = vmatmul.mubr.msk.bf16.gmra.mrb[20].mxu0 %vm430_vm11, %v594_v51 }
 0x13f   : > { %1951 = vmatprep.mubr.msk.bf16.mxu0 %vm2391_vm0, %v2390_v0 }
 0x140   : > { %2006 = vmatpush3.bf16.msra.mxu1 %v2157_v61 }
 0x141   : > { %2007 = vmatprep.subr.bf16.mxu1 %v2390_v0 }
 0x142   : > { %1976 = vmatmul.mubr.msk.bf16.gmra.mrb[28].mxu1 %vm430_vm11, %v917_v6 }
 0x143   : > { %1979 = vmatprep.mubr.msk.bf16.mxu1 %vm2391_vm0, %v2390_v0 }
 0x144   : > { %2008 = vmatpush3.bf16.msra.mxu1 %v2159_v5 }
 0x145   : > { %2009 = vmatprep.subr.bf16.mxu1 %v2390_v0 }
 0x146   : > { %1952 = vmatmul.mubr.msk.bf16.vlgmr.msra.gmra.mrb[24].mxu0 %vm430_vm11, %v807_v14 }
 0x147   : > { %1984 = vmatpush3.bf16.msra.mxu0 %v2156_v11  ;;  %1955 = vmatprep.mubr.msk.bf16.mxu0 %vm2391_vm0, %v2390_v0 }
 0x148   : > { %1985 = vmatprep.subr.bf16.mxu0 %v2390_v0  ;;  %2010 = vmatpush3.bf16.msra.mxu1 %v2160_v12 }
 0x14a   : > { %1980 = vmatmul.mubr.msk.bf16.gmra.mrb[32].mxu1 %vm430_vm11, %v916_v54 }
 0x14b   : > { %1986 = vmatpush3.bf16.msra.mxu0 %v2158_v19  ;;  %2011 = vmatprep.mubr.msk.bf16.mxu1 %vm2391_vm0, %v2390_v0 }
 0x14c   : > { %1987 = vmatprep.subr.bf16.mxu0 %v2390_v0 }
 0x14e   : > { %1956 = vmatmul.mubr.msk.bf16.gmra.mrb[28].mxu0 %vm430_vm11, %v811_v33 }
 0x14f   : > { %1988 = vmatpush3.bf16.msra.mxu0 %v2161_v24  ;;  %1959 = vmatprep.mubr.msk.bf16.mxu0 %vm2391_vm0, %v2390_v0 }
 0x150   : > { %1989 = vmatprep.subr.bf16.mxu0 %v2390_v0 }
 0x152   : > { %2012 = vmatmul.mubr.msk.bf16.vlgmr.msra.gmra.mrb[36].mxu1 %vm430_vm11, %v1129_v35 }
 0x153   : > { %1990 = vmatpush3.bf16.msra.mxu0 %v2162_v17  ;;  %2015 = vmatprep.mubr.msk.bf16.mxu1 %vm2391_vm0, %v2390_v0 }
 0x154   : > { %2023 = vmatprep.subr.bf16.mxu0 %v2390_v0 }
 0x156   : > { %1960 = vmatmul.mubr.msk.bf16.gmra.mrb[32].mxu0 %vm430_vm11, %v810_v20 }
 0x157   : > { %1991 = vmatprep.mubr.msk.bf16.mxu0 %vm2391_vm0, %v2390_v0 }
 0x15a   : > { %2016 = vmatmul.mubr.msk.bf16.gmra.mrb[40].mxu1 %vm430_vm11, %v1133_v38 }
 0x15b   : > { %2019 = vmatprep.mubr.msk.bf16.mxu1 %vm2391_vm0, %v2390_v0 }
 0x15e   : > { %1992 = vmatmul.mubr.msk.bf16.vlgmr.msra.gmra.mrb[36].mxu0 %vm430_vm11, %v2744_v26  ;;  %v2166_v26 = vld [vmem:[#allocation5 + $0x118] sm:$0xff]  }
 0x15f   : > { %2024 = vmatpush3.bf16.msra.mxu0 %v2163_v37  ;;  %1995 = vmatprep.mubr.msk.bf16.mxu0 %vm2391_vm0, %v2390_v0 }
 0x160   : > { %2025 = vmatprep.subr.bf16.mxu0 %v2390_v0 }
 0x162   : > { %2020 = vmatmul.mubr.msk.bf16.gmra.mrb[44].mxu1 %vm430_vm11, %v1138_v41 }
 0x163   : > { %2026 = vmatpush3.bf16.msra.mxu0 %v2164_v40  ;;  %1522 = vmatprep.mubr.bf16.mxu1 %v2393_v18 }
 0x164   : > { %2027 = vmatprep.subr.bf16.mxu0 %v2390_v0 }
 0x166   : > { %1996 = vmatmul.mubr.msk.bf16.gmra.mrb[40].mxu0 %vm430_vm11, %v2749_v28  ;;  %v2171_v28 = vld [vmem:[#allocation7 + $0x10] ss:$8 sps:$4 sm:$0xff]  }
 0x167   : > { %2028 = vmatpush3.bf16.msra.mxu0 %v2165_v42  ;;  %1999 = vmatprep.mubr.msk.bf16.mxu0 %vm2391_vm0, %v2390_v0 }
 0x168   : > { %2029 = vmatprep.subr.bf16.mxu0 %v2390_v0 }
 0x16b   : > { %2030 = vmatpush3.bf16.msra.mxu0 %v2166_v26 }
 0x16e   : > { %2000 = vmatmul.mubr.msk.bf16.gmra.mrb[44].mxu0 %vm430_vm11, %v1021_v21  ;;  %v2170_v21 = vld [vmem:[#allocation7 + $0x4] ss:$8 sps:$4 sm:$0xff]  }
 0x16f   : > { %2031 = vmatprep.mubr.msk.bf16.mxu0 %vm2391_vm0, %v2390_v0  ;;  %1490 = vmatprep.subr.bf16.mxu1 %v2170_v21 }
 0x170   : > { %1491 = vmatpush1.bf16.msra.mxu1 %v2168_v2 }
 0x176   : > { %2032 = vmatmul.mubr.msk.bf16.vlgmr.msra.gmra.mrb[48].mxu0 %vm430_vm11, %v2755_v31  ;;  %v2173_v31 = vld [vmem:[#allocation7 + $0x14] ss:$8 sps:$4 sm:$0xff]  }
 0x177   : > { %2035 = vmatprep.mubr.msk.bf16.mxu0 %vm2391_vm0, %v2390_v0  ;;  %1492 = vmatprep.subr.bf16.mxu1 %v2173_v31 }
 0x178   : > { %1493 = vmatpush1.bf16.msra.mxu1 %v2171_v28 }
 0x179   : > { %1494 = vmatprep.subr.bf16.mxu1 %v2176_v44 }
 0x17c   : > { %1495 = vmatpush1.bf16.msra.mxu1 %v2174_v45 }
 0x17e   : > { %2036 = vmatmul.mubr.msk.bf16.gmra.mrb[52].mxu0 %vm430_vm11, %v2761_v32  ;;  %v2177_v32 = vld [vmem:[#allocation7 + $0x30] ss:$8 sps:$4 sm:$0xff]  }
 0x17f   : > { %2039 = vmatprep.mubr.msk.bf16.mxu0 %vm2391_vm0, %v2390_v0  ;;  %v2179_v0 = vld [vmem:[#allocation7 + $0x34] ss:$8 sps:$4 sm:$0xff]   ;;  %vm1574_vm0 = vcmask 1041409  }
 0x180   : > { %1496 = vmatprep.subr.bf16.mxu1 %v2179_v0 }
 0x181   : > { %1497 = vmatpush1.bf16.msra.mxu1 %v2177_v32 }
 0x182   : > { %1498 = vmatprep.subr.bf16.mxu1 %v2182_v46 }
 0x185   : > { %1499 = vmatpush1.bf16.msra.mxu1 %v2180_v13 }
 0x186   : > { %2040 = vmatmul.mubr.msk.bf16.gmra.mrb[56].mxu0 %vm430_vm11, %v1246_v1  ;;  %1500 = vmatprep.subr.bf16.mxu1 %v2185_v47 }
 0x189   : > { %1501 = vmatpush1.bf16.msra.mxu1 %v2183_v25 }
 0x18a   : > { %1502 = vmatprep.subr.bf16.mxu1 %v2188_v48 }
 0x18d   : > { %1503 = vmatpush1.bf16.msra.mxu1 %v2186_v50 }
 0x18e   : > { %1504 = vmatprep.subr.bf16.mxu1 %v2191_v52 }
 0x191   : > { %1505 = vmatpush1.bf16.msra.mxu1 %v2189_v56 }
 0x1dd   : > { %v559_v49 = vpop.f32.mrb[0].mxu1 }
 0x1de   : > { %v1893_v51 = vpop.f32.mrb[1].mxu1 }
 0x1df   : > { %v562_v53 = vpop.f32.mrb[2].mxu1 }
 0x1e0   : > { %v1894_v55 = vpop.f32.mrb[3].mxu1 }
 0x1e5   : > { %v567_v57 = vpop.f32.mrb[4].mxu1 }
 0x1e6   : > { %v1897_v59 = vpop.f32.mrb[5].mxu1 }
 0x1e7   : > { %v570_v60 = vpop.f32.mrb[6].mxu1 }
 0x1e8   : > { %v1898_v61 = vpop.f32.mrb[7].mxu1 }
 0x1e9   : > { %v474_v54 = vpop.f32.mrb[0].mxu0 }
 0x1ea   : > { %v560_v62 = vadd.f32 %v559_v49, %v474_v54  ;;  %v1873_v63 = vpop.f32.mrb[1].mxu0 }
 0x1eb   : > { %v477_v3 = vpop.f32.mrb[2].mxu0 }
 0x1ec   : > { %v563_v4 = vadd.f32 %v562_v53, %v477_v3  ;;  %v1874_v5 = vpop.f32.mrb[3].mxu0 }
 0x1ed   : > { %v575_v6 = vpop.f32.mrb[8].mxu1 }
 0x1ee   : > { %v1901_v7 = vpop.f32.mrb[9].mxu1 }
 0x1ef   : > { %v577_v10 = vpop.f32.mrb[10].mxu1 }
 0x1f0   : > { %v1902_v11 = vpop.f32.mrb[11].mxu1 }
 0x1f1   : > { %v482_v12 = vpop.f32.mrb[4].mxu0 }
 0x1f2   : > { %v568_v14 = vadd.f32 %v567_v57, %v482_v12  ;;  %v1877_v15 = vpop.f32.mrb[5].mxu0 }
 0x1f3   : > { %v485_v16 = vpop.f32.mrb[6].mxu0 }
 0x1f4   : > { %v571_v19 = vadd.f32 %v570_v60, %v485_v16  ;;  %v1878_v20 = vpop.f32.mrb[7].mxu0 }
 0x1f5   : > { %v768_v22 = vpop.f32.mrb[12].mxu1 }
 0x1f6   : > { %v1933_v23 = vpop.f32.mrb[13].mxu1 }
 0x1f7   : > { %v771_v24 = vpop.f32.mrb[14].mxu1 }
 0x1f8   : > { %v1934_v29 = vpop.f32.mrb[15].mxu1 }
 0x1f9   : > { %v490_v30 = vpop.f32.mrb[8].mxu0 }
 0x1fa   : > { %v1881_v33 = vpop.f32.mrb[9].mxu0 }
 0x1fb   : > { %v492_v34 = vpop.f32.mrb[10].mxu0 }
 0x1fc   : > { %v1882_v9 = vpop.f32.mrb[11].mxu0 }
 0x1fd   : > { %v776_v17 = vpop.f32.mrb[16].mxu1 }
 0x1fe   : > { %v1937_v35 = vpop.f32.mrb[17].mxu1 }
 0x1ff   : > { %v779_v8 = vpop.f32.mrb[18].mxu1 }
 0x200   : > { %v1938_v58 = vpop.f32.mrb[19].mxu1 }
 0x201   : > { %v663_v36 = vpop.f32.mrb[12].mxu0 }
 0x202   : > { %v684_v38 = vadd.f32 %v663_v36, %v560_v62  ;;  %v1913_v37 = vpop.f32.mrb[13].mxu0 }
 0x203   : > { %v666_v18 = vpop.f32.mrb[14].mxu0 }
 0x204   : > { %v685_v39 = vadd.f32 %v666_v18, %v563_v4  ;;  %v1914_v40 = vpop.f32.mrb[15].mxu0  ;;  %v789_v41 = vadd.f32 %v768_v22, %v684_v38 }
 0x205   : > { %v784_v42 = vpop.f32.mrb[20].mxu1 }
 0x206   : > { %v1941_v26 = vpop.f32.mrb[21].mxu1  ;;  %v790_v43 = vadd.f32 %v771_v24, %v685_v39 }
 0x207   : > { %v786_v1 = vpop.f32.mrb[22].mxu1 }
 0x208   : > { %v1942_v2 = vpop.f32.mrb[23].mxu1 }
 0x209   : > { %v671_v21 = vpop.f32.mrb[16].mxu0 }
 0x20a   : > { %v686_v28 = vadd.f32 %v671_v21, %v568_v14  ;;  %v1917_v31 = vpop.f32.mrb[17].mxu0 }
 0x20b   : > { %v674_v44 = vpop.f32.mrb[18].mxu0 }
 0x20c   : > { %v687_v45 = vadd.f32 %v674_v44, %v571_v19  ;;  %v1918_v32 = vpop.f32.mrb[19].mxu0  ;;  %v791_v0 = vadd.f32 %v776_v17, %v686_v28 }
 0x20d   : > { %v985_v46 = vpop.f32.mrb[24].mxu1 }
 0x20e   : > { %v1973_v13 = vpop.f32.mrb[25].mxu1  ;;  %v792_v25 = vadd.f32 %v779_v8, %v687_v45 }
 0x20f   : > { %v988_v47 = vpop.f32.mrb[26].mxu1 }
 0x210   : > { %v1974_v48 = vpop.f32.mrb[27].mxu1 }
 0x211   : > { %v679_v49 = vpop.f32.mrb[20].mxu0 }
 0x212   : > { %v1921_v50 = vpop.f32.mrb[21].mxu0 }
 0x213   : > { %v681_v51 = vpop.f32.mrb[22].mxu0 }
 0x214   : > { %v1922_v52 = vpop.f32.mrb[23].mxu0  ;;  %v1774_v51 = vld [vmem:[#allocation8] ss:$0 sm:$0xff] }
 0x215   : > { %v993_v53 = vpop.f32.mrb[28].mxu1 }
 0x216   : > { %v1977_v55 = vpop.f32.mrb[29].mxu1 }
 0x217   : > { %v996_v56 = vpop.f32.mrb[30].mxu1 }
 0x218   : > { %v1978_v57 = vpop.f32.mrb[31].mxu1 }
 0x219   : > { %v879_v59 = vpop.f32.mrb[24].mxu0 }
 0x21a   : > { %v900_v60 = vadd.f32 %v879_v59, %v789_v41  ;;  %v1953_v61 = vpop.f32.mrb[25].mxu0 }
 0x21b   : > { %v882_v54 = vpop.f32.mrb[26].mxu0 }
 0x21c   : > { %v901_v62 = vadd.f32 %v882_v54, %v790_v43  ;;  %v1954_v63 = vpop.f32.mrb[27].mxu0  ;;  %v1006_v3 = vadd.f32 %v985_v46, %v900_v60 }
 0x21d   : > { %v1001_v4 = vpop.f32.mrb[32].mxu1 }
 0x21e   : > { %v1981_v5 = vpop.f32.mrb[33].mxu1  ;;  %v1007_v6 = vadd.f32 %v988_v47, %v901_v62 }
 0x21f   : > { %v1003_v7 = vpop.f32.mrb[34].mxu1 }
 0x220   : > { %v1982_v10 = vpop.f32.mrb[35].mxu1 }
 0x221   : > { %v887_v11 = vpop.f32.mrb[28].mxu0 }
 0x222   : > { %v902_v12 = vadd.f32 %v887_v11, %v791_v0  ;;  %v1957_v14 = vpop.f32.mrb[29].mxu0 }
 0x223   : > { %v890_v15 = vpop.f32.mrb[30].mxu0 }
 0x224   : > { %v903_v16 = vadd.f32 %v890_v15, %v792_v25  ;;  %v1958_v19 = vpop.f32.mrb[31].mxu0  ;;  %v1008_v20 = vadd.f32 %v993_v53, %v902_v12 }
 0x225   : > { %v1206_v22 = vpop.f32.mrb[36].mxu1 }
 0x226   : > { %v2013_v23 = vpop.f32.mrb[37].mxu1  ;;  %v1009_v24 = vadd.f32 %v996_v56, %v903_v16 }
 0x227   : > { %v1209_v29 = vpop.f32.mrb[38].mxu1 }
 0x228   : > { %v2014_v30 = vpop.f32.mrb[39].mxu1 }
 0x229   : > { %v895_v33 = vpop.f32.mrb[32].mxu0 }
 0x22a   : > { %v1961_v34 = vpop.f32.mrb[33].mxu0 }
 0x22b   : > { %v897_v9 = vpop.f32.mrb[34].mxu0 }
 0x22c   : > { %v1962_v17 = vpop.f32.mrb[35].mxu0 }
 0x22d   : > { %v1214_v35 = vpop.f32.mrb[40].mxu1 }
 0x22e   : > { %v2017_v8 = vpop.f32.mrb[41].mxu1 }
 0x22f   : > { %v1217_v58 = vpop.f32.mrb[42].mxu1 }
 0x230   : > { %v2018_v36 = vpop.f32.mrb[43].mxu1 }
 0x231   : > { %v1090_v38 = vpop.f32.mrb[36].mxu0  ;;  %v1400_v36 = vlaneseq }
 0x232   : > { %v1111_v37 = vadd.f32 %v1090_v38, %v1006_v3  ;;  %v1993_v18 = vpop.f32.mrb[37].mxu0 }
 0x233   : > { %v1093_v39 = vpop.f32.mrb[38].mxu0  ;;  %v1401_v38 = vshrl.u32 %v1400_v36, 7  ;;  %v1398_v18 = vld [vmem:[#allocation8 + $0x1] ss:$2 sm:$0x3] }
 0x234   : > { %v1112_v40 = vadd.f32 %v1093_v39, %v1007_v6  ;;  %v1994_v41 = vpop.f32.mrb[39].mxu0  ;;  %v1227_v42 = vadd.f32 %v1206_v22, %v1111_v37 }
 0x235   : > { %v1222_v26 = vpop.f32.mrb[44].mxu1  ;;  %v1402_v37 = vsub.s32 0, %v1401_v38  ;;  %v1406_v39 = vsub.s32 1, %v1401_v38 }
 0x236   : > { %v2021_v43 = vpop.f32.mrb[45].mxu1  ;;  %v1228_v1 = vadd.f32 %v1209_v29, %v1112_v40 }
 0x237   : > { %v1224_v2 = vpop.f32.mrb[46].mxu1  ;;  %v1403_v40 = vrot.slane %v1398_v18, %v1402_v37  ;;  %v1407_v41 = vrot.slane %v1398_v18, %v1406_v39 }
 0x238   : > { %v2022_v21 = vpop.f32.mrb[47].mxu1 }
 0x239   : > { %v1098_v28 = vpop.f32.mrb[40].mxu0 }
 0x23a   : > { %v1113_v31 = vadd.f32 %v1098_v28, %v1008_v20  ;;  %v1997_v44 = vpop.f32.mrb[41].mxu0 }
 0x23b   : > { %v1101_v45 = vpop.f32.mrb[42].mxu0 }
 0x23c   : > { %v1114_v32 = vadd.f32 %v1101_v45, %v1009_v24  ;;  %v1998_v0 = vpop.f32.mrb[43].mxu0  ;;  %v1229_v46 = vadd.f32 %v1214_v35, %v1113_v31  ;;  %v1376_v35 = vpop.permute.xlu0 %1375 }
 0x23e   : > { %v1230_v13 = vadd.f32 %v1217_v58, %v1114_v32 }
 0x241   : > { %v1106_v25 = vpop.f32.mrb[44].mxu0 }
 0x242   : > { %v2001_v47 = vpop.f32.mrb[45].mxu0 }
 0x243   : > { %v1108_v48 = vpop.f32.mrb[46].mxu0 }
 0x244   : > { %v2002_v49 = vpop.f32.mrb[47].mxu0 }
 0x249   : > { %v1314_v50 = vpop.f32.mrb[48].mxu0 }
 0x24a   : > { %v1335_v52 = vadd.f32 %v1314_v50, %v1227_v42  ;;  %v2033_v53 = vpop.f32.mrb[49].mxu0 }
 0x24b   : > { %v1317_v55 = vpop.f32.mrb[50].mxu0 }
 0x24c   : > { %v1344_v56 = vadd.f32 %v1774_v51, %v1335_v52  ;;  %v1336_v57 = vadd.f32 %v1317_v55, %v1228_v1  ;;  %v2034_v59 = vpop.f32.mrb[51].mxu0 }
 0x24e   : > { %v1348_v60 = vmax.f32 %v1344_v56, 0.0  ;;  %v1345_v61 = vadd.f32 %v1774_v51, %v1336_v57 }
 0x250   : > { %v1349_v54 = vmax.f32 %v1345_v61, 0.0  ;;  %v1355_v63 = vrot.slane %v1348_v60, 7 }
 0x251   : > { %v1322_v62 = vpop.f32.mrb[52].mxu0 }
 0x252   : > { %v1356_v3 = vrot.slane %v1349_v54, 7  ;;  %v1337_v4 = vadd.f32 %v1322_v62, %v1229_v46  ;;  %v2037_v5 = vpop.f32.mrb[53].mxu0  ;;  %v1361_v16 = vrot.slane %v1349_v54, 1 }
 0x253   : > { %v1325_v6 = vpop.f32.mrb[54].mxu0 }
 0x254   : > { %v1346_v7 = vadd.f32 %v1774_v51, %v1337_v4  ;;  %v1338_v10 = vadd.f32 %v1325_v6, %v1230_v13  ;;  %v2038_v11 = vpop.f32.mrb[55].mxu0  ;;  %v1357_v12 = vsel %vm275_vm1, %v1355_v63, %v1356_v3  ;;  %vm1575_vm1 = vmand %vm1574_vm0, %vm355_vm12  ;;  %v1577_v6 = vld [vmem:[%s257_s24] sm:$0x3] }
 0x256   : > { %v1350_v14 = vmax.f32 %v1346_v7, 0.0  ;;  %v1347_v15 = vadd.f32 %v1774_v51, %v1338_v10  ;;  %v2394_v51 = vmov 1966171168  }
 0x257   : > { %v1560_v52 = vunpack.c.l.s4 %v2394_v51 }
 0x258   : > { %v1362_v19 = vrot.slane %v1350_v14, 1  ;;  %v1351_v20 = vmax.f32 %v1347_v15, 0.0  ;;  %v1365_v23 = vrot.slane %v1350_v14, 3 }
 0x259   : > { %v1330_v22 = vpop.f32.mrb[56].mxu0  ;;  %v1561_v59 = vunpack.c.0.s8 %v1560_v52 }
 0x25a   : > { %v1368_v24 = vrot.slane %v1351_v20, 5  ;;  %v2041_v29 = vpop.f32.mrb[57].mxu0  ;;  %v1363_v30 = vsel %vm350_vm7, %v1361_v16, %v1362_v19  ;;  %vm1576_vm7 = vmor %vm1575_vm1, %vm2660_vm5 }
 0x25b   : > { %v1332_v33 = vpop.f32.mrb[58].mxu0  ;;  %v1371_v34 = vsel %vm912_vm6, %v1357_v12, %v1363_v30  ;;  %v1564_v63 = vsub.s32 %v1561_v59, %v1401_v38 }
 0x25c   : > { %v2042_v9 = vpop.f32.mrb[59].mxu0  ;;  %v1372_v17 = vsel %vm912_vm6, %v1365_v23, %v1368_v24 }
 0x25d   : > { %v1373_v8 = vpack.c.bf16 %v1372_v17, %v1371_v34 }
 0x25f   : > { %v1379_v58 = vsel %vm430_vm11, %v1373_v8, %v1376_v35 }
 0x260   : > { %1523 = vmatmul.mubr.bf16.vlgmr.msra.gmra.mrb[48].mxu1 %v1379_v58 }
 0x333   : > { %v1524_v42 = vpop.f32.mrb[48].mxu1 }
 0x334   : > { %v1525_v26 = vadd.f32 %v1524_v42, %v1403_v40  ;;  %v1526_v43 = vpop.f32.mrb[49].mxu1 }
 0x335   : > { %v1527_v1 = vadd.f32 %v1526_v43, %v1407_v41  ;;  %v1528_v2 = vpop.f32.mrb[50].mxu1 }
 0x336   : > { %v1529_v21 = vadd.f32 %v1528_v2, %v1403_v40  ;;  %v1530_v28 = vpop.f32.mrb[51].mxu1  ;;  %v1533_v44 = vmax.f32 %v1525_v26, 0.0 }
 0x337   : > { %v1531_v31 = vadd.f32 %v1530_v28, %v1407_v41  ;;  %v1534_v32 = vmax.f32 %v1527_v1, 0.0 }
 0x338   : > { %v1535_v45 = vmax.f32 %v1529_v21, 0.0 }
 0x339   : > { %v1536_v0 = vmax.f32 %v1531_v31, 0.0 }
 0x33a   : > { %v1537_v46 = vadd.f32 %v1535_v45, %v1533_v44 }
 0x33b   : > { %v1544_v13 = vadd.f32 %v1536_v0, %v1534_v32 }
 0x33c   : > { %v1538_v25 = vrot.slane %v1537_v46, 4 }
 0x33d   : > { %v1545_v47 = vrot.slane %v1544_v13, 4 }
 0x33e   : > { %v1539_v48 = vadd.f32 %v1538_v25, %v1537_v46 }
 0x33f   : > { %v1546_v49 = vadd.f32 %v1545_v47, %v1544_v13 }
 0x340   : > { %v1540_v50 = vrot.slane %v1539_v48, 2 }
 0x341   : > { %v1547_v53 = vrot.slane %v1546_v49, 2 }
 0x342   : > { %v1541_v55 = vadd.f32 %v1540_v50, %v1539_v48 }
 0x343   : > { %v1548_v56 = vadd.f32 %v1547_v53, %v1546_v49 }
 0x344   : > { %v1542_v57 = vrot.slane %v1541_v55, 1 }
 0x345   : > { %v1549_v60 = vrot.slane %v1548_v56, 1 }
 0x346   : > { %v1543_v61 = vadd.f32 %v1542_v57, %v1541_v55 }
 0x347   : > { %v1550_v54 = vadd.f32 %v1549_v60, %v1548_v56 }
 0x348   : > { %v1552_v62 = vmul.f32 0.0625, %v1543_v61 }
 0x349   : > { %v1553_v3 = vmul.f32 0.0625, %v1550_v54 }
 0x34b   : > { %v1792_v4 = vpack.c.bf16 %v1553_v3, %v1552_v62 }
 0x34d   : > { %v1565_v5 = vrot.slane %v1792_v4, %v1564_v63 }
 0x34f   : > { %v1572_v7 = vrot.slane %v1565_v5, %v1564_v63 }
 0x351   : > { %v1578_v10 = vsel %vm1576_vm7, %v1572_v7, %v1577_v6 }
 0x352   : > { %1579 = vst [vmem:[%s257_s24] sm:$0x3] %v1578_v10 }
 0x353   : > { %2319 = shalt.err (!%p2316_p4)
}
 0x354   : > { %s2320_s9 = scalar_lea.hbm %s2910_s29, 32  ;;  %s2324_s12 = scalar_lea.hbm %s2958_s4, 64 }
 0x355   : > { %p2321_p9 = scmp.ne.s32.totalorder %s2910_s29, %s2320_s9  ;;  %p2325_p11 = scmp.lt.u32.totalorder %s2910_s29, %s2958_s4 }
 0x356   : > { %p2326_p13 = scmp.lt.u32.totalorder %s2324_s12, %s2320_s9  ;;  %p2328_p10 = scmp.lt.u32.totalorder %s2320_s9, %s2910_s29 }
 0x357   : > { %p2322_p0 = pnand %p2321_p9, %p2566_p5 }
 0x358   : > { %p2327_p6 = por %p2326_p13, %p2325_p11 }
 0x359   : > { %p2323_p8 = pneg %p2322_p0 }
 0x35a   : > { %p2329_p3 = por %p2328_p10, %p2327_p6 }
 0x35c   : > { %p2330_p7 = pnand %p2329_p3, %p2323_p8 }
 0x35e   : > { %2333 = shalt.err (!%p2330_p7)
}
 0x35f   : > { %2057 = dma.vmem_to_hbm [thread:$0]  (%p2566_p5), %s2912_s7, 32, %s2910_s29, %s1581_s19  }
 0x360 PF: > { %s1607_s23 = sand.u32 1, %s2368_s15   ;;  %p2982_p12 = scmp.ne.s32.totalorder %s2964_s22, 0 }
 0x361   : > { %p2983_p1 = scmp.ge.s32.totalorder %s2380_s18, 2  ;;  %s1608_s13 = scalar_lea.sflag [#allocation4], %s1607_s23 }
 0x363   : > { %p2074_p2 = pnand %p2983_p1, %p2982_p12 }
 0x365   : > { %2363 = dma.done.wait (!%p2074_p2), %s1608_s13, 32  }
 0x366   : > { %2365 = vsyncadd (!%p2074_p2), %s1608_s13, 4294967264  ;;  %p19_p4 = scmp.ge.s32.totalorder %s2534_s27, 4   ;;  %s2984_s15 = smov %s2372_s16 }
 0x367   : > { %s2985_s16 = smov %s2376_s17  ;;  %s2986_s17 = smov %s2562_s26 }
 0x368   : > { %s2987_s18 = smov %s2534_s27  ;;  %21 = sbr.rel (!%p19_p4) target bundleno = 7 (0x7), region = 94 }
 0x36f   :  { %1613 = vsyncpa [#allocation3], 1 }
 0x370   :  { %1615 = vsyncpa [#allocation3 + $0x1], 1 }
 0x371   :  { %1616 = vsyncpa [#allocation6], 1 }
 0x372   :  { %1617 = vsyncpa [#allocation9], 1 }
 0x373   :  { %1618 = vsyncpa [#allocation4], 1 }
 0x374   :  { %1620 = vsyncpa [#allocation4 + $0x1], 1 }

// kernel: resnet_grasp_forward.5
= control target key start
LH: loop header
LB: loop body
LE: loop exit
PB: predicated region body
PF: predicated region fallthrough
CT: control target
= control target key end

     0   :  { %v95_v38 = vlaneseq  ;;  %v2630_v39 = vmov 1966171168   ;;  %vm691_vm0 = vcmask 1041408   ;;  %vm692_vm1 = vcmask 1042432   ;;  %s3425_s0 = inlined_call_operand.vmem [shape: bf16[2,256], index: 0, kind: input, shape index: {}]   ;;  %s3426_s1 = inlined_call_operand.vmem [shape: bf16[2,5], index: 1, kind: input, shape index: {}]   ;;  %s3427_s2 = inlined_call_operand.vmem [shape: bf16[256,512], index: 2, kind: input, shape index: {}]   ;;  %s3428_s3 = inlined_call_operand.vmem [shape: bf16[512,512], index: 3, kind: input, shape index: {}]   ;;  %s3429_s4 = inlined_call_operand.vmem [shape: bf16[5,512], index: 4, kind: input, shape index: {}]   ;;  %s3430_s5 = inlined_call_operand.vmem [shape: bf16[512,2], index: 5, kind: input, shape index: {}]   ;;  %s3431_s6 = inlined_call_operand.vmem [shape: f32[3,512], index: 6, kind: input, shape index: {}]   ;;  %s3432_s7 = inlined_call_operand.hbm [shape: f32[2,2], index: 7, kind: output, shape index: {}]  }
   0x1   :  { %v2278_v0 = vld [vmem:[%s3427_s2 + $0x4] ss:$16 sps:$4 sm:$0xff]   ;;  %v2280_v1 = vld [vmem:[%s3427_s2 + $0xc] ss:$16 sps:$4 sm:$0xff]   ;;  %v2282_v2 = vld [vmem:[%s3427_s2] ss:$16 sps:$4 sm:$0xff]   ;;  %v125_v40 = vunpack.c.l.s4 %v2630_v39 }
   0x2   :  { %460 = vmatprep.subr.bf16.mxu0 %v2278_v0  ;;  %v2283_v3 = vld [vmem:[%s3427_s2 + $0x8] ss:$16 sps:$4 sm:$0xff]   ;;  %501 = vmatprep.subr.bf16.mxu1 %v2280_v1  ;;  %v2284_v4 = vld [vmem:[%s3427_s2 + $0x24] ss:$16 sps:$4 sm:$0xff]   ;;  %v2286_v5 = vld [vmem:[%s3427_s2 + $0x2c] ss:$16 sps:$4 sm:$0xff]  }
   0x3   :  { %461 = vmatpush1.bf16.msra.mxu0 %v2282_v2  ;;  %502 = vmatpush1.bf16.msra.mxu1 %v2283_v3  ;;  %v2288_v6 = vld [vmem:[%s3427_s2 + $0x20] ss:$16 sps:$4 sm:$0xff]   ;;  %v2289_v7 = vld [vmem:[%s3427_s2 + $0x28] ss:$16 sps:$4 sm:$0xff]   ;;  %v2290_v8 = vld [vmem:[%s3427_s2 + $0x44] ss:$16 sps:$4 sm:$0xff]   ;;  %v126_v46 = vunpack.c.0.s8 %v125_v40 }
   0x4   :  { %462 = vmatprep.subr.bf16.mxu0 %v2284_v4  ;;  %503 = vmatprep.subr.bf16.mxu1 %v2286_v5  ;;  %v2292_v9 = vld [vmem:[%s3427_s2 + $0x4c] ss:$16 sps:$4 sm:$0xff]   ;;  %v2294_v10 = vld [vmem:[%s3427_s2 + $0x40] ss:$16 sps:$4 sm:$0xff]   ;;  %v2295_v11 = vld [vmem:[%s3427_s2 + $0x48] ss:$16 sps:$4 sm:$0xff]  }
   0x5   :  { %v2296_v12 = vld [vmem:[%s3427_s2 + $0x64] ss:$16 sps:$4 sm:$0xff]   ;;  %v2298_v13 = vld [vmem:[%s3427_s2 + $0x6c] ss:$16 sps:$4 sm:$0xff]   ;;  %v2300_v14 = vld [vmem:[%s3427_s2 + $0x60] ss:$16 sps:$4 sm:$0xff]  }
   0x6   :  { %v2301_v15 = vld [vmem:[%s3427_s2 + $0x68] ss:$16 sps:$4 sm:$0xff]   ;;  %v2302_v16 = vld [vmem:[%s3427_s2 + $0x84] ss:$16 sps:$4 sm:$0xff]   ;;  %v2304_v17 = vld [vmem:[%s3427_s2 + $0x8c] ss:$16 sps:$4 sm:$0xff]  }
   0x7   :  { %463 = vmatpush1.bf16.msra.mxu0 %v2288_v6  ;;  %504 = vmatpush1.bf16.msra.mxu1 %v2289_v7  ;;  %v2306_v18 = vld [vmem:[%s3427_s2 + $0x80] ss:$16 sps:$4 sm:$0xff]   ;;  %v2307_v19 = vld [vmem:[%s3427_s2 + $0x88] ss:$16 sps:$4 sm:$0xff]   ;;  %v2308_v20 = vld [vmem:[%s3427_s2 + $0xa4] ss:$16 sps:$4 sm:$0xff]  }
   0x8   :  { %464 = vmatprep.subr.bf16.mxu0 %v2290_v8  ;;  %505 = vmatprep.subr.bf16.mxu1 %v2292_v9  ;;  %v2310_v21 = vld [vmem:[%s3427_s2 + $0xac] ss:$16 sps:$4 sm:$0xff]   ;;  %v2312_v22 = vld [vmem:[%s3427_s2 + $0xa0] ss:$16 sps:$4 sm:$0xff]   ;;  %v2313_v23 = vld [vmem:[%s3427_s2 + $0xa8] ss:$16 sps:$4 sm:$0xff]  }
   0x9   :  { %v2314_v24 = vld [vmem:[%s3427_s2 + $0xc4] ss:$16 sps:$4 sm:$0xff]   ;;  %v2316_v25 = vld [vmem:[%s3427_s2 + $0xcc] ss:$16 sps:$4 sm:$0xff]   ;;  %v2318_v26 = vld [vmem:[%s3427_s2 + $0xc0] ss:$16 sps:$4 sm:$0xff]  }
   0xa   :  { %v2319_v27 = vld [vmem:[%s3427_s2 + $0xc8] ss:$16 sps:$4 sm:$0xff]   ;;  %v2320_v28 = vld [vmem:[%s3427_s2 + $0xe4] ss:$16 sps:$4 sm:$0xff]   ;;  %v2322_v29 = vld [vmem:[%s3427_s2 + $0xec] ss:$16 sps:$4 sm:$0xff]  }
   0xb   :  { %465 = vmatpush1.bf16.msra.mxu0 %v2294_v10  ;;  %506 = vmatpush1.bf16.msra.mxu1 %v2295_v11  ;;  %v2324_v30 = vld [vmem:[%s3427_s2 + $0xe0] ss:$16 sps:$4 sm:$0xff]   ;;  %v2325_v31 = vld [vmem:[%s3427_s2 + $0xe8] ss:$16 sps:$4 sm:$0xff]   ;;  %v2326_v32 = vld [vmem:[%s3427_s2 + $0x104] ss:$16 sps:$4 sm:$0xff]  }
   0xc   :  { %466 = vmatprep.subr.bf16.mxu0 %v2296_v12  ;;  %507 = vmatprep.subr.bf16.mxu1 %v2298_v13  ;;  %v2328_v33 = vld [vmem:[%s3427_s2 + $0x10c] ss:$16 sps:$4 sm:$0xff]   ;;  %v2330_v34 = vld [vmem:[%s3427_s2 + $0x100] ss:$16 sps:$4 sm:$0xff]   ;;  %v2331_v35 = vld [vmem:[%s3427_s2 + $0x108] ss:$16 sps:$4 sm:$0xff]  }
   0xd   :  { %v2332_v36 = vld [vmem:[%s3427_s2 + $0x124] ss:$16 sps:$4 sm:$0xff]   ;;  %v2334_v37 = vld [vmem:[%s3427_s2 + $0x12c] ss:$16 sps:$4 sm:$0xff]   ;;  %v2336_v41 = vld [vmem:[%s3427_s2 + $0x120] ss:$16 sps:$4 sm:$0xff]  }
   0xe   :  { %v2337_v42 = vld [vmem:[%s3427_s2 + $0x128] ss:$16 sps:$4 sm:$0xff]   ;;  %v2338_v43 = vld [vmem:[%s3427_s2 + $0x144] ss:$16 sps:$4 sm:$0xff]   ;;  %v2340_v44 = vld [vmem:[%s3427_s2 + $0x14c] ss:$16 sps:$4 sm:$0xff]  }
   0xf   :  { %467 = vmatpush1.bf16.msra.mxu0 %v2300_v14  ;;  %508 = vmatpush1.bf16.msra.mxu1 %v2301_v15  ;;  %v2800_v45 = vshrl.u32 %v95_v38, 7  ;;  %v2342_v47 = vld [vmem:[%s3427_s2 + $0x140] ss:$16 sps:$4 sm:$0xff]   ;;  %v2343_v48 = vld [vmem:[%s3427_s2 + $0x148] ss:$16 sps:$4 sm:$0xff]   ;;  %v2631_v6 = vmov 65535  }
  0x10   :  { %468 = vmatprep.subr.bf16.mxu0 %v2302_v16  ;;  %509 = vmatprep.subr.bf16.mxu1 %v2304_v17  ;;  %v2344_v49 = vld [vmem:[%s3427_s2 + $0x164] ss:$16 sps:$4 sm:$0xff]   ;;  %v2346_v50 = vld [vmem:[%s3427_s2 + $0x16c] ss:$16 sps:$4 sm:$0xff]   ;;  %v2348_v52 = vld [vmem:[%s3427_s2 + $0x160] ss:$16 sps:$4 sm:$0xff]  }
  0x11   :  { %v129_v51 = vsub.s32 %v126_v46, %v2800_v45  ;;  %v1997_v53 = vld.sshfl [vmem:[%s3425_s0] sm:$0x11 pattern:$0x75316420]  ;;  %v2349_v54 = vld [vmem:[%s3427_s2 + $0x168] ss:$16 sps:$4 sm:$0xff]  }
  0x12   :  { %v123_v55 = vcombine.high %v1997_v53, %v1997_v53  ;;  %v2350_v56 = vld [vmem:[%s3427_s2 + $0x184] ss:$16 sps:$4 sm:$0xff]   ;;  %v2352_v57 = vld [vmem:[%s3427_s2 + $0x18c] ss:$16 sps:$4 sm:$0xff]   ;;  %v2354_v59 = vld [vmem:[%s3427_s2 + $0x180] ss:$16 sps:$4 sm:$0xff]  }
  0x13   :  { %469 = vmatpush1.bf16.msra.mxu0 %v2306_v18  ;;  %510 = vmatpush1.bf16.msra.mxu1 %v2307_v19  ;;  %v2355_v60 = vld [vmem:[%s3427_s2 + $0x188] ss:$16 sps:$4 sm:$0xff]   ;;  %v2356_v61 = vld [vmem:[%s3427_s2 + $0x1a4] ss:$16 sps:$4 sm:$0xff]   ;;  %v2358_v62 = vld [vmem:[%s3427_s2 + $0x1ac] ss:$16 sps:$4 sm:$0xff]  }
  0x14   :  { %470 = vmatprep.subr.bf16.mxu0 %v2308_v20  ;;  %511 = vmatprep.subr.bf16.mxu1 %v2310_v21  ;;  %v137_v58 = vrot.slane %v123_v55, %v129_v51  ;;  %v2360_v63 = vld [vmem:[%s3427_s2 + $0x1a0] ss:$16 sps:$4 sm:$0xff]   ;;  %v2361_v0 = vld [vmem:[%s3427_s2 + $0x1a8] ss:$16 sps:$4 sm:$0xff]   ;;  %v2362_v1 = vld [vmem:[%s3427_s2 + $0x1c4] ss:$16 sps:$4 sm:$0xff]   ;;  %v130_v20 = vrot.slane %v1997_v53, %v129_v51 }
  0x15   :  { %v2364_v2 = vld [vmem:[%s3427_s2 + $0x1cc] ss:$16 sps:$4 sm:$0xff]   ;;  %v675_v3 = vld [vmem:[%s3429_s4] sm:$0x77]  ;;  %v693_v7 = vsel %vm691_vm0, 4294967295, %v2631_v6  ;;  %vm687_vm2 = vcmask 39936  }
  0x16   :  { %492 = vmatprep.mubr.bf16.mxu0 %v137_v58  ;;  %533 = vmatprep.mubr.bf16.mxu1 %v137_v58  ;;  %v676_v4 = vld [vmem:[%s3429_s4 + $0x8] sm:$0x77]  ;;  %v2366_v5 = vld [vmem:[%s3427_s2 + $0x1c0] ss:$16 sps:$4 sm:$0xff]   ;;  %v2368_v9 = vld [vmem:[%s3427_s2 + $0x1e4] ss:$16 sps:$4 sm:$0xff]   ;;  %v2063_v11 = vcombine.high %v675_v3, %v675_v3  ;;  %v2062_v16 = vcombine.low %v675_v3, %v675_v3 }
  0x17   :  { %471 = vmatpush1.bf16.msra.mxu0 %v2312_v22  ;;  %512 = vmatpush1.bf16.msra.mxu1 %v2313_v23  ;;  %v2367_v8 = vld [vmem:[%s3427_s2 + $0x1c8] ss:$16 sps:$4 sm:$0xff]   ;;  %v2370_v10 = vld [vmem:[%s3427_s2 + $0x1ec] ss:$16 sps:$4 sm:$0xff]   ;;  %v2065_v12 = vcombine.high %v676_v4, %v676_v4  ;;  %v694_v13 = vsel %vm692_vm1, %v693_v7, 0  ;;  %v2064_v17 = vcombine.low %v676_v4, %v676_v4 }
  0x18   :  { %472 = vmatprep.subr.bf16.mxu0 %v2314_v24  ;;  %513 = vmatprep.subr.bf16.mxu1 %v2316_v25  ;;  %v2372_v14 = vld [vmem:[%s3427_s2 + $0x1e0] ss:$16 sps:$4 sm:$0xff]   ;;  %v2373_v15 = vld [vmem:[%s3427_s2 + $0x1e8] ss:$16 sps:$4 sm:$0xff]   ;;  %v699_v18 = vand.u32 %v2063_v11, %v694_v13  ;;  %v696_v21 = vand.u32 %v2062_v16, %v694_v13  ;;  %v2380_v23 = vld [vmem:[%s3428_s3 + $0x4] ss:$16 sps:$4 sm:$0xff]  }
  0x19   :  { %v705_v19 = vand.u32 %v2065_v12, %v694_v13  ;;  %v702_v22 = vand.u32 %v2064_v17, %v694_v13  ;;  %v2383_v24 = vld [vmem:[%s3428_s3 + $0x204] ss:$16 sps:$4 sm:$0xff]   ;;  %v2632_v25 = vmov 0   ;;  %v2396_v39 = vld [vmem:[%s3428_s3 + $0x60] ss:$16 sps:$4 sm:$0xff]  }
  0x1a   :  { %v2401_v38 = vld [vmem:[%s3428_s3 + $0x264] ss:$16 sps:$4 sm:$0xff]   ;;  %v2399_v40 = vld [vmem:[%s3428_s3 + $0x260] ss:$16 sps:$4 sm:$0xff]  }
  0x1b   :  { %473 = vmatpush1.bf16.msra.mxu0 %v2318_v26  ;;  %514 = vmatpush1.bf16.msra.mxu1 %v2319_v27  ;;  %v674_v26 = vld [vmem:[%s3426_s1] sm:$0x1]  ;;  %v2410_v46 = vld [vmem:[%s3428_s3 + $0xa4] ss:$16 sps:$4 sm:$0xff]  }
  0x1c   :  { %474 = vmatprep.subr.bf16.mxu0 %v2320_v28  ;;  %515 = vmatprep.subr.bf16.mxu1 %v2322_v29  ;;  %v2378_v27 = vld [vmem:[%s3428_s3] ss:$16 sps:$4 sm:$0xff]   ;;  %v2386_v29 = vld [vmem:[%s3428_s3 + $0x24] ss:$16 sps:$4 sm:$0xff]  }
  0x1d   :  { %v2381_v28 = vld [vmem:[%s3428_s3 + $0x200] ss:$16 sps:$4 sm:$0xff]   ;;  %v2419_v51 = vld [vmem:[%s3428_s3 + $0x2c4] ss:$16 sps:$4 sm:$0xff]  }
  0x1e   :  { %v2417_v53 = vld [vmem:[%s3428_s3 + $0x2c0] ss:$16 sps:$4 sm:$0xff]   ;;  %v2425_v55 = vld [vmem:[%s3428_s3 + $0x2e4] ss:$16 sps:$4 sm:$0xff]  }
  0x1f   :  { %475 = vmatpush1.bf16.msra.mxu0 %v2324_v30  ;;  %516 = vmatpush1.bf16.msra.mxu1 %v2325_v31  ;;  %v2389_v30 = vld [vmem:[%s3428_s3 + $0x224] ss:$16 sps:$4 sm:$0xff]   ;;  %v2384_v31 = vld [vmem:[%s3428_s3 + $0x20] ss:$16 sps:$4 sm:$0xff]  }
  0x20   :  { %476 = vmatprep.subr.bf16.mxu0 %v2326_v32  ;;  %517 = vmatprep.subr.bf16.mxu1 %v2328_v33  ;;  %v2387_v32 = vld [vmem:[%s3428_s3 + $0x220] ss:$16 sps:$4 sm:$0xff]   ;;  %v2392_v33 = vld [vmem:[%s3428_s3 + $0x44] ss:$16 sps:$4 sm:$0xff]  }
  0x21   :  { %v2428_v58 = vld [vmem:[%s3428_s3 + $0x104] ss:$16 sps:$4 sm:$0xff]   ;;  %v2438_v4 = vld [vmem:[%s3428_s3 + $0x140] ss:$16 sps:$4 sm:$0xff]  }
  0x22   :  { %v2443_v3 = vld [vmem:[%s3428_s3 + $0x344] ss:$16 sps:$4 sm:$0xff]   ;;  %v2450_v12 = vld [vmem:[%s3428_s3 + $0x180] ss:$16 sps:$4 sm:$0xff]  }
  0x23   :  { %477 = vmatpush1.bf16.msra.mxu0 %v2330_v34  ;;  %518 = vmatpush1.bf16.msra.mxu1 %v2331_v35  ;;  %v2395_v34 = vld [vmem:[%s3428_s3 + $0x244] ss:$16 sps:$4 sm:$0xff]   ;;  %v2390_v35 = vld [vmem:[%s3428_s3 + $0x40] ss:$16 sps:$4 sm:$0xff]  }
  0x24   :  { %478 = vmatprep.subr.bf16.mxu0 %v2332_v36  ;;  %519 = vmatprep.subr.bf16.mxu1 %v2334_v37  ;;  %v2393_v36 = vld [vmem:[%s3428_s3 + $0x240] ss:$16 sps:$4 sm:$0xff]   ;;  %v2398_v37 = vld [vmem:[%s3428_s3 + $0x64] ss:$16 sps:$4 sm:$0xff]  }
  0x25   :  { %v2446_v6 = vld [vmem:[%s3428_s3 + $0x164] ss:$16 sps:$4 sm:$0xff]   ;;  %v2453_v13 = vld [vmem:[%s3428_s3 + $0x380] ss:$16 sps:$4 sm:$0xff]  }
  0x26   :  { %v2449_v7 = vld [vmem:[%s3428_s3 + $0x364] ss:$16 sps:$4 sm:$0xff]   ;;  %v2456_v16 = vld [vmem:[%s3428_s3 + $0x1a0] ss:$16 sps:$4 sm:$0xff]  }
  0x27   :  { %479 = vmatpush1.bf16.msra.mxu0 %v2336_v41  ;;  %520 = vmatpush1.bf16.msra.mxu1 %v2337_v42  ;;  %v2404_v41 = vld [vmem:[%s3428_s3 + $0x84] ss:$16 sps:$4 sm:$0xff]   ;;  %v2459_v17 = vld [vmem:[%s3428_s3 + $0x3a0] ss:$16 sps:$4 sm:$0xff]  }
  0x28   :  { %480 = vmatprep.subr.bf16.mxu0 %v2338_v43  ;;  %521 = vmatprep.subr.bf16.mxu1 %v2340_v44  ;;  %v2407_v42 = vld [vmem:[%s3428_s3 + $0x284] ss:$16 sps:$4 sm:$0xff]   ;;  %v2402_v43 = vld [vmem:[%s3428_s3 + $0x80] ss:$16 sps:$4 sm:$0xff]  }
  0x29   :  { %v2405_v44 = vld [vmem:[%s3428_s3 + $0x280] ss:$16 sps:$4 sm:$0xff]   ;;  %v2455_v11 = vld [vmem:[%s3428_s3 + $0x384] ss:$16 sps:$4 sm:$0xff]  }
  0x2b   :  { %481 = vmatpush1.bf16.msra.mxu0 %v2342_v47  ;;  %522 = vmatpush1.bf16.msra.mxu1 %v2343_v48  ;;  %v2413_v47 = vld [vmem:[%s3428_s3 + $0x2a4] ss:$16 sps:$4 sm:$0xff]   ;;  %v2408_v48 = vld [vmem:[%s3428_s3 + $0xa0] ss:$16 sps:$4 sm:$0xff]  }
  0x2c   :  { %482 = vmatprep.subr.bf16.mxu0 %v2344_v49  ;;  %523 = vmatprep.subr.bf16.mxu1 %v2346_v50  ;;  %v2411_v49 = vld [vmem:[%s3428_s3 + $0x2a0] ss:$16 sps:$4 sm:$0xff]   ;;  %v2416_v50 = vld [vmem:[%s3428_s3 + $0xc4] ss:$16 sps:$4 sm:$0xff]  }
  0x2f   :  { %483 = vmatpush1.bf16.msra.mxu0 %v2348_v52  ;;  %524 = vmatpush1.bf16.msra.mxu1 %v2349_v54  ;;  %v2414_v52 = vld [vmem:[%s3428_s3 + $0xc0] ss:$16 sps:$4 sm:$0xff]   ;;  %v2422_v54 = vld [vmem:[%s3428_s3 + $0xe4] ss:$16 sps:$4 sm:$0xff]  }
  0x30   :  { %484 = vmatprep.subr.bf16.mxu0 %v2350_v56  ;;  %525 = vmatprep.subr.bf16.mxu1 %v2352_v57  ;;  %v2420_v56 = vld [vmem:[%s3428_s3 + $0xe0] ss:$16 sps:$4 sm:$0xff]  }
  0x31   :  { %v2423_v57 = vld [vmem:[%s3428_s3 + $0x2e0] ss:$16 sps:$4 sm:$0xff]  }
  0x33   :  { %485 = vmatpush1.bf16.msra.mxu0 %v2354_v59  ;;  %526 = vmatpush1.bf16.msra.mxu1 %v2355_v60  ;;  %v2431_v59 = vld [vmem:[%s3428_s3 + $0x304] ss:$16 sps:$4 sm:$0xff]   ;;  %v2426_v60 = vld [vmem:[%s3428_s3 + $0x100] ss:$16 sps:$4 sm:$0xff]  }
  0x34   :  { %486 = vmatprep.subr.bf16.mxu0 %v2356_v61  ;;  %527 = vmatprep.subr.bf16.mxu1 %v2358_v62  ;;  %v2429_v61 = vld [vmem:[%s3428_s3 + $0x300] ss:$16 sps:$4 sm:$0xff]   ;;  %v2434_v62 = vld [vmem:[%s3428_s3 + $0x124] ss:$16 sps:$4 sm:$0xff]  }
  0x37   :  { %487 = vmatpush1.bf16.msra.mxu0 %v2360_v63  ;;  %528 = vmatpush1.bf16.msra.mxu1 %v2361_v0  ;;  %v2437_v63 = vld [vmem:[%s3428_s3 + $0x324] ss:$16 sps:$4 sm:$0xff]   ;;  %v2432_v0 = vld [vmem:[%s3428_s3 + $0x120] ss:$16 sps:$4 sm:$0xff]  }
  0x38   :  { %488 = vmatprep.subr.bf16.mxu0 %v2362_v1  ;;  %529 = vmatprep.subr.bf16.mxu1 %v2364_v2  ;;  %v2435_v1 = vld [vmem:[%s3428_s3 + $0x320] ss:$16 sps:$4 sm:$0xff]   ;;  %v2440_v2 = vld [vmem:[%s3428_s3 + $0x144] ss:$16 sps:$4 sm:$0xff]  }
  0x3b   :  { %489 = vmatpush1.bf16.msra.mxu0 %v2366_v5  ;;  %530 = vmatpush1.bf16.msra.mxu1 %v2367_v8  ;;  %v2441_v5 = vld [vmem:[%s3428_s3 + $0x340] ss:$16 sps:$4 sm:$0xff]  }
  0x3c   :  { %490 = vmatprep.subr.bf16.mxu0 %v2368_v9  ;;  %531 = vmatprep.subr.bf16.mxu1 %v2370_v10  ;;  %v2444_v8 = vld [vmem:[%s3428_s3 + $0x160] ss:$16 sps:$4 sm:$0xff]   ;;  %v2452_v10 = vld [vmem:[%s3428_s3 + $0x184] ss:$16 sps:$4 sm:$0xff]  }
  0x3d   :  { %v2447_v9 = vld [vmem:[%s3428_s3 + $0x360] ss:$16 sps:$4 sm:$0xff]  }
  0x3f   :  { %491 = vmatpush1.bf16.msra.mxu0 %v2372_v14  ;;  %532 = vmatpush1.bf16.msra.mxu1 %v2373_v15  ;;  %v2458_v14 = vld [vmem:[%s3428_s3 + $0x1a4] ss:$16 sps:$4 sm:$0xff]  }
  0x40   :  { %707 = vmatprep.subr.bf16.mxu0 %v699_v18  ;;  %748 = vmatprep.subr.bf16.mxu1 %v705_v19  ;;  %v2461_v15 = vld [vmem:[%s3428_s3 + $0x3a4] ss:$16 sps:$4 sm:$0xff]  }
  0x41   :  { %v2464_v18 = vld [vmem:[%s3428_s3 + $0x1c4] ss:$16 sps:$4 sm:$0xff]  }
  0x42   :  { %493 = vmatmul.mubr.bf16.vlgmr.msra.gmra.mrb[0].mxu0 %v130_v20  ;;  %534 = vmatmul.mubr.bf16.vlgmr.msra.gmra.mrb[0].mxu1 %v130_v20  ;;  %v2467_v19 = vld [vmem:[%s3428_s3 + $0x3c4] ss:$16 sps:$4 sm:$0xff]   ;;  %v2462_v20 = vld [vmem:[%s3428_s3 + $0x1c0] ss:$16 sps:$4 sm:$0xff]  }
  0x43   :  { %708 = vmatpush1.bf16.msra.mxu0 %v696_v21  ;;  %749 = vmatpush1.bf16.msra.mxu1 %v702_v22  ;;  %v2465_v21 = vld [vmem:[%s3428_s3 + $0x3c0] ss:$16 sps:$4 sm:$0xff]  }
  0x44   :  { %739 = vmatprep.mubr.bf16.mxu0 %v2632_v25  ;;  %780 = vmatprep.mubr.bf16.mxu1 %v2632_v25 }
  0x45   :  { %1429 = vmatprep.subr.bf16.mxu0 %v2380_v23  ;;  %1470 = vmatprep.subr.bf16.mxu1 %v2383_v24 }
  0x4a   :  { %2066 = vmatmul.mubr.msk.bf16.vlgmr.msra.gmra.mrb[4].mxu0 %vm687_vm2, %v674_v26  ;;  %2067 = vmatmul.mubr.msk.bf16.vlgmr.msra.gmra.mrb[4].mxu1 %vm687_vm2, %v674_v26 }
  0x4b   :  { %1430 = vmatpush1.bf16.msra.mxu0 %v2378_v27  ;;  %1471 = vmatpush1.bf16.msra.mxu1 %v2381_v28 }
  0x4c   :  { %1431 = vmatprep.subr.bf16.mxu0 %v2386_v29  ;;  %1472 = vmatprep.subr.bf16.mxu1 %v2389_v30 }
  0x4f   :  { %1432 = vmatpush1.bf16.msra.mxu0 %v2384_v31  ;;  %1473 = vmatpush1.bf16.msra.mxu1 %v2387_v32 }
  0x50   :  { %1433 = vmatprep.subr.bf16.mxu0 %v2392_v33  ;;  %1474 = vmatprep.subr.bf16.mxu1 %v2395_v34 }
  0x53   :  { %1434 = vmatpush1.bf16.msra.mxu0 %v2390_v35  ;;  %1475 = vmatpush1.bf16.msra.mxu1 %v2393_v36 }
  0x54   :  { %1435 = vmatprep.subr.bf16.mxu0 %v2398_v37  ;;  %1476 = vmatprep.subr.bf16.mxu1 %v2401_v38 }
  0x57   :  { %1436 = vmatpush1.bf16.msra.mxu0 %v2396_v39  ;;  %1477 = vmatpush1.bf16.msra.mxu1 %v2399_v40 }
  0x58   :  { %1437 = vmatprep.subr.bf16.mxu0 %v2404_v41  ;;  %1478 = vmatprep.subr.bf16.mxu1 %v2407_v42 }
  0x5b   :  { %1438 = vmatpush1.bf16.msra.mxu0 %v2402_v43  ;;  %1479 = vmatpush1.bf16.msra.mxu1 %v2405_v44 }
  0x5c   :  { %1439 = vmatprep.subr.bf16.mxu0 %v2410_v46  ;;  %1480 = vmatprep.subr.bf16.mxu1 %v2413_v47 }
  0x5f   :  { %1440 = vmatpush1.bf16.msra.mxu0 %v2408_v48  ;;  %1481 = vmatpush1.bf16.msra.mxu1 %v2411_v49 }
  0x60   :  { %1441 = vmatprep.subr.bf16.mxu0 %v2416_v50  ;;  %1482 = vmatprep.subr.bf16.mxu1 %v2419_v51 }
  0x63   :  { %1442 = vmatpush1.bf16.msra.mxu0 %v2414_v52  ;;  %1483 = vmatpush1.bf16.msra.mxu1 %v2417_v53 }
  0x64   :  { %1443 = vmatprep.subr.bf16.mxu0 %v2422_v54  ;;  %1484 = vmatprep.subr.bf16.mxu1 %v2425_v55 }
  0x67   :  { %1444 = vmatpush1.bf16.msra.mxu0 %v2420_v56  ;;  %1485 = vmatpush1.bf16.msra.mxu1 %v2423_v57 }
  0x68   :  { %1445 = vmatprep.subr.bf16.mxu0 %v2428_v58  ;;  %1486 = vmatprep.subr.bf16.mxu1 %v2431_v59 }
  0x6b   :  { %1446 = vmatpush1.bf16.msra.mxu0 %v2426_v60  ;;  %1487 = vmatpush1.bf16.msra.mxu1 %v2429_v61 }
  0x6c   :  { %1447 = vmatprep.subr.bf16.mxu0 %v2434_v62  ;;  %1488 = vmatprep.subr.bf16.mxu1 %v2437_v63 }
  0x6f   :  { %1448 = vmatpush1.bf16.msra.mxu0 %v2432_v0  ;;  %1489 = vmatpush1.bf16.msra.mxu1 %v2435_v1 }
  0x70   :  { %1449 = vmatprep.subr.bf16.mxu0 %v2440_v2  ;;  %1490 = vmatprep.subr.bf16.mxu1 %v2443_v3 }
  0x73   :  { %1450 = vmatpush1.bf16.msra.mxu0 %v2438_v4  ;;  %1491 = vmatpush1.bf16.msra.mxu1 %v2441_v5 }
  0x74   :  { %1451 = vmatprep.subr.bf16.mxu0 %v2446_v6  ;;  %1492 = vmatprep.subr.bf16.mxu1 %v2449_v7 }
  0x77   :  { %1452 = vmatpush1.bf16.msra.mxu0 %v2444_v8  ;;  %1493 = vmatpush1.bf16.msra.mxu1 %v2447_v9 }
  0x78   :  { %1453 = vmatprep.subr.bf16.mxu0 %v2452_v10  ;;  %1494 = vmatprep.subr.bf16.mxu1 %v2455_v11 }
  0x7b   :  { %1454 = vmatpush1.bf16.msra.mxu0 %v2450_v12  ;;  %1495 = vmatpush1.bf16.msra.mxu1 %v2453_v13 }
  0x7c   :  { %1455 = vmatprep.subr.bf16.mxu0 %v2458_v14  ;;  %1496 = vmatprep.subr.bf16.mxu1 %v2461_v15 }
  0x7f   :  { %1456 = vmatpush1.bf16.msra.mxu0 %v2456_v16  ;;  %1497 = vmatpush1.bf16.msra.mxu1 %v2459_v17 }
  0x80   :  { %12 = vsyncpa [#allocation3], 0  ;;  %1457 = vmatprep.subr.bf16.mxu0 %v2464_v18  ;;  %1498 = vmatprep.subr.bf16.mxu1 %v2467_v19  ;;  %v2470_v22 = vld [vmem:[%s3428_s3 + $0x1e4] ss:$16 sps:$4 sm:$0xff]   ;;  %v2468_v24 = vld [vmem:[%s3428_s3 + $0x1e0] ss:$16 sps:$4 sm:$0xff]  }
  0x81   :  { %v2473_v23 = vld [vmem:[%s3428_s3 + $0x3e4] ss:$16 sps:$4 sm:$0xff]   ;;  %v2471_v25 = vld [vmem:[%s3428_s3 + $0x3e0] ss:$16 sps:$4 sm:$0xff]   ;;  %v2476_v26 = vld [vmem:[%s3428_s3 + $0xc] ss:$16 sps:$4 sm:$0xff]  }
  0x82   :  { %v2479_v27 = vld [vmem:[%s3428_s3 + $0x20c] ss:$16 sps:$4 sm:$0xff]   ;;  %v97_v28 = vsub.s32 0, %v2800_v45  ;;  %v105_v29 = vsub.s32 2, %v2800_v45  ;;  %v101_v31 = vsub.s32 1, %v2800_v45  ;;  %v109_v32 = vsub.s32 3, %v2800_v45 }
  0x83   :  { %1458 = vmatpush1.bf16.msra.mxu0 %v2462_v20  ;;  %1499 = vmatpush1.bf16.msra.mxu1 %v2465_v21  ;;  %v93_v30 = vld [vmem:[%s3431_s6] ss:$4 sm:$0xf]  ;;  %vm1970_vm3 = vcmask 9216  }
  0x84   :  { %1459 = vmatprep.subr.bf16.mxu0 %v2470_v22  ;;  %1500 = vmatprep.subr.bf16.mxu1 %v2473_v23  ;;  %v98_v33 = vrot.slane %v93_v30, %v97_v28  ;;  %v106_v34 = vrot.slane %v93_v30, %v105_v29  ;;  %v102_v35 = vrot.slane %v93_v30, %v101_v31  ;;  %v2474_v53 = vld [vmem:[%s3428_s3 + $0x8] ss:$16 sps:$4 sm:$0xff]   ;;  %v2482_v56 = vld [vmem:[%s3428_s3 + $0x2c] ss:$16 sps:$4 sm:$0xff]  }
  0x85   :  { %v110_v36 = vrot.slane %v93_v30, %v109_v32  ;;  %v2477_v54 = vld [vmem:[%s3428_s3 + $0x208] ss:$16 sps:$4 sm:$0xff]   ;;  %v2485_v57 = vld [vmem:[%s3428_s3 + $0x22c] ss:$16 sps:$4 sm:$0xff]  }
  0x86   :  { %v2480_v58 = vld [vmem:[%s3428_s3 + $0x28] ss:$16 sps:$4 sm:$0xff]   ;;  %v2488_v62 = vld [vmem:[%s3428_s3 + $0x4c] ss:$16 sps:$4 sm:$0xff]  }
  0x87   :  { %1460 = vmatpush1.bf16.msra.mxu0 %v2468_v24  ;;  %1501 = vmatpush1.bf16.msra.mxu1 %v2471_v25  ;;  %v2483_v59 = vld [vmem:[%s3428_s3 + $0x228] ss:$16 sps:$4 sm:$0xff]   ;;  %v2491_v63 = vld [vmem:[%s3428_s3 + $0x24c] ss:$16 sps:$4 sm:$0xff]  }
  0x88   :  { %1511 = vmatprep.subr.bf16.mxu0 %v2476_v26  ;;  %1552 = vmatprep.subr.bf16.mxu1 %v2479_v27  ;;  %v2486_v6 = vld [vmem:[%s3428_s3 + $0x48] ss:$16 sps:$4 sm:$0xff]   ;;  %v2494_v8 = vld [vmem:[%s3428_s3 + $0x6c] ss:$16 sps:$4 sm:$0xff]  }
  0x89   :  { %v2489_v7 = vld [vmem:[%s3428_s3 + $0x248] ss:$16 sps:$4 sm:$0xff]   ;;  %v2497_v9 = vld [vmem:[%s3428_s3 + $0x26c] ss:$16 sps:$4 sm:$0xff]  }
  0x8a   :  { %v2492_v10 = vld [vmem:[%s3428_s3 + $0x68] ss:$16 sps:$4 sm:$0xff]   ;;  %v2500_v12 = vld [vmem:[%s3428_s3 + $0x8c] ss:$16 sps:$4 sm:$0xff]  }
  0x8b   :  { %v2495_v11 = vld [vmem:[%s3428_s3 + $0x268] ss:$16 sps:$4 sm:$0xff]   ;;  %v2503_v13 = vld [vmem:[%s3428_s3 + $0x28c] ss:$16 sps:$4 sm:$0xff]  }
  0x8c   :  { %v2498_v14 = vld [vmem:[%s3428_s3 + $0x88] ss:$16 sps:$4 sm:$0xff]   ;;  %v2506_v16 = vld [vmem:[%s3428_s3 + $0xac] ss:$16 sps:$4 sm:$0xff]  }
  0x8d   :  { %v2501_v15 = vld [vmem:[%s3428_s3 + $0x288] ss:$16 sps:$4 sm:$0xff]   ;;  %v2509_v17 = vld [vmem:[%s3428_s3 + $0x2ac] ss:$16 sps:$4 sm:$0xff]  }
  0x8e   :  { %v2504_v18 = vld [vmem:[%s3428_s3 + $0xa8] ss:$16 sps:$4 sm:$0xff]   ;;  %v2512_v20 = vld [vmem:[%s3428_s3 + $0xcc] ss:$16 sps:$4 sm:$0xff]  }
  0x8f   :  { %v2507_v19 = vld [vmem:[%s3428_s3 + $0x2a8] ss:$16 sps:$4 sm:$0xff]   ;;  %v2515_v21 = vld [vmem:[%s3428_s3 + $0x2cc] ss:$16 sps:$4 sm:$0xff]  }
  0x90   :  { %v2510_v22 = vld [vmem:[%s3428_s3 + $0xc8] ss:$16 sps:$4 sm:$0xff]   ;;  %v2518_v24 = vld [vmem:[%s3428_s3 + $0xec] ss:$16 sps:$4 sm:$0xff]  }
  0x91   :  { %v2513_v23 = vld [vmem:[%s3428_s3 + $0x2c8] ss:$16 sps:$4 sm:$0xff]   ;;  %v2521_v25 = vld [vmem:[%s3428_s3 + $0x2ec] ss:$16 sps:$4 sm:$0xff]  }
  0x92   :  { %v2516_v26 = vld [vmem:[%s3428_s3 + $0xe8] ss:$16 sps:$4 sm:$0xff]   ;;  %v2524_v30 = vld [vmem:[%s3428_s3 + $0x10c] ss:$16 sps:$4 sm:$0xff]  }
  0x93   :  { %v2519_v27 = vld [vmem:[%s3428_s3 + $0x2e8] ss:$16 sps:$4 sm:$0xff]  }
 0x115   :  { %v494_v37 = vpop.f32.mrb[0].mxu0  ;;  %v535_v38 = vpop.f32.mrb[0].mxu1 }
 0x116   :  { %v495_v39 = vadd.f32 %v494_v37, %v98_v33  ;;  %v536_v40 = vadd.f32 %v535_v38, %v106_v34  ;;  %v496_v41 = vpop.f32.mrb[1].mxu0  ;;  %v537_v42 = vpop.f32.mrb[1].mxu1  ;;  %v2527_v33 = vld [vmem:[%s3428_s3 + $0x30c] ss:$16 sps:$4 sm:$0xff]   ;;  %v2522_v34 = vld [vmem:[%s3428_s3 + $0x108] ss:$16 sps:$4 sm:$0xff]  }
 0x117   :  { %v497_v43 = vadd.f32 %v496_v41, %v102_v35  ;;  %v538_v44 = vadd.f32 %v537_v42, %v110_v36  ;;  %v498_v46 = vpop.f32.mrb[2].mxu0  ;;  %v539_v47 = vpop.f32.mrb[2].mxu1  ;;  %v2525_v35 = vld [vmem:[%s3428_s3 + $0x308] ss:$16 sps:$4 sm:$0xff]   ;;  %v2530_v36 = vld [vmem:[%s3428_s3 + $0x12c] ss:$16 sps:$4 sm:$0xff]  }
 0x118   :  { %v3094_v48 = vpack.c.bf16 %v536_v40, %v536_v40  ;;  %v499_v49 = vpop.f32.mrb[3].mxu0  ;;  %v540_v50 = vpop.f32.mrb[3].mxu1  ;;  %v3102_v55 = vpack.c.bf16 %v495_v39, %v495_v39  ;;  %v2533_v37 = vld [vmem:[%s3428_s3 + $0x32c] ss:$16 sps:$4 sm:$0xff]   ;;  %v2528_v38 = vld [vmem:[%s3428_s3 + $0x128] ss:$16 sps:$4 sm:$0xff]  }
 0x119   :  { %v543_v51 = vpack.c.bf16 %v497_v43, %v497_v43  ;;  %v545_v52 = vpack.c.bf16 %v538_v44, %v538_v44  ;;  %v2531_v39 = vld [vmem:[%s3428_s3 + $0x328] ss:$16 sps:$4 sm:$0xff]   ;;  %v2536_v40 = vld [vmem:[%s3428_s3 + $0x14c] ss:$16 sps:$4 sm:$0xff]  }
 0x11a   :  { %v2539_v41 = vld [vmem:[%s3428_s3 + $0x34c] ss:$16 sps:$4 sm:$0xff]   ;;  %v2534_v42 = vld [vmem:[%s3428_s3 + $0x148] ss:$16 sps:$4 sm:$0xff]  }
 0x11b   :  { %1461 = vmatprep.mubr.bf16.mxu0 %v543_v51  ;;  %1502 = vmatprep.mubr.bf16.mxu1 %v545_v52  ;;  %v2537_v43 = vld [vmem:[%s3428_s3 + $0x348] ss:$16 sps:$4 sm:$0xff]   ;;  %v2542_v44 = vld [vmem:[%s3428_s3 + $0x16c] ss:$16 sps:$4 sm:$0xff]  }
 0x11c   :  { %1462 = vmatmul.mubr.bf16.vlgmr.msra.gmra.mrb[8].mxu0 %v3102_v55  ;;  %1503 = vmatmul.mubr.bf16.vlgmr.msra.gmra.mrb[8].mxu1 %v3094_v48  ;;  %v2545_v46 = vld [vmem:[%s3428_s3 + $0x36c] ss:$16 sps:$4 sm:$0xff]   ;;  %v2540_v47 = vld [vmem:[%s3428_s3 + $0x168] ss:$16 sps:$4 sm:$0xff]  }
 0x11d   :  { %1512 = vmatpush1.bf16.msra.mxu0 %v2474_v53  ;;  %1553 = vmatpush1.bf16.msra.mxu1 %v2477_v54  ;;  %v3118_v60 = vpop.f32.mrb[4].mxu0  ;;  %v3120_v61 = vpop.f32.mrb[4].mxu1  ;;  %v2543_v49 = vld [vmem:[%s3428_s3 + $0x368] ss:$16 sps:$4 sm:$0xff]   ;;  %v2548_v50 = vld [vmem:[%s3428_s3 + $0x18c] ss:$16 sps:$4 sm:$0xff]  }
 0x11e   :  { %1543 = vmatprep.mubr.bf16.mxu0 %v543_v51  ;;  %1584 = vmatprep.mubr.bf16.mxu1 %v545_v52  ;;  %v3128_v0 = vpop.f32.mrb[5].mxu0  ;;  %v3130_v1 = vpop.f32.mrb[5].mxu1  ;;  %v2551_v51 = vld [vmem:[%s3428_s3 + $0x38c] ss:$16 sps:$4 sm:$0xff]   ;;  %v2546_v52 = vld [vmem:[%s3428_s3 + $0x188] ss:$16 sps:$4 sm:$0xff]  }
 0x11f   :  { %1513 = vmatprep.subr.bf16.mxu0 %v2482_v56  ;;  %1554 = vmatprep.subr.bf16.mxu1 %v2485_v57  ;;  %v745_v2 = vpop.f32.mrb[6].mxu0  ;;  %v786_v3 = vpop.f32.mrb[6].mxu1  ;;  %v2549_v53 = vld [vmem:[%s3428_s3 + $0x388] ss:$16 sps:$4 sm:$0xff]   ;;  %v2554_v54 = vld [vmem:[%s3428_s3 + $0x1ac] ss:$16 sps:$4 sm:$0xff]  }
 0x120   :  { %v746_v4 = vpop.f32.mrb[7].mxu0  ;;  %v787_v5 = vpop.f32.mrb[7].mxu1  ;;  %v2557_v56 = vld [vmem:[%s3428_s3 + $0x3ac] ss:$16 sps:$4 sm:$0xff]   ;;  %v2552_v57 = vld [vmem:[%s3428_s3 + $0x1a8] ss:$16 sps:$4 sm:$0xff]  }
 0x121   :  { %1514 = vmatpush1.bf16.msra.mxu0 %v2480_v58  ;;  %1555 = vmatpush1.bf16.msra.mxu1 %v2483_v59  ;;  %v2555_v58 = vld [vmem:[%s3428_s3 + $0x3a8] ss:$16 sps:$4 sm:$0xff]   ;;  %v2560_v59 = vld [vmem:[%s3428_s3 + $0x1cc] ss:$16 sps:$4 sm:$0xff]  }
 0x122   :  { %1515 = vmatprep.subr.bf16.mxu0 %v2488_v62  ;;  %1556 = vmatprep.subr.bf16.mxu1 %v2491_v63  ;;  %v2563_v62 = vld [vmem:[%s3428_s3 + $0x3cc] ss:$16 sps:$4 sm:$0xff]   ;;  %v2558_v63 = vld [vmem:[%s3428_s3 + $0x1c8] ss:$16 sps:$4 sm:$0xff]  }
 0x123   :  { %v2561_v2 = vld [vmem:[%s3428_s3 + $0x3c8] ss:$16 sps:$4 sm:$0xff]   ;;  %v2566_v3 = vld [vmem:[%s3428_s3 + $0x1ec] ss:$16 sps:$4 sm:$0xff]  }
 0x124   :  { %v2569_v4 = vld [vmem:[%s3428_s3 + $0x3ec] ss:$16 sps:$4 sm:$0xff]   ;;  %v2564_v5 = vld [vmem:[%s3428_s3 + $0x1e8] ss:$16 sps:$4 sm:$0xff]  }
 0x125   :  { %1516 = vmatpush1.bf16.msra.mxu0 %v2486_v6  ;;  %1557 = vmatpush1.bf16.msra.mxu1 %v2489_v7  ;;  %v2567_v6 = vld [vmem:[%s3428_s3 + $0x3e8] ss:$16 sps:$4 sm:$0xff]   ;;  %v2570_v7 = vld [vmem:[%s3430_s5 + $0x40] sm:$0xff]  }
 0x126   :  { %1517 = vmatprep.subr.bf16.mxu0 %v2494_v8  ;;  %1558 = vmatprep.subr.bf16.mxu1 %v2497_v9  ;;  %v2571_v8 = vld [vmem:[%s3430_s5] sm:$0xff]   ;;  %v2572_v9 = vld [vmem:[%s3430_s5 + $0x48] sm:$0xff]  }
 0x129   :  { %1518 = vmatpush1.bf16.msra.mxu0 %v2492_v10  ;;  %1559 = vmatpush1.bf16.msra.mxu1 %v2495_v11  ;;  %v2573_v10 = vld [vmem:[%s3430_s5 + $0x8] sm:$0xff]   ;;  %v2574_v11 = vld [vmem:[%s3430_s5 + $0x50] sm:$0xff]  }
 0x12a   :  { %1519 = vmatprep.subr.bf16.mxu0 %v2500_v12  ;;  %1560 = vmatprep.subr.bf16.mxu1 %v2503_v13  ;;  %v2575_v12 = vld [vmem:[%s3430_s5 + $0x10] sm:$0xff]   ;;  %v2578_v13 = vld [vmem:[%s3430_s5 + $0x60] sm:$0xff]  }
 0x12d   :  { %1520 = vmatpush1.bf16.msra.mxu0 %v2498_v14  ;;  %1561 = vmatpush1.bf16.msra.mxu1 %v2501_v15  ;;  %v2579_v14 = vld [vmem:[%s3430_s5 + $0x20] sm:$0xff]   ;;  %v2580_v15 = vld [vmem:[%s3430_s5 + $0x68] sm:$0xff]  }
 0x12e   :  { %1521 = vmatprep.subr.bf16.mxu0 %v2506_v16  ;;  %1562 = vmatprep.subr.bf16.mxu1 %v2509_v17  ;;  %v2581_v16 = vld [vmem:[%s3430_s5 + $0x28] sm:$0xff]   ;;  %v2582_v17 = vld [vmem:[%s3430_s5 + $0x70] sm:$0xff]  }
 0x131   :  { %1522 = vmatpush1.bf16.msra.mxu0 %v2504_v18  ;;  %1563 = vmatpush1.bf16.msra.mxu1 %v2507_v19  ;;  %v2583_v18 = vld [vmem:[%s3430_s5 + $0x30] sm:$0xff]   ;;  %v2584_v19 = vld [vmem:[%s3430_s5 + $0x78] sm:$0xff]  }
 0x132   :  { %1523 = vmatprep.subr.bf16.mxu0 %v2512_v20  ;;  %1564 = vmatprep.subr.bf16.mxu1 %v2515_v21  ;;  %v2585_v20 = vld [vmem:[%s3430_s5 + $0x38] sm:$0xff]   ;;  %v2586_v21 = vld [vmem:[%s3430_s5 + $0xc0] sm:$0xff]  }
 0x135   :  { %1524 = vmatpush1.bf16.msra.mxu0 %v2510_v22  ;;  %1565 = vmatpush1.bf16.msra.mxu1 %v2513_v23  ;;  %v2587_v22 = vld [vmem:[%s3430_s5 + $0x80] sm:$0xff]   ;;  %v2588_v23 = vld [vmem:[%s3430_s5 + $0xc8] sm:$0xff]  }
 0x136   :  { %1525 = vmatprep.subr.bf16.mxu0 %v2518_v24  ;;  %1566 = vmatprep.subr.bf16.mxu1 %v2521_v25  ;;  %v2589_v24 = vld [vmem:[%s3430_s5 + $0x88] sm:$0xff]   ;;  %v2590_v25 = vld [vmem:[%s3430_s5 + $0xd0] sm:$0xff]  }
 0x139   :  { %1526 = vmatpush1.bf16.msra.mxu0 %v2516_v26  ;;  %1567 = vmatpush1.bf16.msra.mxu1 %v2519_v27  ;;  %v2591_v26 = vld [vmem:[%s3430_s5 + $0x90] sm:$0xff]   ;;  %v2592_v27 = vld [vmem:[%s3430_s5 + $0xd8] sm:$0xff]  }
 0x13a   :  { %1527 = vmatprep.subr.bf16.mxu0 %v2524_v30  ;;  %1568 = vmatprep.subr.bf16.mxu1 %v2527_v33  ;;  %v2593_v30 = vld [vmem:[%s3430_s5 + $0x98] sm:$0xff]   ;;  %v2594_v33 = vld [vmem:[%s3430_s5 + $0xe0] sm:$0xff]  }
 0x13d   :  { %1528 = vmatpush1.bf16.msra.mxu0 %v2522_v34  ;;  %1569 = vmatpush1.bf16.msra.mxu1 %v2525_v35  ;;  %v2595_v34 = vld [vmem:[%s3430_s5 + $0xa0] sm:$0xff]   ;;  %v2596_v35 = vld [vmem:[%s3430_s5 + $0xe8] sm:$0xff]  }
 0x13e   :  { %1529 = vmatprep.subr.bf16.mxu0 %v2530_v36  ;;  %1570 = vmatprep.subr.bf16.mxu1 %v2533_v37  ;;  %v2597_v36 = vld [vmem:[%s3430_s5 + $0xa8] sm:$0xff]   ;;  %v2598_v37 = vld [vmem:[%s3430_s5 + $0xf0] sm:$0xff]  }
 0x141   :  { %1530 = vmatpush1.bf16.msra.mxu0 %v2528_v38  ;;  %1571 = vmatpush1.bf16.msra.mxu1 %v2531_v39  ;;  %v2599_v38 = vld [vmem:[%s3430_s5 + $0xb0] sm:$0xff]   ;;  %v2600_v39 = vld [vmem:[%s3430_s5 + $0xf8] sm:$0xff]  }
 0x142   :  { %1531 = vmatprep.subr.bf16.mxu0 %v2536_v40  ;;  %1572 = vmatprep.subr.bf16.mxu1 %v2539_v41  ;;  %v2601_v40 = vld [vmem:[%s3430_s5 + $0xb8] sm:$0xff]   ;;  %v2196_v41 = vld [vmem:[%s3431_s6 + $0x1] ss:$4 sm:$0xf] }
 0x145   :  { %1532 = vmatpush1.bf16.msra.mxu0 %v2534_v42  ;;  %1573 = vmatpush1.bf16.msra.mxu1 %v2537_v43 }
 0x146   :  { %1533 = vmatprep.subr.bf16.mxu0 %v2542_v44  ;;  %1574 = vmatprep.subr.bf16.mxu1 %v2545_v46  ;;  %v1599_v46 = vrot.slane %v2196_v41, %v97_v28 }
 0x149   :  { %1534 = vmatpush1.bf16.msra.mxu0 %v2540_v47  ;;  %1575 = vmatpush1.bf16.msra.mxu1 %v2543_v49 }
 0x14a   :  { %1535 = vmatprep.subr.bf16.mxu0 %v2548_v50  ;;  %1576 = vmatprep.subr.bf16.mxu1 %v2551_v51  ;;  %v1603_v51 = vrot.slane %v2196_v41, %v101_v31  ;;  %v1607_v31 = vrot.slane %v2196_v41, %v105_v29 }
 0x14d   :  { %1536 = vmatpush1.bf16.msra.mxu0 %v2546_v52  ;;  %1577 = vmatpush1.bf16.msra.mxu1 %v2549_v53 }
 0x14e   :  { %1537 = vmatprep.subr.bf16.mxu0 %v2554_v54  ;;  %1578 = vmatprep.subr.bf16.mxu1 %v2557_v56 }
 0x151   :  { %1538 = vmatpush1.bf16.msra.mxu0 %v2552_v57  ;;  %1579 = vmatpush1.bf16.msra.mxu1 %v2555_v58 }
 0x152   :  { %1539 = vmatprep.subr.bf16.mxu0 %v2560_v59  ;;  %1580 = vmatprep.subr.bf16.mxu1 %v2563_v62 }
 0x155   :  { %1540 = vmatpush1.bf16.msra.mxu0 %v2558_v63  ;;  %1581 = vmatpush1.bf16.msra.mxu1 %v2561_v2 }
 0x156   :  { %1541 = vmatprep.subr.bf16.mxu0 %v2566_v3  ;;  %1582 = vmatprep.subr.bf16.mxu1 %v2569_v4 }
 0x159   :  { %1542 = vmatpush1.bf16.msra.mxu0 %v2564_v5  ;;  %1583 = vmatpush1.bf16.msra.mxu1 %v2567_v6 }
 0x15a   :  { %2230 = vmatprep.subr.bf16.mxu0 %v2570_v7  ;;  %2252 = vmatprep.subr.bf16.mxu1 %v2586_v21 }
 0x15c   :  { %1544 = vmatmul.mubr.bf16.vlgmr.msra.gmra.mrb[12].mxu0 %v3102_v55  ;;  %1585 = vmatmul.mubr.bf16.vlgmr.msra.gmra.mrb[12].mxu1 %v3094_v48  ;;  %v2576_v48 = vld [vmem:[%s3430_s5 + $0x58] sm:$0xff]  }
 0x15d   :  { %2231 = vmatpush3.bf16.msra.mxu0 %v2571_v8  ;;  %v2577_v55 = vld [vmem:[%s3430_s5 + $0x18] sm:$0xff]   ;;  %2253 = vmatpush3.bf16.msra.mxu1 %v2587_v22  ;;  %v1611_v8 = vrot.slane %v2196_v41, %v109_v32  ;;  %v2197_v32 = vld [vmem:[%s3431_s6 + $0x2] ss:$0 sm:$0xff]  ;;  %s2633_s6 = smov [#allocation2]  }
 0x15e   :  { %2232 = vmatprep.subr.bf16.mxu0 %v2572_v9  ;;  %2254 = vmatprep.subr.bf16.mxu1 %v2588_v23  ;;  %s1989_s17 = sshll.u32 %s2633_s6, 4  ;;  %s1990_s17 = int_to_ptr.vmem [resolvable:$true] %s1989_s17 }
 0x15f   :  { %s2606_s18 = scalar_lea.vmem %s1990_s17, 32  ;;  %p2611_p1 = scmp.lt.s32.totalorder %s1990_s17, %s1990_s17 }
 0x160   :  { %p2607_p0 = scmp.ne.s32.totalorder %s1990_s17, %s2606_s18  ;;  %p2612_p2 = scmp.lt.s32.totalorder %s2606_s18, %s2606_s18 }
 0x161   :  { %2233 = vmatpush3.bf16.msra.mxu0 %v2573_v10  ;;  %2255 = vmatpush3.bf16.msra.mxu1 %v2589_v24 }
 0x162   :  { %2234 = vmatprep.subr.bf16.mxu0 %v2574_v11  ;;  %2256 = vmatprep.subr.bf16.mxu1 %v2590_v25  ;;  %p2613_p3 = por %p2612_p2, %p2611_p1 }
 0x164   :  { %p2614_p4 = pnand %p2613_p3, %p2607_p0 }
 0x165   :  { %2235 = vmatpush3.bf16.msra.mxu0 %v2575_v12  ;;  %2257 = vmatpush3.bf16.msra.mxu1 %v2591_v26 }
 0x166   :  { %2236 = vmatprep.subr.bf16.mxu0 %v2576_v48  ;;  %2258 = vmatprep.subr.bf16.mxu1 %v2592_v27 }
 0x169   :  { %2237 = vmatpush3.bf16.msra.mxu0 %v2577_v55  ;;  %2259 = vmatpush3.bf16.msra.mxu1 %v2593_v30 }
 0x16a   :  { %2238 = vmatprep.subr.bf16.mxu0 %v2578_v13  ;;  %2260 = vmatprep.subr.bf16.mxu1 %v2594_v33 }
 0x16d   :  { %2239 = vmatpush3.bf16.msra.mxu0 %v2579_v14  ;;  %2261 = vmatpush3.bf16.msra.mxu1 %v2595_v34 }
 0x16e   :  { %2240 = vmatprep.subr.bf16.mxu0 %v2580_v15  ;;  %2262 = vmatprep.subr.bf16.mxu1 %v2596_v35 }
 0x171   :  { %2241 = vmatpush3.bf16.msra.mxu0 %v2581_v16  ;;  %2263 = vmatpush3.bf16.msra.mxu1 %v2597_v36 }
 0x172   :  { %2242 = vmatprep.subr.bf16.mxu0 %v2582_v17  ;;  %2264 = vmatprep.subr.bf16.mxu1 %v2598_v37 }
 0x175   :  { %2243 = vmatpush3.bf16.msra.mxu0 %v2583_v18  ;;  %2265 = vmatpush3.bf16.msra.mxu1 %v2599_v38 }
 0x176   :  { %2244 = vmatprep.subr.bf16.mxu0 %v2584_v19  ;;  %2266 = vmatprep.subr.bf16.mxu1 %v2600_v39 }
 0x179   :  { %2245 = vmatpush3.bf16.msra.mxu0 %v2585_v20  ;;  %2267 = vmatpush3.bf16.msra.mxu1 %v2601_v40 }
 0x1ef   :  { %v1463_v42 = vpop.f32.mrb[8].mxu0  ;;  %v1504_v43 = vpop.f32.mrb[8].mxu1 }
 0x1f0   :  { %v1464_v44 = vadd.f32 %v1463_v42, %v3118_v60  ;;  %v1465_v47 = vpop.f32.mrb[9].mxu0  ;;  %v1506_v49 = vpop.f32.mrb[9].mxu1 }
 0x1f1   :  { %v1466_v50 = vadd.f32 %v1465_v47, %v3128_v0  ;;  %v1467_v52 = vpop.f32.mrb[10].mxu0  ;;  %v1508_v53 = vpop.f32.mrb[10].mxu1 }
 0x1f2   :  { %v1505_v54 = vadd.f32 %v1504_v43, %v1464_v44  ;;  %v1468_v56 = vpop.f32.mrb[11].mxu0  ;;  %v1509_v57 = vpop.f32.mrb[11].mxu1 }
 0x1f3   :  { %v1507_v58 = vadd.f32 %v1506_v49, %v1466_v50 }
 0x1f4   :  { %v1616_v59 = vadd.f32 %v1599_v46, %v1505_v54 }
 0x1f5   :  { %v1617_v62 = vadd.f32 %v1603_v51, %v1507_v58 }
 0x1f6   :  { %v1620_v63 = vmax.f32 %v1616_v59, 0.0 }
 0x1f7   :  { %v1621_v60 = vmax.f32 %v1617_v62, 0.0 }
 0x1f8   :  { %v1624_v3 = vpack.c.bf16 %v1620_v63, %v1620_v63 }
 0x1f9   :  { %v1625_v2 = vpack.c.bf16 %v1621_v60, %v1621_v60 }
 0x1fb   :  { %1921 = vmatprep.mubr.bf16.mxu0 %v1625_v2 }
 0x1fc   :  { %1922 = vmatmul.mubr.bf16.vlgmr.msra.gmra.mrb[16].mxu0 %v1624_v3 }
 0x22f   :  { %v1545_v28 = vpop.f32.mrb[12].mxu0  ;;  %v1586_v4 = vpop.f32.mrb[12].mxu1 }
 0x230   :  { %v1546_v0 = vadd.f32 %v1545_v28, %v3120_v61  ;;  %v1547_v5 = vpop.f32.mrb[13].mxu0  ;;  %v1588_v6 = vpop.f32.mrb[13].mxu1 }
 0x231   :  { %v1548_v7 = vadd.f32 %v1547_v5, %v3130_v1  ;;  %v1549_v9 = vpop.f32.mrb[14].mxu0  ;;  %v1590_v10 = vpop.f32.mrb[14].mxu1 }
 0x232   :  { %v1587_v11 = vadd.f32 %v1586_v4, %v1546_v0  ;;  %v1550_v12 = vpop.f32.mrb[15].mxu0  ;;  %v1591_v48 = vpop.f32.mrb[15].mxu1 }
 0x233   :  { %v1589_v55 = vadd.f32 %v1588_v6, %v1548_v7 }
 0x234   :  { %v1618_v13 = vadd.f32 %v1607_v31, %v1587_v11 }
 0x235   :  { %v1619_v14 = vadd.f32 %v1611_v8, %v1589_v55 }
 0x236   :  { %v1622_v15 = vmax.f32 %v1618_v13, 0.0 }
 0x237   :  { %v1623_v61 = vmax.f32 %v1619_v14, 0.0 }
 0x238   :  { %v1626_v17 = vpack.c.bf16 %v1622_v15, %v1622_v15 }
 0x239   :  { %v1627_v16 = vpack.c.bf16 %v1623_v61, %v1623_v61 }
 0x23b   :  { %1961 = vmatprep.mubr.bf16.mxu1 %v1627_v16 }
 0x23c   :  { %1962 = vmatmul.mubr.bf16.vlgmr.msra.gmra.mrb[16].mxu1 %v1626_v17 }
 0x2cf   :  { %v2246_v29 = vpop.f32.mrb[16].mxu0 }
 0x2d0   :  { %v2247_v18 = vpop.f32.mrb[17].mxu0 }
 0x2d1   :  { %v2248_v1 = vadd.f32 %v2247_v18, %v2246_v29  ;;  %v2249_v19 = vpop.f32.mrb[18].mxu0 }
 0x2d2   :  { %v2250_v45 = vpop.f32.mrb[19].mxu0 }
 0x2d3   :  { %v1924_v22 = vadd.f32 %v2248_v1, %v2197_v32 }
 0x30f   :  { %v2268_v20 = vpop.f32.mrb[16].mxu1 }
 0x310   :  { %v2269_v21 = vpop.f32.mrb[17].mxu1 }
 0x311   :  { %v2270_v23 = vadd.f32 %v2269_v21, %v2268_v20  ;;  %v2271_v24 = vpop.f32.mrb[18].mxu1 }
 0x312   :  { %v2272_v25 = vpop.f32.mrb[19].mxu1 }
 0x313   :  { %v1964_v26 = vadd.f32 %v2270_v23, %v1924_v22 }
 0x315   :  { %v1969_v27 = vmax.f32 %v1964_v26, 0.0 }
 0x317   :  { %v1971_v30 = vsel %vm1970_vm3, %v1969_v27, -inf }
 0x318   :  { %1972 = vmax.xlane.f32.xlu0 %v1971_v30 }
 0x3a5   :  { %v1973_v33 = vpop.xlane.xlu0 %1972 }
 0x3a6   :  { %v1974_v34 = vsub.f32 %v1969_v27, %v1973_v33 }
 0x3a8   :  { %v1975_v35 = vmul.f32 1.442695, %v1974_v34 }
 0x3aa   :  { %2602 = vpow2.f32 %v1975_v35 }
 0x3b4   :  { %v2603_v36 = vpop.eup %2602 }
 0x3b5   :  { %v1977_v37 = vsel %vm1970_vm3, %v2603_v36, 0.0 }
 0x3b6   :  { %1978 = vadd.xlane.f32.xlu0 %v1977_v37 }
 0x443   :  { %v1979_v38 = vpop.xlane.xlu0 %1978 }
 0x444   :  { %2604 = vrcp.f32 %v1979_v38 }
 0x44e   :  { %v2605_v39 = vpop.eup %2604 }
 0x44f   :  { %v1981_v40 = vmul.f32 %v2605_v39, %v2603_v36 }
 0x451   :  { %1982 = vst.msk [vmem:[#allocation2] sm:$0x3] %vm1970_vm3, %v1981_v40 }
 0x452   :  { %2617 = shalt.err (!%p2614_p4)
}
 0x453   :  { %s2618_s2 = scalar_lea.hbm %s3432_s7, 32 }
 0x454   :  { %p2619_p5 = scmp.ne.s32.totalorder %s3432_s7, %s2618_s2  ;;  %p2622_p6 = scmp.lt.u32.totalorder %s2618_s2, %s3432_s7 }
 0x456   :  { %p2624_p7 = pnand %p2622_p6, %p2619_p5 }
 0x458   :  { %2627 = shalt.err (!%p2624_p7)
}
 0x459   :  { %1992 = dma.vmem_to_hbm [thread:$0]  %s1990_s17, 32, %s3432_s7, [#allocation3]  }
 0x45a   :  { %2628 = dma.done.wait [#allocation3], 32  }
 0x45b   :  { %2629 = vsyncadd [#allocation3], 4294967264 }
 0x45c   :  { %1996 = vsyncpa [#allocation3], 1 }

</bundles_post_ra>
